<compile_context>
chip_gen: v7x
topology: tpu7x:2x2x1
jax: 0.10.0
libtpu: 0.0.40
codegen_flags: <defaults>
</compile_context>

<pallas_src>
import jax
import jax.numpy as jnp
import numpy as np
from jax.experimental import pallas as pl
from jax.experimental.pallas import tpu as pltpu

_SQRT_HALF = 0.7071067811865476
_BN_EPS = 1e-5


def _gelu_exact(v):
    # PyTorch nn.GELU() default (approximate='none'): 0.5*x*(1+erf(x/sqrt(2)))
    return 0.5 * v * (1.0 + jax.lax.erf(v * _SQRT_HALF))


def mixer_stage1_kernel(x_ref, dw_ref, dwb_ref, pw_ref, pwb_ref,
                        y_ref, ysum_ref, ysq_ref, xp_ref):
    """One image per grid step:
       depthwise KxK 'same' conv -> GELU -> +residual -> 1x1 conv (MXU) -> GELU.
       Also emits per-image per-channel sum / sumsq (phase 1 of two-pass BN)."""
    _, H, W, C = x_ref.shape
    K = dw_ref.shape[0]
    pad = (xp_ref.shape[1] - H) // 2

    x = x_ref[...]                                    # (1, H, W, C) single HBM read

    # Fold zero padding into the kernel: build the padded copy in VMEM scratch
    # (no wrapper-side jnp.pad, no second padded copy of the input in HBM).
    xp_ref[...] = jnp.zeros(xp_ref.shape, xp_ref.dtype)
    xp_ref[:, pad:pad + H, pad:pad + W, :] = x
    xp = xp_ref[...]                                  # (1, H+2p, W+2p, C)

    dw = dw_ref[...]                                  # (K, K, C)
    # Hoist the K*K per-tap (1,1,C) weight slices out of the MAC loop.
    taps = [dw[ki:ki + 1, kj:kj + 1, :] for ki in range(K) for kj in range(K)]

    # Depthwise KxK conv (groups=dim, padding='same') as shift-and-MAC on VPU.
    acc = jnp.zeros((1, H, W, C), jnp.float32) + dwb_ref[...]
    t = 0
    for ki in range(K):
        for kj in range(K):
            acc = acc + xp[:, ki:ki + H, kj:kj + W, :] * taps[t]
            t += 1

    residual = _gelu_exact(acc) + x

    # Pointwise 1x1 conv as one MXU matmul over the channel axis
    # (f32 operands kept to hold the 1e-4 tolerance; cast to bf16 for more
    #  MXU throughput on v6e/v7x if tolerance allows).
    r2d = residual.reshape(H * W, C)
    y2d = jnp.dot(r2d, pw_ref[...], preferred_element_type=jnp.float32)
    y2d = _gelu_exact(y2d + pwb_ref[...])

    # Pre-BN activations (flattened spatial; channels stay in the lane dim).
    y_ref[...] = y2d.reshape(1, H * W, C)

    # Phase-1 BatchNorm statistics: per-image per-channel sum and sum-of-squares.
    ysum_ref[...] = jnp.sum(y2d, axis=0, keepdims=True).reshape(1, 1, C)
    ysq_ref[...] = jnp.sum(y2d * y2d, axis=0, keepdims=True).reshape(1, 1, C)


def mixer_bn_kernel(y_ref, scale_ref, shift_ref, o_ref):
    """Phase-2 BatchNorm: normalize with precomputed per-channel scale/shift."""
    o_ref[...] = y_ref[...] * scale_ref[...] + shift_ref[...]


def mixer_block_forward(x_nchw, params, kernel_size=3):
    """x_nchw: (N, C, H, W) float32 -> (N, C, H, W) float32."""
    N, C, H, W = x_nchw.shape
    K = kernel_size
    pad = K // 2
    HW = H * W

    # Boundary layout change only (PyTorch NCHW -> kernel NHWC).  NHWC keeps
    # channels in the lane dimension: lane-dense for realistic ConvMixer dims.
    x = jnp.transpose(x_nchw, (0, 2, 3, 1)).astype(jnp.float32)

    dw_w = jnp.transpose(params["dw_w"].reshape(C, K, K), (1, 2, 0))    # (K,K,C)
    dw_b = params["dw_b"].reshape(1, C)
    pw_w = params["pw_w"].reshape(C, C).T                               # (Cin,Cout)
    pw_b = params["pw_b"].reshape(1, C)
    gamma = params["bn_gamma"].reshape(1, C)
    beta = params["bn_beta"].reshape(1, C)

    cparams = pltpu.CompilerParams(
        dimension_semantics=("parallel",),        # shards the batch over v7x's 2 TCs
        vmem_limit_bytes=48 * 1024 * 1024)        # explicit budget (< v7x 64 MiB)

    # --- Phase 1: fused depthwise + residual + pointwise + GELUs, tiled over N.
    y, ysum, ysq = pl.pallas_call(
        mixer_stage1_kernel,
        out_shape=(jax.ShapeDtypeStruct((N, HW, C), jnp.float32),
                   jax.ShapeDtypeStruct((N, 1, C), jnp.float32),
                   jax.ShapeDtypeStruct((N, 1, C), jnp.float32)),
        grid=(N,),
        in_specs=[pl.BlockSpec((1, H, W, C), lambda n: (n, 0, 0, 0)),
                  pl.BlockSpec((K, K, C), lambda n: (0, 0, 0)),
                  pl.BlockSpec((1, C), lambda n: (0, 0)),
                  pl.BlockSpec((C, C), lambda n: (0, 0)),
                  pl.BlockSpec((1, C), lambda n: (0, 0))],
        out_specs=(pl.BlockSpec((1, HW, C), lambda n: (n, 0, 0)),
                   pl.BlockSpec((1, 1, C), lambda n: (n, 0, 0)),
                   pl.BlockSpec((1, 1, C), lambda n: (n, 0, 0))),
        scratch_shapes=[pltpu.VMEM((1, H + 2 * pad, W + 2 * pad, C), jnp.float32)],
        compiler_params=cparams,
    )(x, dw_w, dw_b, pw_w, pw_b)

    # --- Tiny cross-image reduction of BN partial stats (N*C floats).
    count = float(N * HW)
    mean = jnp.sum(ysum, axis=0) / count                    # (1, C)
    var = jnp.sum(ysq, axis=0) / count - mean * mean        # biased var (train mode)
    scale = gamma * jax.lax.rsqrt(var + _BN_EPS)
    shift = beta - mean * scale

    # --- Phase 2: tiled normalize.
    out = pl.pallas_call(
        mixer_bn_kernel,
        out_shape=jax.ShapeDtypeStruct((N, HW, C), jnp.float32),
        grid=(N,),
        in_specs=[pl.BlockSpec((1, HW, C), lambda n: (n, 0, 0)),
                  pl.BlockSpec((1, C), lambda n: (0, 0)),
                  pl.BlockSpec((1, C), lambda n: (0, 0))],
        out_specs=pl.BlockSpec((1, HW, C), lambda n: (n, 0, 0)),
        compiler_params=cparams,
    )(y, scale, shift)

    # Boundary layout change back to PyTorch NCHW.
    return jnp.transpose(out.reshape(N, H, W, C), (0, 3, 1, 2))


def mixer_block_reference(x_nchw, params, kernel_size=3):
    """Pure-JAX reference (NCHW, like PyTorch) for correctness checking."""
    C = x_nchw.shape[1]
    y = jax.lax.conv_general_dilated(
        x_nchw, params["dw_w"], window_strides=(1, 1), padding="SAME",
        dimension_numbers=("NCHW", "OIHW", "NCHW"), feature_group_count=C)
    y = y + params["dw_b"][None, :, None, None]
    y = _gelu_exact(y)
    residual = y + x_nchw
    z = jax.lax.conv_general_dilated(
        residual, params["pw_w"], (1, 1), "SAME",
        dimension_numbers=("NCHW", "OIHW", "NCHW"))
    z = z + params["pw_b"][None, :, None, None]
    z = _gelu_exact(z)
    mean = jnp.mean(z, axis=(0, 2, 3), keepdims=True)
    var = jnp.mean((z - mean) ** 2, axis=(0, 2, 3), keepdims=True)
    zn = (z - mean) * jax.lax.rsqrt(var + _BN_EPS)
    return (params["bn_gamma"][None, :, None, None] * zn
            + params["bn_beta"][None, :, None, None])


if __name__ == "__main__":
    N, dim, H, W = 2, 4, 16, 16
    K = 3

    key = jax.random.PRNGKey(0)
    k_x, k_dw, k_dwb, k_pw, k_pwb = jax.random.split(key, 5)

    x = jax.random.normal(k_x, (N, dim, H, W), dtype=jnp.float32)

    # Deterministic synthetic parameters (shapes from nn.Conv2d / nn.BatchNorm2d).
    params = {
        "dw_w": 0.2 * jax.random.normal(k_dw, (dim, 1, K, K), dtype=jnp.float32),
        "dw_b": 0.1 * jax.random.normal(k_dwb, (dim,), dtype=jnp.float32),
        "pw_w": 0.2 * jax.random.normal(k_pw, (dim, dim, 1, 1), dtype=jnp.float32),
        "pw_b": 0.1 * jax.random.normal(k_pwb, (dim,), dtype=jnp.float32),
        "bn_gamma": jnp.ones((dim,), dtype=jnp.float32),
        "bn_beta": jnp.zeros((dim,), dtype=jnp.float32),
        # TODO(synk): BatchNorm2d running_mean/var buffer updates (training-time
        # side effect) are not modeled; forward math uses batch stats as PyTorch does.
    }

    out = mixer_block_forward(x, params, kernel_size=K)
    out = jax.block_until_ready(out)

    ref = jax.block_until_ready(mixer_block_reference(x, params, kernel_size=K))
    np.testing.assert_allclose(np.asarray(out), np.asarray(ref),
                               rtol=1e-4, atol=1e-4)

    print("KERNEL_OK")
</pallas_src>

<mosaic_0001>
module attributes {stable_mosaic.version = 11 : i64} {
  func.func @mixer_stage1_kernel(%arg0: i32, %arg1: memref<1x16x16x4xf32, #tpu.memory_space<vmem>>, %arg2: memref<3x3x4xf32, #tpu.memory_space<vmem>>, %arg3: memref<1x4xf32, #tpu.memory_space<vmem>>, %arg4: memref<4x4xf32, #tpu.memory_space<vmem>>, %arg5: memref<1x4xf32, #tpu.memory_space<vmem>>, %arg6: memref<1x256x4xf32, #tpu.memory_space<vmem>>, %arg7: memref<1x1x4xf32, #tpu.memory_space<vmem>>, %arg8: memref<1x1x4xf32, #tpu.memory_space<vmem>>, %arg9: memref<1x18x18x4xf32, #tpu.memory_space<vmem>>) attributes {dimension_semantics = [#tpu.dimension_semantics<parallel>], iteration_bounds = array<i64: 2>, scalar_prefetch = 0 : i64, scratch_operands = 1 : i64, tpu.core_type = #tpu.core_type<tc>, window_params = [{transform_indices = @transform_0, window_bounds = array<i64: 1, 16, 16, 4>}, {pipeline_mode = #tpu.pipeline_mode<synchronous>, transform_indices = @transform_1, window_bounds = array<i64: 3, 3, 4>}, {pipeline_mode = #tpu.pipeline_mode<synchronous>, transform_indices = @transform_2, window_bounds = array<i64: 1, 4>}, {pipeline_mode = #tpu.pipeline_mode<synchronous>, transform_indices = @transform_3, window_bounds = array<i64: 4, 4>}, {pipeline_mode = #tpu.pipeline_mode<synchronous>, transform_indices = @transform_4, window_bounds = array<i64: 1, 4>}, {transform_indices = @transform_5, window_bounds = array<i64: 1, 256, 4>}, {transform_indices = @transform_6, window_bounds = array<i64: 1, 1, 4>}, {transform_indices = @transform_7, window_bounds = array<i64: 1, 1, 4>}]} {
    %c0 = arith.constant 0 : index
    %c0_0 = arith.constant 0 : index
    %c0_1 = arith.constant 0 : index
    %c0_2 = arith.constant 0 : index
    %0 = vector.load %arg1[%c0, %c0_0, %c0_1, %c0_2] : memref<1x16x16x4xf32, #tpu.memory_space<vmem>>, vector<1x16x16x4xf32>
    %cst = arith.constant 0.000000e+00 : f32
    %1 = vector.broadcast %cst : f32 to vector<1x18x18x4xf32>
    %c0_3 = arith.constant 0 : index
    %c0_4 = arith.constant 0 : index
    %c0_5 = arith.constant 0 : index
    %c0_6 = arith.constant 0 : index
    %2 = vector.load %arg9[%c0_3, %c0_4, %c0_5, %c0_6] : memref<1x18x18x4xf32, #tpu.memory_space<vmem>>, vector<1x18x18x4xf32>
    tpu.vector_store %arg9[%c0_3, %c0_4, %c0_5, %c0_6], %1 {strides = array<i32>} : memref<1x18x18x4xf32, #tpu.memory_space<vmem>>, vector<1x18x18x4xf32>,
    %c0_7 = arith.constant 0 : index
    %c1 = arith.constant 1 : index
    %c1_8 = arith.constant 1 : index
    %c0_9 = arith.constant 0 : index
    %3 = vector.load %arg9[%c0_7, %c1, %c1_8, %c0_9] : memref<1x18x18x4xf32, #tpu.memory_space<vmem>>, vector<1x16x16x4xf32>
    tpu.vector_store %arg9[%c0_7, %c1, %c1_8, %c0_9], %0 {strides = array<i32>} : memref<1x18x18x4xf32, #tpu.memory_space<vmem>>, vector<1x16x16x4xf32>,
    %c0_10 = arith.constant 0 : index
    %c0_11 = arith.constant 0 : index
    %c0_12 = arith.constant 0 : index
    %c0_13 = arith.constant 0 : index
    %4 = vector.load %arg9[%c0_10, %c0_11, %c0_12, %c0_13] : memref<1x18x18x4xf32, #tpu.memory_space<vmem>>, vector<1x18x18x4xf32>
    %c0_14 = arith.constant 0 : index
    %c0_15 = arith.constant 0 : index
    %c0_16 = arith.constant 0 : index
    %5 = vector.load %arg2[%c0_14, %c0_15, %c0_16] : memref<3x3x4xf32, #tpu.memory_space<vmem>>, vector<3x3x4xf32>
    %6 = vector.extract_strided_slice %5 {offsets = [0, 0, 0], sizes = [1, 1, 4], strides = [1, 1, 1]} : vector<3x3x4xf32> to vector<1x1x4xf32>
    %7 = vector.extract_strided_slice %5 {offsets = [0, 1, 0], sizes = [1, 1, 4], strides = [1, 1, 1]} : vector<3x3x4xf32> to vector<1x1x4xf32>
    %8 = vector.extract_strided_slice %5 {offsets = [0, 2, 0], sizes = [1, 1, 4], strides = [1, 1, 1]} : vector<3x3x4xf32> to vector<1x1x4xf32>
    %9 = vector.extract_strided_slice %5 {offsets = [1, 0, 0], sizes = [1, 1, 4], strides = [1, 1, 1]} : vector<3x3x4xf32> to vector<1x1x4xf32>
    %10 = vector.extract_strided_slice %5 {offsets = [1, 1, 0], sizes = [1, 1, 4], strides = [1, 1, 1]} : vector<3x3x4xf32> to vector<1x1x4xf32>
    %11 = vector.extract_strided_slice %5 {offsets = [1, 2, 0], sizes = [1, 1, 4], strides = [1, 1, 1]} : vector<3x3x4xf32> to vector<1x1x4xf32>
    %12 = vector.extract_strided_slice %5 {offsets = [2, 0, 0], sizes = [1, 1, 4], strides = [1, 1, 1]} : vector<3x3x4xf32> to vector<1x1x4xf32>
    %13 = vector.extract_strided_slice %5 {offsets = [2, 1, 0], sizes = [1, 1, 4], strides = [1, 1, 1]} : vector<3x3x4xf32> to vector<1x1x4xf32>
    %14 = vector.extract_strided_slice %5 {offsets = [2, 2, 0], sizes = [1, 1, 4], strides = [1, 1, 1]} : vector<3x3x4xf32> to vector<1x1x4xf32>
    %cst_17 = arith.constant 0.000000e+00 : f32
    %15 = vector.broadcast %cst_17 : f32 to vector<1x16x16x4xf32>
    %c0_18 = arith.constant 0 : index
    %c0_19 = arith.constant 0 : index
    %16 = vector.load %arg3[%c0_18, %c0_19] : memref<1x4xf32, #tpu.memory_space<vmem>>, vector<1x4xf32>
    %17 = vector.shape_cast %16 : vector<1x4xf32> to vector<1x1x1x4xf32>
    %18 = vector.broadcast %17 : vector<1x1x1x4xf32> to vector<1x16x16x4xf32>
    %19 = arith.addf %15, %18 : vector<1x16x16x4xf32>
    %20 = vector.extract_strided_slice %4 {offsets = [0, 0, 0, 0], sizes = [1, 16, 16, 4], strides = [1, 1, 1, 1]} : vector<1x18x18x4xf32> to vector<1x16x16x4xf32>
    %21 = vector.shape_cast %6 : vector<1x1x4xf32> to vector<1x1x1x4xf32>
    %22 = vector.broadcast %21 : vector<1x1x1x4xf32> to vector<1x16x16x4xf32>
    %23 = arith.mulf %20, %22 : vector<1x16x16x4xf32>
    %24 = arith.addf %19, %23 : vector<1x16x16x4xf32>
    %25 = vector.extract_strided_slice %4 {offsets = [0, 0, 1, 0], sizes = [1, 16, 16, 4], strides = [1, 1, 1, 1]} : vector<1x18x18x4xf32> to vector<1x16x16x4xf32>
    %26 = vector.shape_cast %7 : vector<1x1x4xf32> to vector<1x1x1x4xf32>
    %27 = vector.broadcast %26 : vector<1x1x1x4xf32> to vector<1x16x16x4xf32>
    %28 = arith.mulf %25, %27 : vector<1x16x16x4xf32>
    %29 = arith.addf %24, %28 : vector<1x16x16x4xf32>
    %30 = vector.extract_strided_slice %4 {offsets = [0, 0, 2, 0], sizes = [1, 16, 16, 4], strides = [1, 1, 1, 1]} : vector<1x18x18x4xf32> to vector<1x16x16x4xf32>
    %31 = vector.shape_cast %8 : vector<1x1x4xf32> to vector<1x1x1x4xf32>
    %32 = vector.broadcast %31 : vector<1x1x1x4xf32> to vector<1x16x16x4xf32>
    %33 = arith.mulf %30, %32 : vector<1x16x16x4xf32>
    %34 = arith.addf %29, %33 : vector<1x16x16x4xf32>
    %35 = vector.extract_strided_slice %4 {offsets = [0, 1, 0, 0], sizes = [1, 16, 16, 4], strides = [1, 1, 1, 1]} : vector<1x18x18x4xf32> to vector<1x16x16x4xf32>
    %36 = vector.shape_cast %9 : vector<1x1x4xf32> to vector<1x1x1x4xf32>
    %37 = vector.broadcast %36 : vector<1x1x1x4xf32> to vector<1x16x16x4xf32>
    %38 = arith.mulf %35, %37 : vector<1x16x16x4xf32>
    %39 = arith.addf %34, %38 : vector<1x16x16x4xf32>
    %40 = vector.extract_strided_slice %4 {offsets = [0, 1, 1, 0], sizes = [1, 16, 16, 4], strides = [1, 1, 1, 1]} : vector<1x18x18x4xf32> to vector<1x16x16x4xf32>
    %41 = vector.shape_cast %10 : vector<1x1x4xf32> to vector<1x1x1x4xf32>
    %42 = vector.broadcast %41 : vector<1x1x1x4xf32> to vector<1x16x16x4xf32>
    %43 = arith.mulf %40, %42 : vector<1x16x16x4xf32>
    %44 = arith.addf %39, %43 : vector<1x16x16x4xf32>
    %45 = vector.extract_strided_slice %4 {offsets = [0, 1, 2, 0], sizes = [1, 16, 16, 4], strides = [1, 1, 1, 1]} : vector<1x18x18x4xf32> to vector<1x16x16x4xf32>
    %46 = vector.shape_cast %11 : vector<1x1x4xf32> to vector<1x1x1x4xf32>
    %47 = vector.broadcast %46 : vector<1x1x1x4xf32> to vector<1x16x16x4xf32>
    %48 = arith.mulf %45, %47 : vector<1x16x16x4xf32>
    %49 = arith.addf %44, %48 : vector<1x16x16x4xf32>
    %50 = vector.extract_strided_slice %4 {offsets = [0, 2, 0, 0], sizes = [1, 16, 16, 4], strides = [1, 1, 1, 1]} : vector<1x18x18x4xf32> to vector<1x16x16x4xf32>
    %51 = vector.shape_cast %12 : vector<1x1x4xf32> to vector<1x1x1x4xf32>
    %52 = vector.broadcast %51 : vector<1x1x1x4xf32> to vector<1x16x16x4xf32>
    %53 = arith.mulf %50, %52 : vector<1x16x16x4xf32>
    %54 = arith.addf %49, %53 : vector<1x16x16x4xf32>
    %55 = vector.extract_strided_slice %4 {offsets = [0, 2, 1, 0], sizes = [1, 16, 16, 4], strides = [1, 1, 1, 1]} : vector<1x18x18x4xf32> to vector<1x16x16x4xf32>
    %56 = vector.shape_cast %13 : vector<1x1x4xf32> to vector<1x1x1x4xf32>
    %57 = vector.broadcast %56 : vector<1x1x1x4xf32> to vector<1x16x16x4xf32>
    %58 = arith.mulf %55, %57 : vector<1x16x16x4xf32>
    %59 = arith.addf %54, %58 : vector<1x16x16x4xf32>
    %60 = vector.extract_strided_slice %4 {offsets = [0, 2, 2, 0], sizes = [1, 16, 16, 4], strides = [1, 1, 1, 1]} : vector<1x18x18x4xf32> to vector<1x16x16x4xf32>
    %61 = vector.shape_cast %14 : vector<1x1x4xf32> to vector<1x1x1x4xf32>
    %62 = vector.broadcast %61 : vector<1x1x1x4xf32> to vector<1x16x16x4xf32>
    %63 = arith.mulf %60, %62 : vector<1x16x16x4xf32>
    %64 = arith.addf %59, %63 : vector<1x16x16x4xf32>
    %cst_20 = arith.constant 5.000000e-01 : f32
    %65 = vector.broadcast %cst_20 : f32 to vector<1x16x16x4xf32>
    %66 = arith.mulf %65, %64 : vector<1x16x16x4xf32>
    %cst_21 = arith.constant 0.707106769 : f32
    %67 = vector.broadcast %cst_21 : f32 to vector<1x16x16x4xf32>
    %68 = arith.mulf %64, %67 : vector<1x16x16x4xf32>
    %69 = math.erf %68 : vector<1x16x16x4xf32>
    %cst_22 = arith.constant 1.000000e+00 : f32
    %70 = vector.broadcast %cst_22 : f32 to vector<1x16x16x4xf32>
    %71 = arith.addf %70, %69 : vector<1x16x16x4xf32>
    %72 = arith.mulf %66, %71 : vector<1x16x16x4xf32>
    %73 = arith.addf %72, %0 : vector<1x16x16x4xf32>
    %74 = vector.shape_cast %73 : vector<1x16x16x4xf32> to vector<256x4xf32>
    %c0_23 = arith.constant 0 : index
    %c0_24 = arith.constant 0 : index
    %75 = vector.load %arg4[%c0_23, %c0_24] : memref<4x4xf32, #tpu.memory_space<vmem>>, vector<4x4xf32>
    %cst_25 = arith.constant dense<0.000000e+00> : vector<256x4xf32>
    %76 = tpu.matmul %74, %75, %cst_25 {dimension_numbers = #tpu.dot_dimension_numbers<[1], [0], [0], [1], [0, 0, 1, 1], [], []>} : vector<256x4xf32>, vector<4x4xf32>, vector<256x4xf32> -> vector<256x4xf32>
    %c0_26 = arith.constant 0 : index
    %c0_27 = arith.constant 0 : index
    %77 = vector.load %arg5[%c0_26, %c0_27] : memref<1x4xf32, #tpu.memory_space<vmem>>, vector<1x4xf32>
    %78 = vector.broadcast %77 : vector<1x4xf32> to vector<256x4xf32>
    %79 = arith.addf %76, %78 : vector<256x4xf32>
    %cst_28 = arith.constant 5.000000e-01 : f32
    %80 = vector.broadcast %cst_28 : f32 to vector<256x4xf32>
    %81 = arith.mulf %80, %79 : vector<256x4xf32>
    %cst_29 = arith.constant 0.707106769 : f32
    %82 = vector.broadcast %cst_29 : f32 to vector<256x4xf32>
    %83 = arith.mulf %79, %82 : vector<256x4xf32>
    %84 = math.erf %83 : vector<256x4xf32>
    %cst_30 = arith.constant 1.000000e+00 : f32
    %85 = vector.broadcast %cst_30 : f32 to vector<256x4xf32>
    %86 = arith.addf %85, %84 : vector<256x4xf32>
    %87 = arith.mulf %81, %86 : vector<256x4xf32>
    %88 = vector.shape_cast %87 : vector<256x4xf32> to vector<1x256x4xf32>
    %c0_31 = arith.constant 0 : index
    %c0_32 = arith.constant 0 : index
    %c0_33 = arith.constant 0 : index
    %89 = vector.load %arg6[%c0_31, %c0_32, %c0_33] : memref<1x256x4xf32, #tpu.memory_space<vmem>>, vector<1x256x4xf32>
    tpu.vector_store %arg6[%c0_31, %c0_32, %c0_33], %88 {strides = array<i32>} : memref<1x256x4xf32, #tpu.memory_space<vmem>>, vector<1x256x4xf32>,
    %cst_34 = arith.constant dense<0.000000e+00> : vector<4xf32>
    %90 = vector.multi_reduction <add>, %87, %cst_34 [0] : vector<256x4xf32> to vector<4xf32>
    %91 = vector.shape_cast %90 : vector<4xf32> to vector<1x4xf32>
    %92 = vector.shape_cast %91 : vector<1x4xf32> to vector<1x1x4xf32>
    %c0_35 = arith.constant 0 : index
    %c0_36 = arith.constant 0 : index
    %c0_37 = arith.constant 0 : index
    %93 = vector.load %arg7[%c0_35, %c0_36, %c0_37] : memref<1x1x4xf32, #tpu.memory_space<vmem>>, vector<1x1x4xf32>
    tpu.vector_store %arg7[%c0_35, %c0_36, %c0_37], %92 {strides = array<i32>} : memref<1x1x4xf32, #tpu.memory_space<vmem>>, vector<1x1x4xf32>,
    %94 = arith.mulf %87, %87 : vector<256x4xf32>
    %cst_38 = arith.constant dense<0.000000e+00> : vector<4xf32>
    %95 = vector.multi_reduction <add>, %94, %cst_38 [0] : vector<256x4xf32> to vector<4xf32>
    %96 = vector.shape_cast %95 : vector<4xf32> to vector<1x4xf32>
    %97 = vector.shape_cast %96 : vector<1x4xf32> to vector<1x1x4xf32>
    %c0_39 = arith.constant 0 : index
    %c0_40 = arith.constant 0 : index
    %c0_41 = arith.constant 0 : index
    %98 = vector.load %arg8[%c0_39, %c0_40, %c0_41] : memref<1x1x4xf32, #tpu.memory_space<vmem>>, vector<1x1x4xf32>
    tpu.vector_store %arg8[%c0_39, %c0_40, %c0_41], %97 {strides = array<i32>} : memref<1x1x4xf32, #tpu.memory_space<vmem>>, vector<1x1x4xf32>,
    return
  }
  func.func @transform_0(%arg0: i32) -> (i32, i32, i32, i32) {
    %c0_i32 = arith.constant 0 : i32
    %c0_i32_0 = arith.constant 0 : i32
    %c0_i32_1 = arith.constant 0 : i32
    %c0_i32_2 = arith.constant 0 : i32
    return %arg0, %c0_i32, %c0_i32_0, %c0_i32_1 : i32, i32, i32, i32
  }
  func.func @transform_1(%arg0: i32) -> (i32, i32, i32) {
    %c0_i32 = arith.constant 0 : i32
    %c0_i32_0 = arith.constant 0 : i32
    %c0_i32_1 = arith.constant 0 : i32
    %c0_i32_2 = arith.constant 0 : i32
    return %c0_i32, %c0_i32_0, %c0_i32_1 : i32, i32, i32
  }
  func.func @transform_2(%arg0: i32) -> (i32, i32) {
    %c0_i32 = arith.constant 0 : i32
    %c0_i32_0 = arith.constant 0 : i32
    %c0_i32_1 = arith.constant 0 : i32
    return %c0_i32, %c0_i32_0 : i32, i32
  }
  func.func @transform_3(%arg0: i32) -> (i32, i32) {
    %c0_i32 = arith.constant 0 : i32
    %c0_i32_0 = arith.constant 0 : i32
    %c0_i32_1 = arith.constant 0 : i32
    return %c0_i32, %c0_i32_0 : i32, i32
  }
  func.func @transform_4(%arg0: i32) -> (i32, i32) {
    %c0_i32 = arith.constant 0 : i32
    %c0_i32_0 = arith.constant 0 : i32
    %c0_i32_1 = arith.constant 0 : i32
    return %c0_i32, %c0_i32_0 : i32, i32
  }
  func.func @transform_5(%arg0: i32) -> (i32, i32, i32) {
    %c0_i32 = arith.constant 0 : i32
    %c0_i32_0 = arith.constant 0 : i32
    %c0_i32_1 = arith.constant 0 : i32
    return %arg0, %c0_i32, %c0_i32_0 : i32, i32, i32
  }
  func.func @transform_6(%arg0: i32) -> (i32, i32, i32) {
    %c0_i32 = arith.constant 0 : i32
    %c0_i32_0 = arith.constant 0 : i32
    %c0_i32_1 = arith.constant 0 : i32
    return %arg0, %c0_i32, %c0_i32_0 : i32, i32, i32
  }
  func.func @transform_7(%arg0: i32) -> (i32, i32, i32) {
    %c0_i32 = arith.constant 0 : i32
    %c0_i32_0 = arith.constant 0 : i32
    %c0_i32_1 = arith.constant 0 : i32
    return %arg0, %c0_i32, %c0_i32_0 : i32, i32, i32
  }
}

</mosaic_0001>

<bundles_post_ra>
// kernel: tpu_custom_call.1
= control target key start
LH: loop header
LB: loop body
LE: loop exit
PB: predicated region body
PF: predicated region fallthrough
CT: control target
= control target key end

     0   :  { %13 = vsyncpa [#allocation4], 0  ;;  %s5786_s0 = inlined_call_operand.vmem [shape: f32[2,16,16,4], index: 0, kind: input, shape index: {}]   ;;  %s5787_s1 = inlined_call_operand.vmem [shape: f32[3,3,4], index: 1, kind: input, shape index: {}]   ;;  %s5788_s2 = inlined_call_operand.vmem [shape: f32[1,4], index: 2, kind: input, shape index: {}]   ;;  %s5789_s3 = inlined_call_operand.vmem [shape: f32[4,4], index: 3, kind: input, shape index: {}]   ;;  %s5790_s4 = inlined_call_operand.vmem [shape: f32[1,4], index: 4, kind: input, shape index: {}]   ;;  %s5791_s5 = inlined_call_operand.vmem [shape: f32[2,256,4], index: 5, kind: output, shape index: {0}]   ;;  %s5792_s6 = inlined_call_operand.hbm [shape: f32[2,1,4], index: 6, kind: output, shape index: {1}]   ;;  %s5793_s7 = inlined_call_operand.hbm [shape: f32[2,1,4], index: 7, kind: output, shape index: {2}]  }
   0x1   :  { %15 = vsyncpa [#allocation4 + $0x1], 0 }
   0x2   :  { %16 = vsyncpa [#allocation6], 0 }
   0x3   :  { %18 = vsyncpa [#allocation6 + $0x1], 0  ;;  %s3641_s24 = smov 0   ;;  %s3643_s25 = smov 0  }
   0x4   :  { %s3645_s26 = smov 0   ;;  %s3647_s27 = smov 0  }
   0x5 LB: > { %s3662_s28 = sadd.s32 4294967295, %s3596_s27   ;;  %s3190_s29 = sadd.s32 4294967294, %s3596_s27   ;;  %s3596_s27 = sphi %s3647_s27, %s5842_s27   ;;  %s3592_s26 = sphi %s3645_s26, %s5841_s26   ;;  %s3588_s25 = sphi %s3643_s25, %s5840_s25   ;;  %s3584_s24 = sphi %s3641_s24, %s5839_s24  }
   0x6   : > { %s3666_s30 = sadd.s32 1, %s3596_s27   ;;  %s167_s8 = sadd.s32 1, %s3592_s26 }
   0x7   : > { %s164_s9 = ssub.s32 %s3596_s27, %s3666_s30  ;;  %p177_p0 = scmp.ne.s32.totalorder %s3592_s26, %s3588_s25 }
   0x8   : > { %p165_p1 = scmp.eq.s32.totalorder %s164_s9, 0  ;;  %p178_p2 = scmp.eq.s32.totalorder %s3662_s28, 1 }
   0x9   : > { %p183_p3 = scmp.ne.s32.totalorder %s3588_s25, %s3584_s24  ;;  %p184_p4 = scmp.eq.s32.totalorder %s3190_s29, 1 }
   0xa   : > { %s3677_s10 = scalar_select %p165_p1, %s3592_s26, %s167_s8  }
   0xb   : > { %p3679_p5 = por %p178_p2, %p177_p0  ;;  %p3683_p6 = por %p184_p4, %p183_p3 }
   0xc   : > { %p3193_p7 = scmp.ge.s32.totalorder %s3596_s27, 1  ;;  %p248_p8 = scmp.lt.s32.totalorder %s3596_s27, 3 }
   0xe   : > { %p249_p9 = pnand %p3193_p7, %p248_p8 }
  0x10   : > { %252 = sbr.rel (%p249_p9) target bundleno = 703 (0x2bf), region = 40 }
  0x17   : > { %v3692_v0 = vld [vmem:[%s5789_s3] sm:$0xf]  ;;  %vm2450_vm0 = vcmask 1043456   ;;  %p288_p10 = scmp.lt.s32.totalorder %s3662_s28, 1  ;;  %vm330_vm1 = vcmask 31744   ;;  %v484_v1 = vlaneseq  ;;  %v3598_v2 = vmov 0.0  }
  0x18   : > { %3272 = vmatprep.subr.msk.mxu0 %vm2450_vm0, %v3692_v0  ;;  %331 = vst.msk [vmem:[#allocation2] sm:$0xff] %vm330_vm1, %v3598_v2  ;;  %332 = vst.msk [vmem:[#allocation2 + $0x8] sm:$0xff] %vm330_vm1, %v3598_v2  ;;  %vm333_vm2 = vcmask 25600   ;;  %3322 = vmatprep.subr.msk.mxu1 %vm2450_vm0, %v3692_v0  ;;  %v473_v4 = vld [vmem:[%s5787_s1] sm:$0x7]  ;;  %vm652_vm3 = vcmask 1046528  }
  0x19   : > { %335 = vst.msk [vmem:[#allocation2 + $0x18] sm:$0xff] %vm330_vm1, %v3598_v2  ;;  %336 = vst.msk [vmem:[#allocation2 + $0x20] sm:$0xff] %vm330_vm1, %v3598_v2  ;;  %3273 = vmatpush3.msk.msra.mxu0 %vm2450_vm0, %v3692_v0  ;;  %s3740_s15 = scalar_select %p288_p10, %s3662_s28, 1  ;;  %v485_v3 = vshrl.u32 %v484_v1, 7  ;;  %3323 = vmatpush3.msk.msra.mxu1 %vm2450_vm0, %v3692_v0  ;;  %v474_v8 = vld [vmem:[%s5787_s1 + $0x4] sm:$0x7] }
  0x1a   : > { %338 = vst.msk [vmem:[#allocation2 + $0x30] sm:$0xff] %vm330_vm1, %v3598_v2  ;;  %339 = vst.msk [vmem:[#allocation2 + $0x38] sm:$0xff] %vm330_vm1, %v3598_v2  ;;  %v3781_v9 = vld [vmem:[%s5787_s1 + $0x8] sm:$0x7]  ;;  %v3795_v13 = vld [vmem:[%s5788_s2] ss:$0 sm:$0xff] }
  0x1b   : > { %341 = vst.msk [vmem:[#allocation2 + $0x48] sm:$0xff] %vm330_vm1, %v3598_v2  ;;  %342 = vst.msk [vmem:[#allocation2 + $0x50] sm:$0xff] %vm330_vm1, %v3598_v2  ;;  %s3237_s18 = sshll.u32 %s3740_s15, 8  ;;  %v486_v5 = vsub.s32 0, %v485_v3  ;;  %v554_v6 = vsub.s32 1, %v485_v3  ;;  %v3766_v7 = vsub.s32 2, %v485_v3 }
  0x1c   : > { %344 = vst.msk [vmem:[#allocation2 + $0x60] sm:$0xff] %vm330_vm1, %v3598_v2  ;;  %345 = vst.msk [vmem:[#allocation2 + $0x68] sm:$0xff] %vm330_vm1, %v3598_v2  ;;  %s3773_s21 = scalar_lea.vmem %s5786_s0, %s3237_s18  ;;  %vm897_vm4 = vcmask 1045504   ;;  %s5499_s29 = scalar_lea.vmem %s5791_s5, %s3237_s18  ;;  %vm2940_vm5 = vcmask 24576  }
  0x1d   : > { %347 = vst.msk [vmem:[#allocation2 + $0x78] sm:$0xff] %vm330_vm1, %v3598_v2  ;;  %348 = vst.msk [vmem:[#allocation2 + $0x80] sm:$0xff] %vm330_vm1, %v3598_v2  ;;  %v3784_v10 = vld [vmem:[%s3773_s21] sm:$0xff]  ;;  %v3787_v11 = vld [vmem:[%s3773_s21 + $0x8] sm:$0xff]  ;;  %v3797_v14 = vrot.slane %v473_v4, %v486_v5  ;;  %v3799_v15 = vrot.slane %v473_v4, %v554_v6  ;;  %v3802_v16 = vrot.slane %v473_v4, %v3766_v7  ;;  %s5700_s15 = sand.u32 1, %s3588_s25   ;;  %s3233_s18 = sshll.u32 %s3662_s28, 4 }
  0x1e   : > { %350 = vst.msk [vmem:[#allocation2 + $0x90] sm:$0xff] %vm330_vm1, %v3598_v2  ;;  %351 = vst.msk [vmem:[#allocation2 + $0x98] sm:$0xff] %vm330_vm1, %v3598_v2  ;;  %v3790_v12 = vld [vmem:[%s3773_s21 + $0x10] sm:$0xff]  ;;  %v3805_v17 = vld [vmem:[%s3773_s21 + $0x18] sm:$0xff]  ;;  %v3821_v22 = vrot.slane %v474_v8, %v486_v5  ;;  %v3823_v23 = vrot.slane %v474_v8, %v554_v6  ;;  %v3826_v24 = vrot.slane %v474_v8, %v3766_v7  ;;  %s281_s8 = scalar_lea.vmem [#allocation3], %s5700_s15  ;;  %s287_s13 = scalar_lea.vmem [#allocation5], %s5700_s15 }
  0x1f   : > { %353 = vst.msk [vmem:[#allocation2 + $0xa8] sm:$0xff] %vm330_vm1, %v3598_v2  ;;  %354 = vst.msk [vmem:[#allocation2 + $0xb0] sm:$0xff] %vm330_vm1, %v3598_v2  ;;  %v3814_v18 = vld [vmem:[%s3773_s21 + $0x20] sm:$0xff]  ;;  %v3817_v19 = vld [vmem:[%s3773_s21 + $0x28] sm:$0xff]  ;;  %v3829_v25 = vrot.slane %v3781_v9, %v486_v5  ;;  %v3869_v44 = vrot.slane %v3781_v9, %v554_v6  ;;  %v3901_v55 = vrot.slane %v3781_v9, %v3766_v7  ;;  %s3069_s9 = sshll.u32 %s281_s8, 4  ;;  %s3082_s14 = sshll.u32 %s287_s13, 4  ;;  %s5712_s9 = int_to_ptr.vmem [resolvable:$true] %s3069_s9  ;;  %s5720_s14 = int_to_ptr.vmem [resolvable:$true] %s3082_s14 }
  0x20   : > { %356 = vst.msk [vmem:[#allocation2 + $0xc0] sm:$0xff] %vm330_vm1, %v3598_v2  ;;  %357 = vst.msk [vmem:[#allocation2 + $0xc8] sm:$0xff] %vm330_vm1, %v3598_v2  ;;  %v419_v20 = vld [vmem:[#allocation2] sm:$0xff]  ;;  %v420_v21 = vld [vmem:[#allocation2 + $0x8] sm:$0xff]  ;;  %s5710_s19 = scalar_lea.hbm %s5792_s6, %s3233_s18  ;;  %s3050_s22 = scalar_lea.sflag [#allocation4], %s5700_s15 }
  0x21   : > { %359 = vst.msk [vmem:[#allocation2 + $0xd8] sm:$0xff] %vm330_vm1, %v3598_v2  ;;  %360 = vst.msk [vmem:[#allocation2 + $0xe0] sm:$0xff] %vm330_vm1, %v3598_v2  ;;  %v3836_v26 = vld [vmem:[%s3773_s21 + $0x30] sm:$0xff]  ;;  %v488_v27 = vmul.f32 %v3797_v14, %v419_v20  ;;  %v489_v28 = vmul.f32 %v3797_v14, %v420_v21  ;;  %v556_v29 = vmul.f32 %v3799_v15, %v419_v20  ;;  %v3843_v32 = vld [vmem:[%s3773_s21 + $0x38] sm:$0xff]  ;;  %s3502_s23 = scalar_lea.vmem %s5712_s9, 16 }
  0x22   : > { %362 = vst.msk [vmem:[#allocation2 + $0xf0] sm:$0xff] %vm330_vm1, %v3598_v2  ;;  %363 = vst.msk [vmem:[#allocation2 + $0xf8] sm:$0xff] %vm330_vm1, %v3598_v2  ;;  %v557_v30 = vmul.f32 %v3799_v15, %v420_v21  ;;  %v3848_v33 = vld [vmem:[%s3773_s21 + $0x40] sm:$0xff]  ;;  %v801_v34 = vmul.f32 %v3802_v16, %v419_v20  ;;  %v802_v35 = vmul.f32 %v3802_v16, %v420_v21  ;;  %v3857_v38 = vld [vmem:[%s3773_s21 + $0x48] sm:$0xff]  ;;  %p3503_p11 = scmp.ne.s32.totalorder %s5712_s9, %s3502_s23 }
  0x23   : > { %365 = vst.msk [vmem:[#allocation2 + $0x108] sm:$0xff] %vm330_vm1, %v3598_v2  ;;  %366 = vst.msk [vmem:[#allocation2 + $0x110] sm:$0xff] %vm330_vm1, %v3598_v2  ;;  %v3862_v39 = vld [vmem:[%s3773_s21 + $0x50] sm:$0xff]  ;;  %v3865_v40 = vld [vmem:[%s3773_s21 + $0x58] sm:$0xff]  ;;  %v520_v41 = vadd.f32 %v3795_v13, %v488_v27  ;;  %v653_v42 = vrot.slane %v556_v29, 1  ;;  %v521_v56 = vadd.f32 %v3795_v13, %v489_v28 }
  0x24   : > { %368 = vst.msk [vmem:[#allocation2 + $0x120] sm:$0xff] %vm330_vm1, %v3598_v2  ;;  %369 = vst.msk [vmem:[#allocation2 + $0x128] sm:$0xff] %vm330_vm1, %v3598_v2  ;;  %v654_v43 = vrot.slane %v557_v30, 1  ;;  %v3878_v45 = vld [vmem:[%s3773_s21 + $0x70] sm:$0xff]  ;;  %v3881_v46 = vld [vmem:[%s3773_s21 + $0x78] sm:$0xff]  ;;  %v898_v48 = vrot.slane %v801_v34, 2  ;;  %p3504_p12 = pnand %p3503_p11, %p3679_p5 }
  0x25   : > { %371 = vst.msk [vmem:[#allocation2 + $0x138] sm:$0xff] %vm330_vm1, %v3598_v2  ;;  %372 = vst.msk [vmem:[#allocation2 + $0x140] sm:$0xff] %vm330_vm1, %v3598_v2  ;;  %v3884_v47 = vld [vmem:[%s3773_s21 + $0x80] sm:$0xff]  ;;  %v899_v49 = vrot.slane %v802_v35, 2  ;;  %v3887_v52 = vld [vmem:[%s3773_s21 + $0x88] sm:$0xff] }
  0x26   : > { %374 = vst.msk [vmem:[#allocation2 + $0x150] sm:$0xff] %vm330_vm1, %v3598_v2  ;;  %375 = vst.msk [vmem:[#allocation2 + $0x158] sm:$0xff] %vm330_vm1, %v3598_v2  ;;  %v3890_v53 = vld [vmem:[%s3773_s21 + $0x90] sm:$0xff]  ;;  %v655_v54 = vsel %vm652_vm3, %v653_v42, %v654_v43  ;;  %v3905_v57 = vld [vmem:[%s3773_s21 + $0x98] sm:$0xff]  ;;  %p3505_p13 = pneg %p3504_p12 }
  0x27   : > { %377 = vst.msk [vmem:[#allocation2 + $0x168] sm:$0xff] %vm330_vm1, %v3598_v2  ;;  %378 = vst.msk [vmem:[#allocation2 + $0x170] sm:$0xff] %vm330_vm1, %v3598_v2  ;;  %v3912_v58 = vld [vmem:[%s3773_s21 + $0x60] sm:$0xff]  ;;  %v3915_v59 = vld [vmem:[%s3773_s21 + $0x68] sm:$0xff]  ;;  %v765_v62 = vadd.f32 %v655_v54, %v520_v41  ;;  %v900_v63 = vsel %vm897_vm4, %v898_v48, %v899_v49 }
  0x28   : > { %380 = vst.msk [vmem:[#allocation2 + $0x180] sm:$0xff] %vm330_vm1, %v3598_v2  ;;  %381 = vst.msk [vmem:[#allocation2 + $0x188] sm:$0xff] %vm330_vm1, %v3598_v2 }
  0x29   : > { %383 = vst.msk [vmem:[#allocation2 + $0x198] sm:$0xff] %vm330_vm1, %v3598_v2  ;;  %384 = vst.msk [vmem:[#allocation2 + $0x1a0] sm:$0xff] %vm330_vm1, %v3598_v2  ;;  %v1010_v8 = vadd.f32 %v900_v63, %v765_v62 }
  0x2a   : > { %337 = vst.msk [vmem:[#allocation2 + $0x28] sm:$0x3] %vm333_vm2, %v3598_v2  ;;  %340 = vst.msk [vmem:[#allocation2 + $0x40] sm:$0x3] %vm333_vm2, %v3598_v2 }
  0x2b   : > { %334 = vst.msk [vmem:[#allocation2 + $0x10] sm:$0x3] %vm333_vm2, %v3598_v2  ;;  %343 = vst.msk [vmem:[#allocation2 + $0x58] sm:$0x3] %vm333_vm2, %v3598_v2 }
  0x2c   : > { %346 = vst.msk [vmem:[#allocation2 + $0x70] sm:$0x3] %vm333_vm2, %v3598_v2  ;;  %349 = vst.msk [vmem:[#allocation2 + $0x88] sm:$0x3] %vm333_vm2, %v3598_v2 }
  0x2d   : > { %352 = vst.msk [vmem:[#allocation2 + $0xa0] sm:$0x3] %vm333_vm2, %v3598_v2  ;;  %355 = vst.msk [vmem:[#allocation2 + $0xb8] sm:$0x3] %vm333_vm2, %v3598_v2 }
  0x2e   : > { %358 = vst.msk [vmem:[#allocation2 + $0xd0] sm:$0x3] %vm333_vm2, %v3598_v2  ;;  %361 = vst.msk [vmem:[#allocation2 + $0xe8] sm:$0x3] %vm333_vm2, %v3598_v2 }
  0x2f   : > { %364 = vst.msk [vmem:[#allocation2 + $0x100] sm:$0x3] %vm333_vm2, %v3598_v2  ;;  %367 = vst.msk [vmem:[#allocation2 + $0x118] sm:$0x3] %vm333_vm2, %v3598_v2 }
  0x30   : > { %370 = vst.msk [vmem:[#allocation2 + $0x130] sm:$0x3] %vm333_vm2, %v3598_v2  ;;  %373 = vst.msk [vmem:[#allocation2 + $0x148] sm:$0x3] %vm333_vm2, %v3598_v2 }
  0x31   : > { %376 = vst.msk [vmem:[#allocation2 + $0x160] sm:$0x3] %vm333_vm2, %v3598_v2  ;;  %379 = vst.msk [vmem:[#allocation2 + $0x178] sm:$0x3] %vm333_vm2, %v3598_v2 }
  0x32   : > { %382 = vst.msk [vmem:[#allocation2 + $0x190] sm:$0x3] %vm333_vm2, %v3598_v2  ;;  %385 = vst.msk [vmem:[#allocation2 + $0x1a8] sm:$0x3] %vm333_vm2, %v3598_v2  ;;  %v421_v31 = vld [vmem:[#allocation2 + $0x10] sm:$0x3] }
  0x33   : > { %387 = vst.msk [vmem:[#allocation2 + $0x19] sm:$0xff] %vm330_vm1, %v3784_v10  ;;  %388 = vst.msk [vmem:[#allocation2 + $0x21] sm:$0xff] %vm330_vm1, %v3787_v11  ;;  %v558_v36 = vmul.f32 %v3799_v15, %v421_v31  ;;  %v803_v37 = vmul.f32 %v3802_v16, %v421_v31 }
  0x34   : > { %389 = vst.msk [vmem:[#allocation2 + $0x31] sm:$0xff] %vm330_vm1, %v3790_v12  ;;  %390 = vst.msk [vmem:[#allocation2 + $0x39] sm:$0xff] %vm330_vm1, %v3805_v17 }
  0x35   : > { %391 = vst.msk [vmem:[#allocation2 + $0x49] sm:$0xff] %vm330_vm1, %v3814_v18  ;;  %392 = vst.msk [vmem:[#allocation2 + $0x51] sm:$0xff] %vm330_vm1, %v3817_v19  ;;  %v656_v50 = vrot.slane %v558_v36, 1  ;;  %v901_v51 = vrot.slane %v803_v37, 2 }
  0x36   : > { %393 = vst.msk [vmem:[#allocation2 + $0x61] sm:$0xff] %vm330_vm1, %v3836_v26  ;;  %394 = vst.msk [vmem:[#allocation2 + $0x69] sm:$0xff] %vm330_vm1, %v3843_v32 }
  0x37   : > { %395 = vst.msk [vmem:[#allocation2 + $0x79] sm:$0xff] %vm330_vm1, %v3848_v33  ;;  %5812 = vst [vmem:[#allocation9_spill] sm:$0xff] %v3865_v40  ;;  %v657_v0 = vsel %vm652_vm3, %v654_v43, %v656_v50  ;;  %v902_v1 = vsel %vm897_vm4, %v899_v49, %v901_v51 }
  0x38   : > { %396 = vst.msk [vmem:[#allocation2 + $0x81] sm:$0xff] %vm330_vm1, %v3857_v38  ;;  %397 = vst.msk [vmem:[#allocation2 + $0x91] sm:$0xff] %vm330_vm1, %v3862_v39  ;;  %v766_v48 = vadd.f32 %v657_v0, %v521_v56 }
  0x39   : > { %398 = vst.msk [vmem:[#allocation2 + $0x99] sm:$0xff] %vm330_vm1, %v3865_v40  ;;  %5813 = vst [vmem:[#allocation10_spill] sm:$0xff] %v3878_v45 }
  0x3a   : > { %5814 = vst [vmem:[#allocation11_spill] sm:$0xff] %v3881_v46  ;;  %5815 = vst [vmem:[#allocation12_spill] sm:$0xff] %v3890_v53  ;;  %v3917_v60 = vld [vmem:[#allocation2 + $0x18] sm:$0xff]  ;;  %v3919_v61 = vld [vmem:[#allocation2 + $0x20] sm:$0xff] }
  0x3b   : > { %401 = vst.msk [vmem:[#allocation2 + $0xc1] sm:$0xff] %vm330_vm1, %v3878_v45  ;;  %402 = vst.msk [vmem:[#allocation2 + $0xc9] sm:$0xff] %vm330_vm1, %v3881_v46  ;;  %v3930_v2 = vld [vmem:[#allocation2 + $0x30] sm:$0xff]  ;;  %v1046_v3 = vmul.f32 %v3821_v22, %v3917_v60  ;;  %v1114_v4 = vmul.f32 %v3823_v23, %v3917_v60  ;;  %v1115_v5 = vmul.f32 %v3823_v23, %v3919_v61  ;;  %v3940_v7 = vld [vmem:[#allocation2 + $0x38] sm:$0xff] }
  0x3c   : > { %403 = vst.msk [vmem:[#allocation2 + $0xd9] sm:$0xff] %vm330_vm1, %v3884_v47  ;;  %5816 = vst [vmem:[#allocation13_spill] sm:$0xff] %v3905_v57  ;;  %v1358_v6 = vmul.f32 %v3826_v24, %v3917_v60  ;;  %v1359_v9 = vmul.f32 %v3826_v24, %v3919_v61  ;;  %v1602_v20 = vmul.f32 %v3829_v25, %v3930_v2  ;;  %v3952_v37 = vld [vmem:[#allocation2 + $0x28] sm:$0x3] }
  0x3d   : > { %404 = vst.msk [vmem:[#allocation2 + $0xe1] sm:$0xff] %vm330_vm1, %v3887_v52  ;;  %405 = vst.msk [vmem:[#allocation2 + $0xf1] sm:$0xff] %vm330_vm1, %v3890_v53  ;;  %v1670_v21 = vmul.f32 %v3869_v44, %v3930_v2  ;;  %v1210_v27 = vrot.slane %v1114_v4, 1  ;;  %v1211_v28 = vrot.slane %v1115_v5, 1  ;;  %v1671_v30 = vmul.f32 %v3869_v44, %v3940_v7 }
  0x3e   : > { %5817 = vst [vmem:[#allocation14_spill] sm:$0xff] %v3912_v58  ;;  %5818 = vst [vmem:[#allocation15_spill] sm:$0xff] %v3915_v59  ;;  %v1454_v29 = vrot.slane %v1358_v6, 2  ;;  %v1078_v31 = vadd.f32 %v1046_v3, %v1010_v8  ;;  %v1455_v34 = vrot.slane %v1359_v9, 2  ;;  %v1914_v36 = vmul.f32 %v3901_v55, %v3930_v2  ;;  %v3961_v3 = vld [vmem:[#allocation2 + $0x40] sm:$0x3] }
  0x3f   : > { %406 = vst.msk [vmem:[#allocation2 + $0xf9] sm:$0xff] %vm330_vm1, %v3905_v57  ;;  %399 = vst.msk [vmem:[#allocation2 + $0xa9] sm:$0xff] %vm330_vm1, %v3912_v58  ;;  %v1766_v35 = vrot.slane %v1670_v21, 1  ;;  %v1212_v41 = vsel %vm652_vm3, %v1210_v27, %v1211_v28  ;;  %v1767_v42 = vrot.slane %v1671_v30, 1  ;;  %v1915_v43 = vmul.f32 %v3901_v55, %v3940_v7 }
  0x40   : > { %400 = vst.msk [vmem:[#allocation2 + $0xb1] sm:$0xff] %vm330_vm1, %v3915_v59  ;;  %v1322_v49 = vadd.f32 %v1212_v41, %v1078_v31  ;;  %v1456_v50 = vsel %vm897_vm4, %v1454_v29, %v1455_v34  ;;  %v2010_v51 = vrot.slane %v1914_v36, 2  ;;  %v1047_v54 = vmul.f32 %v3821_v22, %v3919_v61  ;;  %v3977_v36 = vld [vmem:[%s3773_s21 + $0xa0] sm:$0xff]  ;;  %v3980_v41 = vld [vmem:[%s3773_s21 + $0xa8] sm:$0xff] }
  0x41   : > { %v1768_v62 = vsel %vm652_vm3, %v1766_v35, %v1767_v42  ;;  %v2011_v63 = vrot.slane %v1915_v43, 2  ;;  %v1011_v4 = vadd.f32 %v902_v1, %v766_v48  ;;  %v1116_v5 = vmul.f32 %v3823_v23, %v3952_v37  ;;  %5819 = vst [vmem:[#allocation16_spill] sm:$0xff] %v3977_v36  ;;  %5820 = vst [vmem:[#allocation17_spill] sm:$0xff] %v3980_v41 }
  0x42   : > { %v1566_v6 = vadd.f32 %v1456_v50, %v1322_v49  ;;  %v1360_v56 = vmul.f32 %v3826_v24, %v3952_v37  ;;  %v1603_v0 = vmul.f32 %v3829_v25, %v3940_v7  ;;  %v1672_v8 = vmul.f32 %v3869_v44, %v3961_v3  ;;  %407 = vst.msk [vmem:[#allocation2 + $0x109] sm:$0xff] %vm330_vm1, %v3977_v36 }
  0x43   : > { %v2012_v9 = vsel %vm897_vm4, %v2010_v51, %v2011_v63  ;;  %v1079_v21 = vadd.f32 %v1047_v54, %v1011_v4  ;;  %v1213_v27 = vrot.slane %v1116_v5, 1  ;;  %v1916_v1 = vmul.f32 %v3901_v55, %v3961_v3  ;;  %408 = vst.msk [vmem:[#allocation2 + $0x111] sm:$0xff] %vm330_vm1, %v3980_v41 }
  0x44   : > { %v1634_v29 = vadd.f32 %v1602_v20, %v1566_v6  ;;  %v1457_v30 = vrot.slane %v1360_v56, 2  ;;  %v1769_v31 = vrot.slane %v1672_v8, 1  ;;  %v490_v35 = vmul.f32 %v3797_v14, %v3917_v60 }
  0x45   : > { %v1214_v43 = vsel %vm652_vm3, %v1211_v28, %v1213_v27  ;;  %v2013_v48 = vrot.slane %v1916_v1, 2  ;;  %v559_v49 = vmul.f32 %v3799_v15, %v3917_v60  ;;  %v3987_v50 = vmul.f32 %v3799_v15, %v3919_v61 }
  0x46   : > { %v1878_v20 = vadd.f32 %v1768_v62, %v1634_v29  ;;  %v1323_v51 = vadd.f32 %v1214_v43, %v1079_v21  ;;  %v1458_v54 = vsel %vm897_vm4, %v1455_v34, %v1457_v30  ;;  %v1770_v28 = vsel %vm652_vm3, %v1767_v42, %v1769_v31 }
  0x47   : > { %v2014_v4 = vsel %vm897_vm4, %v2011_v63, %v2013_v48  ;;  %v522_v5 = vadd.f32 %v3795_v13, %v490_v35  ;;  %v658_v6 = vrot.slane %v559_v49, 1  ;;  %v5794_v56 = vrot.slane %v3987_v50, 1 }
  0x48   : > { %v2122_v8 = vadd.f32 %v2012_v9, %v1878_v20  ;;  %v1567_v27 = vadd.f32 %v1458_v54, %v1323_v51  ;;  %v804_v1 = vmul.f32 %v3802_v16, %v3917_v60  ;;  %v805_v62 = vmul.f32 %v3802_v16, %v3919_v61  ;;  %v4016_v20 = vld [vmem:[#allocation2 + $0x48] sm:$0xff] }
  0x49   : > { %v660_v34 = vsel %vm652_vm3, %v658_v6, %v5794_v56  ;;  %v1048_v42 = vmul.f32 %v3821_v22, %v3930_v2  ;;  %v1117_v63 = vmul.f32 %v3823_v23, %v3930_v2  ;;  %v4011_v9 = vmul.f32 %v3823_v23, %v3940_v7 }
  0x4a   : > { %v4013_v21 = vmul.f32 0.5, %v2122_v8  ;;  %v2186_v60 = vmul.f32 0.70710677, %v2122_v8  ;;  %v1635_v29 = vadd.f32 %v1603_v0, %v1567_v27  ;;  %v767_v30 = vadd.f32 %v660_v34, %v522_v5 }
  0x4b   : > { %v903_v31 = vrot.slane %v804_v1, 2  ;;  %v904_v35 = vrot.slane %v805_v62, 2  ;;  %v1215_v43 = vrot.slane %v1117_v63, 1  ;;  %v1216_v48 = vrot.slane %v4011_v9, 1 }
  0x4c   : > { %3369 = verf.f32 %v2186_v60  ;;  %v1879_v49 = vadd.f32 %v1770_v28, %v1635_v29  ;;  %v1361_v51 = vmul.f32 %v3826_v24, %v3930_v2  ;;  %v1362_v54 = vmul.f32 %v3826_v24, %v3940_v7  ;;  %v4028_v28 = vld [vmem:[#allocation2 + $0x50] sm:$0xff] }
  0x4d   : > { %v905_v6 = vsel %vm897_vm4, %v903_v31, %v904_v35  ;;  %v1217_v0 = vsel %vm652_vm3, %v1215_v43, %v1216_v48  ;;  %v1604_v5 = vmul.f32 %v3829_v25, %v4016_v20  ;;  %v1673_v8 = vmul.f32 %v3869_v44, %v4016_v20 }
  0x4e   : > { %v2123_v27 = vadd.f32 %v2014_v4, %v1879_v49  ;;  %v1012_v1 = vadd.f32 %v905_v6, %v767_v30  ;;  %v1459_v62 = vrot.slane %v1361_v51, 2  ;;  %v1460_v34 = vrot.slane %v1362_v54, 2 }
  0x4f   : > { %v1674_v63 = vmul.f32 %v3869_v44, %v4028_v28  ;;  %v1771_v9 = vrot.slane %v1673_v8, 1  ;;  %v1917_v60 = vmul.f32 %v3901_v55, %v4016_v20  ;;  %v1918_v29 = vmul.f32 %v3901_v55, %v4028_v28 }
  0x50   : > { %v4036_v31 = vmul.f32 0.5, %v2123_v27  ;;  %v2187_v43 = vmul.f32 0.70710677, %v2123_v27  ;;  %v1080_v56 = vadd.f32 %v1048_v42, %v1012_v1  ;;  %v1461_v4 = vsel %vm897_vm4, %v1459_v62, %v1460_v34 }
  0x51   : > { %v1772_v49 = vrot.slane %v1674_v63, 1  ;;  %v2015_v30 = vrot.slane %v1917_v60, 2  ;;  %v2016_v51 = vrot.slane %v1918_v29, 2  ;;  %v491_v54 = vmul.f32 %v3797_v14, %v3919_v61  ;;  %v4050_v63 = vld [vmem:[#allocation2 + $0x58] sm:$0x3] }
  0x52   : > { %3371 = verf.f32 %v2187_v43  ;;  %v1324_v6 = vadd.f32 %v1217_v0, %v1080_v56  ;;  %v561_v8 = vmul.f32 %v3799_v15, %v3952_v37  ;;  %v806_v46 = vmul.f32 %v3802_v16, %v3952_v37 }
  0x53   : > { %v1773_v45 = vsel %vm652_vm3, %v1771_v9, %v1772_v49  ;;  %v2017_v42 = vsel %vm897_vm4, %v2015_v30, %v2016_v51  ;;  %v523_v27 = vadd.f32 %v3795_v13, %v491_v54  ;;  %v1049_v1 = vmul.f32 %v3821_v22, %v3940_v7 }
  0x54   : > { %v1568_v62 = vadd.f32 %v1461_v4, %v1324_v6  ;;  %v661_v61 = vrot.slane %v561_v8, 1  ;;  %v906_v56 = vrot.slane %v806_v46, 2  ;;  %v1119_v0 = vmul.f32 %v3823_v23, %v3961_v3 }
  0x55   : > { %v1363_v37 = vmul.f32 %v3826_v24, %v3961_v3  ;;  %v1605_v9 = vmul.f32 %v3829_v25, %v4028_v28  ;;  %v1675_v60 = vmul.f32 %v3869_v44, %v4050_v63  ;;  %v1919_v29 = vmul.f32 %v3901_v55, %v4050_v63 }
  0x56   : > { %v3370_v43 = vpop.eup %3369  ;;  %v1636_v4 = vadd.f32 %v1604_v5, %v1568_v62  ;;  %v5821_v30 = vrot.slane %v3987_v50, 1  ;;  %v907_v54 = vsel %vm897_vm4, %v904_v35, %v906_v56  ;;  %v1218_v6 = vrot.slane %v1119_v0, 1 }
  0x57   : > { %v2250_v8 = vadd.f32 1.0, %v3370_v43  ;;  %v1462_v36 = vrot.slane %v1363_v37, 2  ;;  %v1774_v59 = vrot.slane %v1675_v60, 1  ;;  %v2018_v53 = vrot.slane %v1919_v29, 2 }
  0x58   : > { %v662_v46 = vsel %vm652_vm3, %v5821_v30, %v661_v61  ;;  %v1880_v58 = vadd.f32 %v1773_v45, %v1636_v4  ;;  %v1219_v57 = vsel %vm652_vm3, %v1216_v48, %v1218_v6  ;;  %v492_v40 = vmul.f32 %v3797_v14, %v3930_v2 }
  0x59   : > { %v768_v41 = vadd.f32 %v662_v46, %v523_v27  ;;  %v2282_v5 = vmul.f32 %v2250_v8, %v4013_v21  ;;  %v1463_v50 = vsel %vm897_vm4, %v1460_v34, %v1462_v36  ;;  %v1775_v61 = vsel %vm652_vm3, %v1772_v49, %v1774_v59 }
  0x5a   : > { %v2124_v35 = vadd.f32 %v2017_v42, %v1880_v58  ;;  %v2019_v56 = vsel %vm897_vm4, %v2016_v51, %v2018_v53  ;;  %v524_v27 = vadd.f32 %v3795_v13, %v492_v40  ;;  %v562_v45 = vmul.f32 %v3799_v15, %v3930_v2 }
  0x5b   : > { %v1013_v62 = vadd.f32 %v907_v54, %v768_v41  ;;  %v2314_v48 = vadd.f32 %v2282_v5, %v3784_v10  ;;  %v4079_v37 = vmul.f32 %v3799_v15, %v3940_v7  ;;  %v807_v36 = vmul.f32 %v3802_v16, %v3930_v2 }
  0x5c   : > { %v3372_v41 = vpop.eup %3371  ;;  %v4083_v59 = vmul.f32 0.5, %v2124_v35  ;;  %v2188_v58 = vmul.f32 0.70710677, %v2124_v35  ;;  %v663_v53 = vrot.slane %v562_v45, 1  ;;  %v4087_v40 = vmul.f32 %v3802_v16, %v3940_v7 }
  0x5d   : > { %v1081_v0 = vadd.f32 %v1049_v1, %v1013_v62  ;;  %3274 = vmatprep.mubr.msk.f32.mxu0 %vm330_vm1, %v2314_v48  ;;  %v2251_v10 = vadd.f32 1.0, %v3372_v41  ;;  %v664_v34 = vrot.slane %v4079_v37, 1  ;;  %v908_v49 = vrot.slane %v807_v36, 2  ;;  %v4113_v62 = vld [vmem:[#allocation2 + $0x68] sm:$0xff] }
  0x5e   : > { %3373 = verf.f32 %v2188_v58  ;;  %v909_v51 = vrot.slane %v4087_v40, 2  ;;  %v1050_v2 = vmul.f32 %v3821_v22, %v4016_v20  ;;  %v1120_v42 = vmul.f32 %v3823_v23, %v4016_v20 }
  0x5f   : > { %v1325_v21 = vadd.f32 %v1219_v57, %v1081_v0  ;;  %v2283_v1 = vmul.f32 %v2251_v10, %v4036_v31  ;;  %v665_v29 = vsel %vm652_vm3, %v663_v53, %v664_v34  ;;  %v4100_v57 = vmul.f32 %v3823_v23, %v4028_v28  ;;  %v4108_v31 = vld [vmem:[#allocation2 + $0x60] sm:$0xff] }
  0x60   : > { %v769_v43 = vadd.f32 %v665_v29, %v524_v27  ;;  %v910_v4 = vsel %vm897_vm4, %v908_v49, %v909_v51  ;;  %v1220_v30 = vrot.slane %v1120_v42, 1  ;;  %v1364_v46 = vmul.f32 %v3826_v24, %v4016_v20  ;;  %v4131_v49 = vld [vmem:[%s3773_s21 + $0xb0] sm:$0xff]  ;;  %v4134_v42 = vld [vmem:[%s3773_s21 + $0xb8] sm:$0xff] }
  0x61   : > { %v1569_v60 = vadd.f32 %v1463_v50, %v1325_v21  ;;  %v2315_v54 = vadd.f32 %v2283_v1, %v3787_v11  ;;  %v1221_v8 = vrot.slane %v4100_v57, 1  ;;  %v1365_v5 = vmul.f32 %v3826_v24, %v4028_v28  ;;  %409 = vst.msk [vmem:[#allocation2 + $0x121] sm:$0xff] %vm330_vm1, %v4131_v49  ;;  %410 = vst.msk [vmem:[#allocation2 + $0x129] sm:$0xff] %vm330_vm1, %v4134_v42 }
  0x62   : > { %v1014_v50 = vadd.f32 %v910_v4, %v769_v43  ;;  %v1464_v35 = vrot.slane %v1364_v46, 2  ;;  %v1606_v27 = vmul.f32 %v3829_v25, %v4108_v31  ;;  %v1676_v11 = vmul.f32 %v3869_v44, %v4108_v31 }
  0x63   : > { %v1637_v6 = vadd.f32 %v1605_v9, %v1569_v60  ;;  %3275 = vmatmul.mubr.msk.f32.vlgmr.msra.gmra.mrb[0].mxu0 %vm330_vm1, %v2315_v54  ;;  %v1222_v45 = vsel %vm652_vm3, %v1220_v30, %v1221_v8  ;;  %v1465_v48 = vrot.slane %v1365_v5, 2  ;;  %v1677_v0 = vmul.f32 %v3869_v44, %v4113_v62 }
  0x64   : > { %v1082_v37 = vadd.f32 %v1050_v2, %v1014_v50  ;;  %v1776_v36 = vrot.slane %v1676_v11, 1  ;;  %v1920_v41 = vmul.f32 %v3901_v55, %v4108_v31  ;;  %v1921_v58 = vmul.f32 %v3901_v55, %v4113_v62 }
  0x65   : > { %v1881_v9 = vadd.f32 %v1775_v61, %v1637_v6  ;;  %v1466_v10 = vsel %vm897_vm4, %v1464_v35, %v1465_v48  ;;  %v1777_v21 = vrot.slane %v1677_v0, 1  ;;  %v493_v61 = vmul.f32 %v3797_v14, %v3940_v7 }
  0x66   : > { %v1326_v1 = vadd.f32 %v1222_v45, %v1082_v37  ;;  %v2020_v2 = vrot.slane %v1920_v41, 2  ;;  %v2021_v60 = vrot.slane %v1921_v58, 2  ;;  %v564_v29 = vmul.f32 %v3799_v15, %v3961_v3 }
  0x67   : > { %v2125_v53 = vadd.f32 %v2019_v56, %v1881_v9  ;;  %v1778_v7 = vsel %vm652_vm3, %v1776_v36, %v1777_v21  ;;  %v525_v43 = vadd.f32 %v3795_v13, %v493_v61  ;;  %v809_v6 = vmul.f32 %v3802_v16, %v3961_v3  ;;  %v4157_v36 = vld [vmem:[#allocation2 + $0x70] sm:$0x3] }
  0x68   : > { %v3374_v4 = vpop.eup %3373  ;;  %v1570_v30 = vadd.f32 %v1466_v10, %v1326_v1  ;;  %v2022_v46 = vsel %vm897_vm4, %v2020_v2, %v2021_v60  ;;  %v666_v54 = vrot.slane %v564_v29, 1  ;;  %v1051_v50 = vmul.f32 %v3821_v22, %v4028_v28 }
  0x69   : > { %v4142_v56 = vmul.f32 0.5, %v2125_v53  ;;  %v2189_v57 = vmul.f32 0.70710677, %v2125_v53  ;;  %v2252_v5 = vadd.f32 1.0, %v3374_v4  ;;  %v1122_v35 = vmul.f32 %v3823_v23, %v4050_v63 }
  0x6a   : > { %v1638_v11 = vadd.f32 %v1606_v27, %v1570_v30  ;;  %v667_v9 = vsel %vm652_vm3, %v664_v34, %v666_v54  ;;  %v911_v45 = vrot.slane %v809_v6, 2  ;;  %v1366_v0 = vmul.f32 %v3826_v24, %v4050_v63 }
  0x6b   : > { %3375 = verf.f32 %v2189_v57  ;;  %v2284_v37 = vmul.f32 %v2252_v5, %v4083_v59  ;;  %v770_v3 = vadd.f32 %v667_v9, %v525_v43  ;;  %v1223_v41 = vrot.slane %v1122_v35, 1 }
  0x6c   : > { %v1607_v58 = vmul.f32 %v3829_v25, %v4113_v62  ;;  %v1882_v53 = vadd.f32 %v1778_v7, %v1638_v11  ;;  %v912_v27 = vsel %vm897_vm4, %v909_v51, %v911_v45  ;;  %v1467_v10 = vrot.slane %v1366_v0, 2 }
  0x6d   : > { %v1678_v34 = vmul.f32 %v3869_v44, %v4157_v36  ;;  %v2316_v61 = vadd.f32 %v2284_v37, %v3790_v12  ;;  %v1015_v1 = vadd.f32 %v912_v27, %v770_v3  ;;  %v1224_v59 = vsel %vm652_vm3, %v1221_v8, %v1223_v41 }
  0x6e   : > { %v1922_v2 = vmul.f32 %v3901_v55, %v4157_v36  ;;  %v2126_v29 = vadd.f32 %v2022_v46, %v1882_v53  ;;  %v1468_v57 = vsel %vm897_vm4, %v1465_v48, %v1467_v10  ;;  %v494_v40 = vmul.f32 %v3797_v14, %v4016_v20  ;;  %v4204_v10 = vld [vmem:[#allocation2 + $0x78] sm:$0xff] }
  0x6f   : > { %v1779_v7 = vrot.slane %v1678_v34, 1  ;;  %3277 = vmatprep.mubr.msk.f32.mxu0 %vm330_vm1, %v2316_v61  ;;  %v1083_v51 = vadd.f32 %v1051_v50, %v1015_v1  ;;  %v565_v12 = vmul.f32 %v3799_v15, %v4016_v20  ;;  %v4178_v8 = vmul.f32 %v3799_v15, %v4028_v28 }
  0x70   : > { %v2023_v43 = vrot.slane %v1922_v2, 2  ;;  %v4180_v4 = vmul.f32 0.5, %v2126_v29  ;;  %v2190_v30 = vmul.f32 0.70710677, %v2126_v29  ;;  %v526_v46 = vadd.f32 %v3795_v13, %v494_v40 }
  0x71   : > { %v1780_v48 = vsel %vm652_vm3, %v1777_v21, %v1779_v7  ;;  %v1327_v54 = vadd.f32 %v1224_v59, %v1083_v51  ;;  %v668_v5 = vrot.slane %v565_v12, 1  ;;  %v669_v50 = vrot.slane %v4178_v8, 1 }
  0x72   : > { %v2024_v6 = vsel %vm897_vm4, %v2021_v60, %v2023_v43  ;;  %3377 = verf.f32 %v2190_v30  ;;  %v810_v35 = vmul.f32 %v3802_v16, %v4016_v20  ;;  %v4190_v11 = vmul.f32 %v3802_v16, %v4028_v28 }
  0x73   : > { %v1052_v9 = vmul.f32 %v3821_v22, %v4108_v31  ;;  %v1571_v45 = vadd.f32 %v1468_v57, %v1327_v54  ;;  %v670_v60 = vsel %vm652_vm3, %v668_v5, %v669_v50  ;;  %v1123_v0 = vmul.f32 %v3823_v23, %v4108_v31 }
  0x74   : > { %v4201_v37 = vmul.f32 %v3823_v23, %v4113_v62  ;;  %v771_v3 = vadd.f32 %v670_v60, %v526_v46  ;;  %v913_v41 = vrot.slane %v810_v35, 2  ;;  %v914_v53 = vrot.slane %v4190_v11, 2 }
  0x75   : > { %v3376_v21 = vpop.eup %3375  ;;  %v1639_v27 = vadd.f32 %v1607_v58, %v1571_v45  ;;  %v1225_v34 = vrot.slane %v1123_v0, 1  ;;  %v1367_v1 = vmul.f32 %v3826_v24, %v4108_v31  ;;  %v1368_v29 = vmul.f32 %v3826_v24, %v4113_v62  ;;  %v4215_v58 = vld [vmem:[#allocation2 + $0x80] sm:$0xff] }
  0x76   : > { %v2253_v20 = vadd.f32 1.0, %v3376_v21  ;;  %v1226_v61 = vrot.slane %v4201_v37, 1  ;;  %v915_v2 = vsel %vm897_vm4, %v913_v41, %v914_v53  ;;  %v1608_v57 = vmul.f32 %v3829_v25, %v4204_v10 }
  0x77   : > { %v1883_v7 = vadd.f32 %v1780_v48, %v1639_v27  ;;  %v1016_v40 = vadd.f32 %v915_v2, %v771_v3  ;;  %v1469_v43 = vrot.slane %v1367_v1, 2  ;;  %v1470_v30 = vrot.slane %v1368_v29, 2 }
  0x78   : > { %v2285_v59 = vmul.f32 %v2253_v20, %v4142_v56  ;;  %v1227_v51 = vsel %vm652_vm3, %v1225_v34, %v1226_v61  ;;  %v1679_v56 = vmul.f32 %v3869_v44, %v4204_v10  ;;  %v1680_v46 = vmul.f32 %v3869_v44, %v4215_v58 }
  0x79   : > { %v2127_v54 = vadd.f32 %v2024_v6, %v1883_v7  ;;  %v1084_v5 = vadd.f32 %v1052_v9, %v1016_v40  ;;  %v1923_v48 = vmul.f32 %v3901_v55, %v4204_v10  ;;  %v1924_v35 = vmul.f32 %v3901_v55, %v4215_v58 }
  0x7a   : > { %v2317_v12 = vadd.f32 %v2285_v59, %v3805_v17  ;;  %v1471_v11 = vsel %vm897_vm4, %v1469_v43, %v1470_v30  ;;  %v1781_v17 = vrot.slane %v1679_v56, 1  ;;  %v1782_v21 = vrot.slane %v1680_v46, 1  ;;  %v4245_v43 = vld [vmem:[#allocation2 + $0x88] sm:$0x3] }
  0x7b   : > { %v495_v45 = vmul.f32 %v3797_v14, %v4028_v28  ;;  %v4231_v60 = vmul.f32 0.5, %v2127_v54  ;;  %v2191_v0 = vmul.f32 0.70710677, %v2127_v54  ;;  %v1328_v6 = vadd.f32 %v1227_v51, %v1084_v5 }
  0x7c   : > { %3278 = vmatmul.mubr.msk.f32.gmra.mrb[2].mxu0 %vm330_vm1, %v2317_v12  ;;  %v2025_v9 = vrot.slane %v1923_v48, 2  ;;  %v3378_v37 = vpop.eup %3377  ;;  %v1783_v20 = vsel %vm652_vm3, %v1781_v17, %v1782_v21  ;;  %v2026_v3 = vrot.slane %v1924_v35, 2  ;;  %v567_v27 = vmul.f32 %v3799_v15, %v4050_v63 }
  0x7d   : > { %v527_v41 = vadd.f32 %v3795_v13, %v495_v45  ;;  %v2254_v34 = vadd.f32 1.0, %v3378_v37  ;;  %3379 = verf.f32 %v2191_v0  ;;  %v1572_v1 = vadd.f32 %v1471_v11, %v1328_v6 }
  0x7e   : > { %v812_v28 = vmul.f32 %v3802_v16, %v4050_v63  ;;  %v2027_v59 = vsel %vm897_vm4, %v2025_v9, %v2026_v3  ;;  %v671_v2 = vrot.slane %v567_v27, 1  ;;  %v1053_v29 = vmul.f32 %v3821_v22, %v4113_v62 }
  0x7f   : > { %v1125_v7 = vmul.f32 %v3823_v23, %v4157_v36  ;;  %v2286_v40 = vmul.f32 %v2254_v34, %v4180_v4  ;;  %v1640_v51 = vadd.f32 %v1608_v57, %v1572_v1  ;;  %v1369_v56 = vmul.f32 %v3826_v24, %v4157_v36 }
  0x80   : > { %v916_v12 = vrot.slane %v812_v28, 2  ;;  %v672_v63 = vsel %vm652_vm3, %v669_v50, %v671_v2  ;;  %v1609_v54 = vmul.f32 %v3829_v25, %v4215_v58  ;;  %v1681_v5 = vmul.f32 %v3869_v44, %v4245_v43 }
  0x81   : > { %v1228_v46 = vrot.slane %v1125_v7, 1  ;;  %v2318_v4 = vadd.f32 %v2286_v40, %v3814_v18  ;;  %v1884_v57 = vadd.f32 %v1783_v20, %v1640_v51  ;;  %v772_v48 = vadd.f32 %v672_v63, %v527_v41 }
  0x82   : > { %v917_v35 = vsel %vm897_vm4, %v914_v53, %v916_v12  ;;  %v1472_v17 = vrot.slane %v1369_v56, 2  ;;  %v1784_v45 = vrot.slane %v1681_v5, 1  ;;  %v1925_v8 = vmul.f32 %v3901_v55, %v4245_v43 }
  0x83   : > { %v1229_v11 = vsel %vm652_vm3, %v1226_v61, %v1228_v46  ;;  %3280 = vmatprep.mubr.msk.f32.mxu0 %vm330_vm1, %v2318_v4  ;;  %v2128_v50 = vadd.f32 %v2027_v59, %v1884_v57  ;;  %v1017_v0 = vadd.f32 %v917_v35, %v772_v48  ;;  %v496_v6 = vmul.f32 %v3797_v14, %v4108_v31  ;;  %v4296_v4 = vld [vmem:[#allocation2 + $0x90] sm:$0xff] }
  0x84   : > { %v568_v18 = vmul.f32 %v3799_v15, %v4108_v31  ;;  %v1473_v9 = vsel %vm897_vm4, %v1470_v30, %v1472_v17  ;;  %v1785_v53 = vsel %vm652_vm3, %v1782_v21, %v1784_v45  ;;  %v2028_v61 = vrot.slane %v1925_v8, 2 }
  0x85   : > { %v4270_v37 = vmul.f32 %v3799_v15, %v4113_v62  ;;  %v4272_v20 = vmul.f32 0.5, %v2128_v50  ;;  %v2192_v41 = vmul.f32 0.70710677, %v2128_v50  ;;  %v1085_v27 = vadd.f32 %v1053_v29, %v1017_v0  ;;  %v4311_v50 = vld [vmem:[#allocation2 + $0x98] sm:$0xff] }
  0x86   : > { %v528_v34 = vadd.f32 %v3795_v13, %v496_v6  ;;  %v2029_v1 = vsel %vm897_vm4, %v2026_v3, %v2028_v61  ;;  %v673_v28 = vrot.slane %v568_v18, 1  ;;  %v813_v30 = vmul.f32 %v3802_v16, %v4108_v31 }
  0x87   : > { %v674_v59 = vrot.slane %v4270_v37, 1  ;;  %v3380_v21 = vpop.eup %3379  ;;  %3381 = verf.f32 %v2192_v41  ;;  %v1329_v2 = vadd.f32 %v1229_v11, %v1085_v27  ;;  %v4281_v7 = vmul.f32 %v3802_v16, %v4113_v62 }
  0x88   : > { %v1054_v29 = vmul.f32 %v3821_v22, %v4204_v10  ;;  %v2255_v40 = vadd.f32 1.0, %v3380_v21  ;;  %v918_v51 = vrot.slane %v813_v30, 2  ;;  %v1126_v12 = vmul.f32 %v3823_v23, %v4204_v10 }
  0x89   : > { %v675_v3 = vsel %vm652_vm3, %v673_v28, %v674_v59  ;;  %v1573_v31 = vadd.f32 %v1473_v9, %v1329_v2  ;;  %v919_v63 = vrot.slane %v4281_v7, 2  ;;  %v4293_v46 = vmul.f32 %v3823_v23, %v4215_v58 }
  0x8a   : > { %v773_v56 = vadd.f32 %v675_v3, %v528_v34  ;;  %v2287_v5 = vmul.f32 %v2255_v40, %v4231_v60  ;;  %v1230_v57 = vrot.slane %v1126_v12, 1  ;;  %v1370_v48 = vmul.f32 %v3826_v24, %v4204_v10  ;;  %v4331_v40 = vld [vmem:[%s3773_s21 + $0xc0] sm:$0xff]  ;;  %v4334_v3 = vld [vmem:[%s3773_s21 + $0xc8] sm:$0xff] }
  0x8b   : > { %v4302_v35 = vmul.f32 %v3826_v24, %v4215_v58  ;;  %v1641_v11 = vadd.f32 %v1609_v54, %v1573_v31  ;;  %v920_v17 = vsel %vm897_vm4, %v918_v51, %v919_v63  ;;  %v1231_v45 = vrot.slane %v4293_v46, 1  ;;  %411 = vst.msk [vmem:[#allocation2 + $0x139] sm:$0xff] %vm330_vm1, %v4331_v40  ;;  %412 = vst.msk [vmem:[#allocation2 + $0x141] sm:$0xff] %vm330_vm1, %v4334_v3 }
  0x8c   : > { %v1610_v60 = vmul.f32 %v3829_v25, %v4296_v4  ;;  %v2319_v8 = vadd.f32 %v2287_v5, %v3817_v19  ;;  %v1018_v0 = vadd.f32 %v920_v17, %v773_v56  ;;  %v1474_v6 = vrot.slane %v1370_v48, 2 }
  0x8d   : > { %v1475_v18 = vrot.slane %v4302_v35, 2  ;;  %v1885_v54 = vadd.f32 %v1785_v53, %v1641_v11  ;;  %v1232_v9 = vsel %vm652_vm3, %v1230_v57, %v1231_v45  ;;  %v1682_v61 = vmul.f32 %v3869_v44, %v4296_v4 }
  0x8e   : > { %v4319_v41 = vmul.f32 %v3869_v44, %v4311_v50  ;;  %3281 = vmatmul.mubr.msk.f32.gmra.mrb[4].mxu0 %vm330_vm1, %v2319_v8  ;;  %v1086_v19 = vadd.f32 %v1054_v29, %v1018_v0  ;;  %v1926_v34 = vmul.f32 %v3901_v55, %v4296_v4  ;;  %v1927_v53 = vmul.f32 %v3901_v55, %v4311_v50 }
  0x8f   : > { %v1476_v27 = vsel %vm897_vm4, %v1474_v6, %v1475_v18  ;;  %v2129_v28 = vadd.f32 %v2029_v1, %v1885_v54  ;;  %v1786_v30 = vrot.slane %v1682_v61, 1  ;;  %v497_v2 = vmul.f32 %v3797_v14, %v4113_v62 }
  0x90   : > { %v1787_v21 = vrot.slane %v4319_v41, 1  ;;  %v1330_v29 = vadd.f32 %v1232_v9, %v1086_v19  ;;  %v2030_v51 = vrot.slane %v1926_v34, 2  ;;  %v2031_v12 = vrot.slane %v1927_v53, 2  ;;  %v4359_v41 = vld [vmem:[#allocation2 + $0xc0] sm:$0xff] }
  0x91   : > { %v570_v31 = vmul.f32 %v3799_v15, %v4157_v36  ;;  %v3382_v1 = vpop.eup %3381  ;;  %v4342_v56 = vmul.f32 0.5, %v2129_v28  ;;  %v2193_v62 = vmul.f32 0.70710677, %v2129_v28  ;;  %v529_v5 = vadd.f32 %v3795_v13, %v497_v2  ;;  %v4361_v19 = vld [vmem:[#allocation2 + $0xa0] sm:$0x3] }
  0x92   : > { %v1788_v46 = vsel %vm652_vm3, %v1786_v30, %v1787_v21  ;;  %v2256_v57 = vadd.f32 1.0, %v3382_v1  ;;  %v1574_v48 = vadd.f32 %v1476_v27, %v1330_v29  ;;  %v2032_v35 = vsel %vm897_vm4, %v2030_v51, %v2031_v12 }
  0x93   : > { %v676_v11 = vrot.slane %v570_v31, 1  ;;  %3383 = verf.f32 %v2193_v62  ;;  %v815_v17 = vmul.f32 %v3802_v16, %v4157_v36  ;;  %v1055_v8 = vmul.f32 %v3821_v22, %v4215_v58 }
  0x94   : > { %v1128_v0 = vmul.f32 %v3823_v23, %v4245_v43  ;;  %v2288_v6 = vmul.f32 %v2256_v57, %v4272_v20  ;;  %v1642_v54 = vadd.f32 %v1610_v60, %v1574_v48  ;;  %v1372_v61 = vmul.f32 %v3826_v24, %v4245_v43 }
  0x95   : > { %v677_v9 = vsel %vm652_vm3, %v674_v59, %v676_v11  ;;  %v921_v27 = vrot.slane %v815_v17, 2  ;;  %v1611_v53 = vmul.f32 %v3829_v25, %v4311_v50  ;;  %v1684_v37 = vmul.f32 %v3869_v44, %v4361_v19  ;;  %v4368_v59 = vld [vmem:[#allocation2 + $0xc8] sm:$0xff] }
  0x96   : > { %v774_v36 = vadd.f32 %v677_v9, %v529_v5  ;;  %v1233_v34 = vrot.slane %v1128_v0, 1  ;;  %v2320_v20 = vadd.f32 %v2288_v6, %v3836_v26  ;;  %v1886_v60 = vadd.f32 %v1788_v46, %v1642_v54  ;;  %v4396_v54 = vld [vmem:[#allocation2 + $0xe0] sm:$0xff] }
  0x97   : > { %v1477_v28 = vrot.slane %v1372_v61, 2  ;;  %v922_v30 = vsel %vm897_vm4, %v919_v63, %v921_v27  ;;  %v1928_v29 = vmul.f32 %v3901_v55, %v4361_v19  ;;  %v504_v51 = vmul.f32 %v3797_v14, %v4359_v41 }
  0x98   : > { %v1234_v2 = vsel %vm652_vm3, %v1231_v45, %v1233_v34  ;;  %3283 = vmatprep.mubr.msk.f32.mxu0 %vm330_vm1, %v2320_v20  ;;  %v2130_v26 = vadd.f32 %v2032_v35, %v1886_v60  ;;  %v1019_v31 = vadd.f32 %v922_v30, %v774_v36  ;;  %v1789_v62 = vrot.slane %v1684_v37, 1  ;;  %v4414_v37 = vld [vmem:[#allocation2 + $0xf0] sm:$0xff] }
  0x99   : > { %v1478_v1 = vsel %vm897_vm4, %v1475_v18, %v1477_v28  ;;  %v2033_v46 = vrot.slane %v1928_v29, 2  ;;  %v536_v7 = vadd.f32 %v3795_v13, %v504_v51  ;;  %v580_v63 = vmul.f32 %v3799_v15, %v4359_v41  ;;  %v4391_v18 = vld [vmem:[#allocation2 + $0xd8] sm:$0xff] }
  0x9a   : > { %v4385_v45 = vmul.f32 %v3799_v15, %v4368_v59  ;;  %v4387_v5 = vmul.f32 0.5, %v2130_v26  ;;  %v2194_v57 = vmul.f32 0.70710677, %v2130_v26  ;;  %v1087_v48 = vadd.f32 %v1055_v8, %v1019_v31 }
  0x9b   : > { %v1790_v35 = vsel %vm652_vm3, %v1787_v21, %v1789_v62  ;;  %v2034_v11 = vsel %vm897_vm4, %v2031_v12, %v2033_v46  ;;  %v693_v17 = vrot.slane %v580_v63, 1  ;;  %v825_v0 = vmul.f32 %v3802_v16, %v4359_v41  ;;  %v4429_v46 = vld [vmem:[#allocation2 + $0xf8] sm:$0xff] }
  0x9c   : > { %v694_v13 = vrot.slane %v4385_v45, 1  ;;  %3385 = verf.f32 %v2194_v57  ;;  %v1331_v6 = vadd.f32 %v1234_v2, %v1087_v48  ;;  %v4400_v9 = vmul.f32 %v3802_v16, %v4368_v59 }
  0x9d   : > { %v1062_v21 = vmul.f32 %v3821_v22, %v4391_v18  ;;  %v3384_v12 = vpop.eup %3383  ;;  %v938_v61 = vrot.slane %v825_v0, 2  ;;  %v1138_v36 = vmul.f32 %v3823_v23, %v4391_v18  ;;  %v4411_v27 = vmul.f32 %v3823_v23, %v4396_v54 }
  0x9e   : > { %v695_v8 = vsel %vm652_vm3, %v693_v17, %v694_v13  ;;  %v2257_v34 = vadd.f32 1.0, %v3384_v12  ;;  %v1575_v20 = vadd.f32 %v1478_v1, %v1331_v6  ;;  %v5805_v28 = vrot.slane %v4400_v9, 2  ;;  %v4442_v6 = vld [vmem:[#allocation2 + $0xd0] sm:$0x3] }
  0x9f   : > { %v781_v60 = vadd.f32 %v695_v8, %v536_v7  ;;  %v1250_v30 = vrot.slane %v1138_v36, 1  ;;  %v5804_v2 = vrot.slane %v4411_v27, 1  ;;  %v1382_v29 = vmul.f32 %v3826_v24, %v4391_v18 }
  0xa0   : > { %v4421_v51 = vmul.f32 %v3826_v24, %v4396_v54  ;;  %v2289_v26 = vmul.f32 %v2257_v34, %v4342_v56  ;;  %v1643_v31 = vadd.f32 %v1611_v53, %v1575_v20  ;;  %v940_v1 = vsel %vm897_vm4, %v938_v61, %v5805_v28 }
  0xa1   : > { %v1618_v62 = vmul.f32 %v3829_v25, %v4414_v37  ;;  %v1026_v7 = vadd.f32 %v940_v1, %v781_v60  ;;  %v1252_v63 = vsel %vm652_vm3, %v1250_v30, %v5804_v2  ;;  %v1494_v57 = vrot.slane %v1382_v29, 2 }
  0xa2   : > { %v1495_v48 = vrot.slane %v4421_v51, 2  ;;  %v2321_v56 = vadd.f32 %v2289_v26, %v3843_v32  ;;  %v1887_v53 = vadd.f32 %v1790_v35, %v1643_v31  ;;  %v1694_v17 = vmul.f32 %v3869_v44, %v4414_v37 }
  0xa3   : > { %v4440_v0 = vmul.f32 %v3869_v44, %v4429_v46  ;;  %v1094_v12 = vadd.f32 %v1062_v21, %v1026_v7  ;;  %v1938_v61 = vmul.f32 %v3901_v55, %v4414_v37  ;;  %v1939_v36 = vmul.f32 %v3901_v55, %v4429_v46 }
  0xa4   : > { %v1496_v8 = vsel %vm897_vm4, %v1494_v57, %v1495_v48  ;;  %3284 = vmatmul.mubr.msk.f32.gmra.mrb[6].mxu0 %vm330_vm1, %v2321_v56  ;;  %v2131_v32 = vadd.f32 %v2034_v11, %v1887_v53  ;;  %v1806_v35 = vrot.slane %v1694_v17, 1  ;;  %v505_v20 = vmul.f32 %v3797_v14, %v4368_v59  ;;  %v4461_v11 = vld [vmem:[%s5788_s2] ss:$0 sm:$0xff]  ;;  %v4465_v57 = vld [vmem:[%s3773_s21 + $0xd0] sm:$0xff] }
  0xa5   : > { %v1807_v34 = vrot.slane %v4440_v0, 1  ;;  %v1338_v21 = vadd.f32 %v1252_v63, %v1094_v12  ;;  %v2050_v60 = vrot.slane %v1938_v61, 2  ;;  %v2051_v30 = vrot.slane %v1939_v36, 2  ;;  %v4468_v63 = vld [vmem:[%s3773_s21 + $0xd8] sm:$0xff]  ;;  %v4471_v0 = vld [vmem:[#allocation2 + $0xe8] sm:$0x3] }
  0xa6   : > { %v582_v29 = vmul.f32 %v3799_v15, %v4442_v6  ;;  %v3386_v51 = vpop.eup %3385  ;;  %v4455_v26 = vmul.f32 0.5, %v2131_v32  ;;  %v2195_v31 = vmul.f32 0.70710677, %v2131_v32  ;;  %v537_v7 = vadd.f32 %v4461_v11, %v505_v20  ;;  %5822 = vst [vmem:[#allocation18_spill] sm:$0xff] %v4468_v63  ;;  %413 = vst.msk [vmem:[#allocation2 + $0x151] sm:$0xff] %vm330_vm1, %v4465_v57 }
  0xa7   : > { %v1808_v1 = vsel %vm652_vm3, %v1806_v35, %v1807_v34  ;;  %v2258_v56 = vadd.f32 1.0, %v3386_v51  ;;  %v1582_v53 = vadd.f32 %v1496_v8, %v1338_v21  ;;  %v2052_v17 = vsel %vm897_vm4, %v2050_v60, %v2051_v30  ;;  %414 = vst.msk [vmem:[#allocation2 + $0x159] sm:$0xff] %vm330_vm1, %v4468_v63  ;;  %v4489_v60 = vld [vmem:[#allocation2 + $0x100] sm:$0x3] }
  0xa8   : > { %v696_v12 = vrot.slane %v582_v29, 1  ;;  %3387 = verf.f32 %v2195_v31  ;;  %v827_v61 = vmul.f32 %v3802_v16, %v4442_v6  ;;  %v1063_v36 = vmul.f32 %v3821_v22, %v4396_v54 }
  0xa9   : > { %v1140_v8 = vmul.f32 %v3823_v23, %v4471_v0  ;;  %v2290_v32 = vmul.f32 %v2258_v56, %v4387_v5  ;;  %v1650_v35 = vadd.f32 %v1618_v62, %v1582_v53  ;;  %v1384_v21 = vmul.f32 %v3826_v24, %v4471_v0 }
  0xaa   : > { %v697_v20 = vsel %vm652_vm3, %v694_v13, %v696_v12  ;;  %v941_v51 = vrot.slane %v827_v61, 2  ;;  %v1619_v2 = vmul.f32 %v3829_v25, %v4429_v46  ;;  %v1696_v45 = vmul.f32 %v3869_v44, %v4489_v60 }
  0xab   : > { %v782_v29 = vadd.f32 %v697_v20, %v537_v7  ;;  %v1253_v31 = vrot.slane %v1140_v8, 1  ;;  %v2322_v28 = vadd.f32 %v2290_v32, %v3848_v33  ;;  %v1894_v63 = vadd.f32 %v1808_v1, %v1650_v35 }
  0xac   : > { %v1497_v5 = vrot.slane %v1384_v21, 2  ;;  %v5823_v13 = vrot.slane %v4400_v9, 2  ;;  %v5824_v56 = vrot.slane %v4411_v27, 1  ;;  %v1940_v53 = vmul.f32 %v3901_v55, %v4489_v60 }
  0xad   : > { %v498_v12 = vmul.f32 %v3797_v14, %v4204_v10  ;;  %3286 = vmatprep.mubr.msk.f32.mxu0 %vm330_vm1, %v2322_v28  ;;  %v2138_v33 = vadd.f32 %v2052_v17, %v1894_v63  ;;  %v1809_v8 = vrot.slane %v1696_v45, 1  ;;  %v571_v27 = vmul.f32 %v3799_v15, %v4204_v10 }
  0xae   : > { %v942_v62 = vsel %vm897_vm4, %v5823_v13, %v941_v51  ;;  %v1254_v7 = vsel %vm652_vm3, %v5824_v56, %v1253_v31  ;;  %v1498_v61 = vsel %vm897_vm4, %v1495_v48, %v1497_v5  ;;  %v2053_v9 = vrot.slane %v1940_v53, 2 }
  0xaf   : > { %v1027_v1 = vadd.f32 %v942_v62, %v782_v29  ;;  %v530_v32 = vadd.f32 %v4461_v11, %v498_v12  ;;  %v4513_v35 = vmul.f32 %v3799_v15, %v4215_v58  ;;  %v4515_v20 = vmul.f32 0.5, %v2138_v33  ;;  %v4538_v12 = vld [vmem:[#allocation2 + $0xa8] sm:$0xff] }
  0xb0   : > { %v2202_v21 = vmul.f32 0.70710677, %v2138_v33  ;;  %v1810_v28 = vsel %vm652_vm3, %v1807_v34, %v1809_v8  ;;  %v2054_v63 = vsel %vm897_vm4, %v2051_v30, %v2053_v9  ;;  %v678_v48 = vrot.slane %v571_v27, 1 }
  0xb1   : > { %v1095_v51 = vadd.f32 %v1063_v36, %v1027_v1  ;;  %v679_v17 = vrot.slane %v4513_v35, 1  ;;  %v816_v29 = vmul.f32 %v3802_v16, %v4204_v10  ;;  %v4524_v5 = vmul.f32 %v3802_v16, %v4215_v58 }
  0xb2   : > { %3389 = verf.f32 %v2202_v21  ;;  %v1056_v45 = vmul.f32 %v3821_v22, %v4296_v4  ;;  %v3388_v36 = vpop.eup %3387  ;;  %v1129_v13 = vmul.f32 %v3823_v23, %v4296_v4  ;;  %v4535_v10 = vmul.f32 %v3823_v23, %v4311_v50 }
  0xb3   : > { %v1339_v31 = vadd.f32 %v1254_v7, %v1095_v51  ;;  %v680_v34 = vsel %vm652_vm3, %v678_v48, %v679_v17  ;;  %v923_v30 = vrot.slane %v816_v29, 2  ;;  %v2259_v62 = vadd.f32 1.0, %v3388_v36  ;;  %v4553_v51 = vld [vmem:[#allocation2 + $0xb0] sm:$0xff] }
  0xb4   : > { %v775_v7 = vadd.f32 %v680_v34, %v530_v32  ;;  %v5807_v53 = vrot.slane %v4524_v5, 2  ;;  %v1235_v33 = vrot.slane %v1129_v13, 1  ;;  %v1236_v1 = vrot.slane %v4535_v10, 1 }
  0xb5   : > { %v1583_v56 = vadd.f32 %v1498_v61, %v1339_v31  ;;  %v1373_v8 = vmul.f32 %v3826_v24, %v4296_v4  ;;  %v4545_v9 = vmul.f32 %v3826_v24, %v4311_v50  ;;  %v2291_v27 = vmul.f32 %v2259_v62, %v4455_v26 }
  0xb6   : > { %v925_v61 = vsel %vm897_vm4, %v923_v30, %v5807_v53  ;;  %v1612_v32 = vmul.f32 %v3829_v25, %v4538_v12  ;;  %v1237_v29 = vsel %vm652_vm3, %v1235_v33, %v1236_v1  ;;  %v1686_v26 = vmul.f32 %v3869_v44, %v4553_v51 }
  0xb7   : > { %v1651_v21 = vadd.f32 %v1619_v2, %v1583_v56  ;;  %v1020_v48 = vadd.f32 %v925_v61, %v775_v7  ;;  %v1479_v31 = vrot.slane %v1373_v8, 2  ;;  %v1480_v36 = vrot.slane %v4545_v9, 2 }
  0xb8   : > { %v2323_v34 = vadd.f32 %v2291_v27, %v3857_v38  ;;  %v1685_v2 = vmul.f32 %v3869_v44, %v4538_v12  ;;  %v1929_v62 = vmul.f32 %v3901_v55, %v4538_v12  ;;  %v1930_v56 = vmul.f32 %v3901_v55, %v4553_v51 }
  0xb9   : > { %v1895_v13 = vadd.f32 %v1810_v28, %v1651_v21  ;;  %v1088_v30 = vadd.f32 %v1056_v45, %v1020_v48  ;;  %v1481_v10 = vsel %vm897_vm4, %v1479_v31, %v1480_v36  ;;  %v1792_v7 = vrot.slane %v1686_v26, 1 }
  0xba   : > { %3287 = vmatmul.mubr.msk.f32.gmra.mrb[8].mxu0 %vm330_vm1, %v2323_v34  ;;  %v1791_v28 = vrot.slane %v1685_v2, 1  ;;  %v499_v33 = vmul.f32 %v3797_v14, %v4215_v58  ;;  %v2035_v45 = vrot.slane %v1929_v62, 2  ;;  %v2036_v9 = vrot.slane %v1930_v56, 2 }
  0xbb   : > { %v2139_v38 = vadd.f32 %v2054_v63, %v1895_v13  ;;  %v1332_v8 = vadd.f32 %v1237_v29, %v1088_v30  ;;  %v573_v27 = vmul.f32 %v3799_v15, %v4245_v43  ;;  %v4577_v63 = vld [vmem:[%s3773_s21 + $0xe0] sm:$0xff]  ;;  %v4580_v13 = vld [vmem:[%s3773_s21 + $0xe8] sm:$0xff]  ;;  %v818_v30 = vmul.f32 %v3802_v16, %v4245_v43 }
  0xbc   : > { %v3390_v21 = vpop.eup %3389  ;;  %v1793_v31 = vsel %vm652_vm3, %v1791_v28, %v1792_v7  ;;  %v531_v34 = vadd.f32 %v4461_v11, %v499_v33  ;;  %v2037_v29 = vsel %vm897_vm4, %v2035_v45, %v2036_v9  ;;  %415 = vst.msk [vmem:[#allocation2 + $0x169] sm:$0xff] %vm330_vm1, %v4577_v63  ;;  %416 = vst.msk [vmem:[#allocation2 + $0x171] sm:$0xff] %vm330_vm1, %v4580_v13 }
  0xbd   : > { %v4572_v61 = vmul.f32 0.5, %v2139_v38  ;;  %v2203_v48 = vmul.f32 0.70710677, %v2139_v38  ;;  %v2266_v2 = vadd.f32 1.0, %v3390_v21  ;;  %v1576_v58 = vadd.f32 %v1481_v10, %v1332_v8  ;;  %v4599_v8 = vld [vmem:[#allocation2 + $0xb8] sm:$0x3] }
  0xbe   : > { %v681_v26 = vrot.slane %v573_v27, 1  ;;  %v1057_v62 = vmul.f32 %v3821_v22, %v4311_v50  ;;  %v1131_v56 = vmul.f32 %v3823_v23, %v4361_v19  ;;  %v1375_v33 = vmul.f32 %v3826_v24, %v4361_v19 }
  0xbf   : > { %3391 = verf.f32 %v2203_v48  ;;  %v2298_v10 = vmul.f32 %v2266_v2, %v4515_v20  ;;  %v1644_v38 = vadd.f32 %v1612_v32, %v1576_v58  ;;  %v926_v43 = vrot.slane %v818_v30, 2 }
  0xc0   : > { %v682_v28 = vsel %vm652_vm3, %v679_v17, %v681_v26  ;;  %v1238_v27 = vrot.slane %v1131_v56, 1  ;;  %v1613_v21 = vmul.f32 %v3829_v25, %v4553_v51  ;;  %v1482_v20 = vrot.slane %v1375_v33, 2 }
  0xc1   : > { %v776_v45 = vadd.f32 %v682_v28, %v531_v34  ;;  %v2330_v48 = vadd.f32 %v2298_v10, %v3884_v47  ;;  %v1888_v53 = vadd.f32 %v1793_v31, %v1644_v38  ;;  %v1687_v35 = vmul.f32 %v3869_v44, %v4599_v8 }
  0xc2   : > { %v5825_v17 = vrot.slane %v4524_v5, 2  ;;  %v1239_v2 = vsel %vm652_vm3, %v1236_v1, %v1238_v27  ;;  %v1931_v34 = vmul.f32 %v3901_v55, %v4599_v8  ;;  %v506_v58 = vmul.f32 %v3797_v14, %v4391_v18 }
  0xc3   : > { %3298 = vmatprep.mubr.msk.f32.mxu1 %vm330_vm1, %v2330_v48  ;;  %v2132_v47 = vadd.f32 %v2037_v29, %v1888_v53  ;;  %v1483_v26 = vsel %vm897_vm4, %v1480_v36, %v1482_v20  ;;  %v1794_v30 = vrot.slane %v1687_v35, 1  ;;  %v583_v10 = vmul.f32 %v3799_v15, %v4391_v18 }
  0xc4   : > { %v927_v32 = vsel %vm897_vm4, %v5825_v17, %v926_v43  ;;  %v2038_v56 = vrot.slane %v1931_v34, 2  ;;  %v538_v5 = vadd.f32 %v4461_v11, %v506_v58  ;;  %v4621_v1 = vmul.f32 %v3799_v15, %v4396_v54 }
  0xc5   : > { %v1021_v31 = vadd.f32 %v927_v32, %v776_v45  ;;  %v4623_v38 = vmul.f32 0.5, %v2132_v47  ;;  %v2196_v28 = vmul.f32 0.70710677, %v2132_v47  ;;  %v1795_v53 = vsel %vm652_vm3, %v1792_v7, %v1794_v30  ;;  %v4646_v47 = vld [vmem:[#allocation2 + $0x108] sm:$0xff] }
  0xc6   : > { %v2039_v29 = vsel %vm897_vm4, %v2036_v9, %v2038_v56  ;;  %v698_v36 = vrot.slane %v583_v10, 1  ;;  %v699_v45 = vrot.slane %v4621_v1, 1  ;;  %v828_v43 = vmul.f32 %v3802_v16, %v4391_v18 }
  0xc7   : > { %v1089_v33 = vadd.f32 %v1057_v62, %v1021_v31  ;;  %3393 = verf.f32 %v2196_v28  ;;  %v4632_v48 = vmul.f32 %v3802_v16, %v4396_v54  ;;  %v1064_v20 = vmul.f32 %v3821_v22, %v4414_v37 }
  0xc8   : > { %v700_v7 = vsel %vm652_vm3, %v698_v36, %v699_v45  ;;  %v943_v9 = vrot.slane %v828_v43, 2  ;;  %v1141_v35 = vmul.f32 %v3823_v23, %v4414_v37  ;;  %v4643_v17 = vmul.f32 %v3823_v23, %v4429_v46  ;;  %v4661_v36 = vld [vmem:[#allocation2 + $0x110] sm:$0xff] }
  0xc9   : > { %v1333_v27 = vadd.f32 %v1239_v2, %v1089_v33  ;;  %v3392_v62 = vpop.eup %3391  ;;  %v783_v34 = vadd.f32 %v700_v7, %v538_v5  ;;  %v5808_v58 = vrot.slane %v4632_v48, 2  ;;  %v1385_v56 = vmul.f32 %v3826_v24, %v4414_v37 }
  0xca   : > { %v2267_v32 = vadd.f32 1.0, %v3392_v62  ;;  %v1255_v31 = vrot.slane %v1141_v35, 1  ;;  %v1256_v30 = vrot.slane %v4643_v17, 1  ;;  %v4653_v10 = vmul.f32 %v3826_v24, %v4429_v46 }
  0xcb   : > { %v1577_v2 = vadd.f32 %v1483_v26, %v1333_v27  ;;  %v945_v26 = vsel %vm897_vm4, %v943_v9, %v5808_v58  ;;  %v1620_v5 = vmul.f32 %v3829_v25, %v4646_v47  ;;  %v1499_v62 = vrot.slane %v1385_v56, 2 }
  0xcc   : > { %v2299_v28 = vmul.f32 %v2267_v32, %v4572_v61  ;;  %v1028_v43 = vadd.f32 %v945_v26, %v783_v34  ;;  %v1257_v27 = vsel %vm652_vm3, %v1255_v31, %v1256_v30  ;;  %v1500_v7 = vrot.slane %v4653_v10, 2 }
  0xcd   : > { %v1645_v33 = vadd.f32 %v1613_v21, %v1577_v2  ;;  %v1697_v61 = vmul.f32 %v3869_v44, %v4646_v47  ;;  %v1698_v21 = vmul.f32 %v3869_v44, %v4661_v36  ;;  %v1941_v2 = vmul.f32 %v3901_v55, %v4646_v47 }
  0xce   : > { %v2331_v35 = vadd.f32 %v2299_v28, %v3887_v52  ;;  %v1096_v9 = vadd.f32 %v1064_v20, %v1028_v43  ;;  %v1501_v32 = vsel %vm897_vm4, %v1499_v62, %v1500_v7  ;;  %v1942_v34 = vmul.f32 %v3901_v55, %v4661_v36 }
  0xcf   : > { %v1889_v17 = vadd.f32 %v1795_v53, %v1645_v33  ;;  %v1811_v52 = vrot.slane %v1697_v61, 1  ;;  %v1812_v53 = vrot.slane %v1698_v21, 1  ;;  %v507_v56 = vmul.f32 %v3797_v14, %v4396_v54 }
  0xd0   : > { %3299 = vmatmul.mubr.msk.f32.vlgmr.msra.gmra.mrb[0].mxu1 %vm330_vm1, %v2331_v35  ;;  %v1340_v10 = vadd.f32 %v1257_v27, %v1096_v9  ;;  %v2055_v28 = vrot.slane %v1941_v2, 2  ;;  %v2056_v20 = vrot.slane %v1942_v34, 2  ;;  %v585_v33 = vmul.f32 %v3799_v15, %v4471_v0 }
  0xd1   : > { %v2133_v31 = vadd.f32 %v2039_v29, %v1889_v17  ;;  %v3394_v26 = vpop.eup %3393  ;;  %v1813_v35 = vsel %vm652_vm3, %v1811_v52, %v1812_v53  ;;  %v539_v29 = vadd.f32 %v4461_v11, %v507_v56  ;;  %v830_v9 = vmul.f32 %v3802_v16, %v4471_v0  ;;  %v4695_v52 = vld [vmem:[%s3773_s21 + $0xf8] sm:$0xff] }
  0xd2   : > { %v2260_v17 = vadd.f32 1.0, %v3394_v26  ;;  %v1584_v61 = vadd.f32 %v1501_v32, %v1340_v10  ;;  %v2057_v21 = vsel %vm897_vm4, %v2055_v28, %v2056_v20  ;;  %v701_v27 = vrot.slane %v585_v33, 1  ;;  %5826 = vst [vmem:[#allocation19_spill] sm:$0xff] %v4695_v52  ;;  %418 = vst.msk [vmem:[#allocation2 + $0x189] sm:$0xff] %vm330_vm1, %v4695_v52  ;;  %v4707_v33 = vld [vmem:[#allocation2 + $0x118] sm:$0x3] }
  0xd3   : > { %v4680_v43 = vmul.f32 0.5, %v2133_v31  ;;  %v2197_v62 = vmul.f32 0.70710677, %v2133_v31  ;;  %v1065_v2 = vmul.f32 %v3821_v22, %v4429_v46  ;;  %v1143_v34 = vmul.f32 %v3823_v23, %v4489_v60  ;;  %v4692_v31 = vld [vmem:[%s3773_s21 + $0xf0] sm:$0xff]  ;;  %s5718_s21 = scalar_lea.hbm %s5793_s7, %s3233_s18 }
  0xd4   : > { %v2292_v56 = vmul.f32 %v2260_v17, %v4623_v38  ;;  %v1652_v32 = vadd.f32 %v1620_v5, %v1584_v61  ;;  %v702_v10 = vsel %vm652_vm3, %v699_v45, %v701_v27  ;;  %v1387_v28 = vmul.f32 %v3826_v24, %v4489_v60  ;;  %417 = vst.msk [vmem:[#allocation2 + $0x181] sm:$0xff] %vm330_vm1, %v4692_v31 }
  0xd5   : > { %3395 = verf.f32 %v2197_v62  ;;  %v784_v26 = vadd.f32 %v702_v10, %v539_v29  ;;  %v946_v62 = vrot.slane %v830_v9, 2  ;;  %v1258_v58 = vrot.slane %v1143_v34, 1 }
  0xd6   : > { %v1621_v38 = vmul.f32 %v3829_v25, %v4661_v36  ;;  %v2324_v1 = vadd.f32 %v2292_v56, %v3862_v39  ;;  %v1896_v45 = vadd.f32 %v1813_v35, %v1652_v32  ;;  %v1502_v5 = vrot.slane %v1387_v28, 2 }
  0xd7   : > { %v1699_v17 = vmul.f32 %v3869_v44, %v4707_v33  ;;  %v5827_v61 = vrot.slane %v4632_v48, 2  ;;  %v1259_v52 = vsel %vm652_vm3, %v1256_v30, %v1258_v58  ;;  %v1943_v29 = vmul.f32 %v3901_v55, %v4707_v33 }
  0xd8   : > { %v500_v9 = vmul.f32 %v3797_v14, %v4296_v4  ;;  %3289 = vmatprep.mubr.msk.f32.mxu0 %vm330_vm1, %v2324_v1  ;;  %v2140_v39 = vadd.f32 %v2057_v21, %v1896_v45  ;;  %v1503_v34 = vsel %vm897_vm4, %v1500_v7, %v1502_v5  ;;  %v574_v10 = vmul.f32 %v3799_v15, %v4296_v4 }
  0xd9   : > { %v947_v27 = vsel %vm897_vm4, %v5827_v61, %v946_v62  ;;  %v1814_v56 = vrot.slane %v1699_v17, 1  ;;  %v2058_v32 = vrot.slane %v1943_v29, 2  ;;  %v4729_v58 = vmul.f32 %v3799_v15, %v4311_v50 }
  0xda   : > { %v1029_v35 = vadd.f32 %v947_v27, %v784_v26  ;;  %v532_v48 = vadd.f32 %v4461_v11, %v500_v9  ;;  %v4731_v30 = vmul.f32 0.5, %v2140_v39  ;;  %v2204_v28 = vmul.f32 0.70710677, %v2140_v39 }
  0xdb   : > { %v1815_v21 = vsel %vm652_vm3, %v1812_v53, %v1814_v56  ;;  %v2059_v26 = vsel %vm897_vm4, %v2056_v20, %v2058_v32  ;;  %v683_v7 = vrot.slane %v574_v10, 1  ;;  %v684_v1 = vrot.slane %v4729_v58, 1 }
  0xdc   : > { %v1097_v62 = vadd.f32 %v1065_v2, %v1029_v35  ;;  %v819_v45 = vmul.f32 %v3802_v16, %v4296_v4  ;;  %3397 = verf.f32 %v2204_v28  ;;  %v4740_v17 = vmul.f32 %v3802_v16, %v4311_v50 }
  0xdd   : > { %v1058_v61 = vmul.f32 %v3821_v22, %v4538_v12  ;;  %v685_v53 = vsel %vm652_vm3, %v683_v7, %v684_v1  ;;  %v1132_v20 = vmul.f32 %v3823_v23, %v4538_v12  ;;  %v1133_v29 = vmul.f32 %v3823_v23, %v4553_v51 }
  0xde   : > { %v1341_v5 = vadd.f32 %v1259_v52, %v1097_v62  ;;  %v928_v27 = vrot.slane %v819_v45, 2  ;;  %v777_v52 = vadd.f32 %v685_v53, %v532_v48  ;;  %v929_v39 = vrot.slane %v4740_v17, 2  ;;  %v5828_v17 = vld [vmem:[#allocation9_spill] sm:$0xff] }
  0xdf   : > { %v3396_v2 = vpop.eup %3395  ;;  %v1240_v35 = vrot.slane %v1132_v20, 1  ;;  %v1241_v56 = vrot.slane %v1133_v29, 1  ;;  %v1376_v32 = vmul.f32 %v3826_v24, %v4538_v12  ;;  %v1377_v10 = vmul.f32 %v3826_v24, %v4553_v51 }
  0xe0   : > { %v2261_v4 = vadd.f32 1.0, %v3396_v2  ;;  %v1585_v9 = vadd.f32 %v1503_v34, %v1341_v5  ;;  %v930_v62 = vsel %vm897_vm4, %v928_v27, %v929_v39  ;;  %v1614_v7 = vmul.f32 %v3829_v25, %v4359_v41 }
  0xe1   : > { %v1022_v34 = vadd.f32 %v930_v62, %v777_v52  ;;  %v1242_v48 = vsel %vm652_vm3, %v1240_v35, %v1241_v56  ;;  %v1484_v45 = vrot.slane %v1376_v32, 2  ;;  %v1485_v5 = vrot.slane %v1377_v10, 2 }
  0xe2   : > { %v2293_v58 = vmul.f32 %v2261_v4, %v4680_v43  ;;  %v1653_v28 = vadd.f32 %v1621_v38, %v1585_v9  ;;  %v1688_v20 = vmul.f32 %v3869_v44, %v4359_v41  ;;  %v1689_v43 = vmul.f32 %v3869_v44, %v4368_v59 }
  0xe3   : > { %v1090_v38 = vadd.f32 %v1058_v61, %v1022_v34  ;;  %v1486_v27 = vsel %vm897_vm4, %v1484_v45, %v1485_v5  ;;  %v1932_v29 = vmul.f32 %v3901_v55, %v4359_v41  ;;  %v1933_v4 = vmul.f32 %v3901_v55, %v4368_v59 }
  0xe4   : > { %v2325_v2 = vadd.f32 %v2293_v58, %v5828_v17  ;;  %v1897_v53 = vadd.f32 %v1815_v21, %v1653_v28  ;;  %v1796_v52 = vrot.slane %v1688_v20, 1  ;;  %v1797_v21 = vrot.slane %v1689_v43, 1 }
  0xe5   : > { %v501_v35 = vmul.f32 %v3797_v14, %v4311_v50  ;;  %v1334_v32 = vadd.f32 %v1242_v48, %v1090_v38  ;;  %v2040_v10 = vrot.slane %v1932_v29, 2  ;;  %v2041_v58 = vrot.slane %v1933_v4, 2 }
  0xe6   : > { %3290 = vmatmul.mubr.msk.f32.gmra.mrb[10].mxu0 %vm330_vm1, %v2325_v2  ;;  %v2141_v9 = vadd.f32 %v2059_v26, %v1897_v53  ;;  %v576_v61 = vmul.f32 %v3799_v15, %v4361_v19  ;;  %v3398_v28 = vpop.eup %3397  ;;  %v1798_v45 = vsel %vm652_vm3, %v1796_v52, %v1797_v21  ;;  %v821_v50 = vmul.f32 %v3802_v16, %v4361_v19 }
  0xe7   : > { %v533_v17 = vadd.f32 %v4461_v11, %v501_v35  ;;  %v2268_v26 = vadd.f32 1.0, %v3398_v28  ;;  %v1578_v2 = vadd.f32 %v1486_v27, %v1334_v32  ;;  %v2042_v53 = vsel %vm897_vm4, %v2040_v10, %v2041_v58  ;;  %v5829_v32 = vld [vmem:[#allocation12_spill] sm:$0xff] }
  0xe8   : > { %v4774_v62 = vmul.f32 0.5, %v2141_v9  ;;  %v2205_v34 = vmul.f32 0.70710677, %v2141_v9  ;;  %v686_v20 = vrot.slane %v576_v61, 1  ;;  %v1059_v48 = vmul.f32 %v3821_v22, %v4553_v51 }
  0xe9   : > { %v1134_v43 = vmul.f32 %v3823_v23, %v4599_v8  ;;  %v2300_v38 = vmul.f32 %v2268_v26, %v4731_v30  ;;  %v1646_v29 = vadd.f32 %v1614_v7, %v1578_v2  ;;  %v1378_v27 = vmul.f32 %v3826_v24, %v4599_v8 }
  0xea   : > { %3399 = verf.f32 %v2205_v34  ;;  %v687_v4 = vsel %vm652_vm3, %v684_v1, %v686_v20  ;;  %v931_v52 = vrot.slane %v821_v50, 2  ;;  %v1615_v19 = vmul.f32 %v3829_v25, %v4368_v59 }
  0xeb   : > { %v778_v9 = vadd.f32 %v687_v4, %v533_v17  ;;  %v1243_v35 = vrot.slane %v1134_v43, 1  ;;  %v2332_v10 = vadd.f32 %v2300_v38, %v5829_v32  ;;  %v1890_v61 = vadd.f32 %v1798_v45, %v1646_v29 }
  0xec   : > { %v1487_v28 = vrot.slane %v1378_v27, 2  ;;  %v1690_v34 = vmul.f32 %v3869_v44, %v4442_v6  ;;  %v932_v30 = vsel %vm897_vm4, %v929_v39, %v931_v52  ;;  %v1934_v7 = vmul.f32 %v3901_v55, %v4442_v6 }
  0xed   : > { %v1244_v1 = vsel %vm652_vm3, %v1241_v56, %v1243_v35  ;;  %v508_v17 = vmul.f32 %v3797_v14, %v4414_v37  ;;  %3301 = vmatprep.mubr.msk.f32.mxu1 %vm330_vm1, %v2332_v10  ;;  %v2134_v26 = vadd.f32 %v2042_v53, %v1890_v61  ;;  %v1023_v2 = vadd.f32 %v932_v30, %v778_v9 }
  0xee   : > { %v1488_v45 = vsel %vm897_vm4, %v1485_v5, %v1487_v28  ;;  %v1799_v20 = vrot.slane %v1690_v34, 1  ;;  %v2043_v50 = vrot.slane %v1934_v7, 2  ;;  %v586_v39 = vmul.f32 %v3799_v15, %v4414_v37  ;;  %v4830_v7 = vld [vmem:[#allocation2 + $0x120] sm:$0xff] }
  0xef   : > { %v540_v43 = vadd.f32 %v4461_v11, %v508_v17  ;;  %v4807_v56 = vmul.f32 %v3799_v15, %v4429_v46  ;;  %v4809_v38 = vmul.f32 0.5, %v2134_v26  ;;  %v2198_v29 = vmul.f32 0.70710677, %v2134_v26 }
  0xf0   : > { %v1091_v4 = vadd.f32 %v1059_v48, %v1023_v2  ;;  %v1800_v53 = vsel %vm652_vm3, %v1797_v21, %v1799_v20  ;;  %v2044_v27 = vsel %vm897_vm4, %v2041_v58, %v2043_v50  ;;  %v703_v5 = vrot.slane %v586_v39, 1 }
  0xf1   : > { %v704_v9 = vrot.slane %v4807_v56, 1  ;;  %v831_v52 = vmul.f32 %v3802_v16, %v4414_v37  ;;  %3401 = verf.f32 %v2198_v29  ;;  %v4818_v32 = vmul.f32 %v3802_v16, %v4429_v46 }
  0xf2   : > { %v1335_v35 = vadd.f32 %v1244_v1, %v1091_v4  ;;  %v1066_v10 = vmul.f32 %v3821_v22, %v4646_v47  ;;  %v1144_v58 = vmul.f32 %v3823_v23, %v4646_v47  ;;  %v4827_v28 = vmul.f32 %v3823_v23, %v4661_v36 }
  0xf3   : > { %v705_v21 = vsel %vm652_vm3, %v703_v5, %v704_v9  ;;  %v948_v61 = vrot.slane %v831_v52, 2  ;;  %v949_v1 = vrot.slane %v4818_v32, 2  ;;  %v1388_v2 = vmul.f32 %v3826_v24, %v4646_v47 }
  0xf4   : > { %v3400_v48 = vpop.eup %3399  ;;  %v1579_v34 = vadd.f32 %v1488_v45, %v1335_v35  ;;  %v785_v30 = vadd.f32 %v705_v21, %v540_v43  ;;  %v1260_v17 = vrot.slane %v1144_v58, 1  ;;  %v1261_v26 = vrot.slane %v4827_v28, 1  ;;  %v4841_v43 = vld [vmem:[#allocation2 + $0x128] sm:$0xff]  ;;  %v5830_v35 = vld [vmem:[#allocation13_spill] sm:$0xff] }
  0xf5   : > { %v2269_v37 = vadd.f32 1.0, %v3400_v48  ;;  %v1389_v20 = vmul.f32 %v3826_v24, %v4661_v36  ;;  %v950_v56 = vsel %vm897_vm4, %v948_v61, %v949_v1  ;;  %v1622_v45 = vmul.f32 %v3829_v25, %v4830_v7 }
  0xf6   : > { %v1647_v39 = vadd.f32 %v1615_v19, %v1579_v34  ;;  %v1030_v29 = vadd.f32 %v950_v56, %v785_v30  ;;  %v1262_v4 = vsel %vm652_vm3, %v1260_v17, %v1261_v26  ;;  %v1504_v5 = vrot.slane %v1388_v2, 2 }
  0xf7   : > { %v2301_v50 = vmul.f32 %v2269_v37, %v4774_v62  ;;  %v1505_v52 = vrot.slane %v1389_v20, 2  ;;  %v1700_v21 = vmul.f32 %v3869_v44, %v4830_v7  ;;  %v1701_v62 = vmul.f32 %v3869_v44, %v4841_v43 }
  0xf8   : > { %v1891_v48 = vadd.f32 %v1800_v53, %v1647_v39  ;;  %v1098_v19 = vadd.f32 %v1066_v10, %v1030_v29  ;;  %v1944_v58 = vmul.f32 %v3901_v55, %v4830_v7  ;;  %v1945_v28 = vmul.f32 %v3901_v55, %v4841_v43 }
  0xf9   : > { %v2333_v32 = vadd.f32 %v2301_v50, %v5830_v35  ;;  %v1506_v61 = vsel %vm897_vm4, %v1504_v5, %v1505_v52  ;;  %v1816_v34 = vrot.slane %v1700_v21, 1  ;;  %v1817_v53 = vrot.slane %v1701_v62, 1 }
  0xfa   : > { %v2135_v37 = vadd.f32 %v2044_v27, %v1891_v48  ;;  %v509_v30 = vmul.f32 %v3797_v14, %v4429_v46  ;;  %v1342_v17 = vadd.f32 %v1262_v4, %v1098_v19  ;;  %v2060_v2 = vrot.slane %v1944_v58, 2 }
  0xfb   : > { %3302 = vmatmul.mubr.msk.f32.gmra.mrb[2].mxu1 %vm330_vm1, %v2333_v32  ;;  %v2061_v20 = vrot.slane %v1945_v28, 2  ;;  %v588_v10 = vmul.f32 %v3799_v15, %v4489_v60  ;;  %v3402_v50 = vpop.eup %3401  ;;  %v1818_v29 = vsel %vm652_vm3, %v1816_v34, %v1817_v53  ;;  %v833_v46 = vmul.f32 %v3802_v16, %v4489_v60  ;;  %v4874_v28 = vld [vmem:[#allocation2 + $0x130] sm:$0x3] }
  0xfc   : > { %v4859_v39 = vmul.f32 0.5, %v2135_v37  ;;  %v2199_v56 = vmul.f32 0.70710677, %v2135_v37  ;;  %v541_v5 = vadd.f32 %v4461_v11, %v509_v30  ;;  %v2262_v27 = vadd.f32 1.0, %v3402_v50 }
  0xfd   : > { %v1586_v35 = vadd.f32 %v1506_v61, %v1342_v17  ;;  %v2062_v32 = vsel %vm897_vm4, %v2060_v2, %v2061_v20  ;;  %v706_v48 = vrot.slane %v588_v10, 1  ;;  %v1067_v4 = vmul.f32 %v3821_v22, %v4661_v36  ;;  %v5831_v17 = vld [vmem:[#allocation14_spill] sm:$0xff] }
  0xfe   : > { %3403 = verf.f32 %v2199_v56  ;;  %v1146_v21 = vmul.f32 %v3823_v23, %v4707_v33  ;;  %v2294_v62 = vmul.f32 %v2262_v27, %v4809_v38  ;;  %v1390_v61 = vmul.f32 %v3826_v24, %v4707_v33 }
  0xff   : > { %v1654_v19 = vadd.f32 %v1622_v45, %v1586_v35  ;;  %v707_v58 = vsel %vm652_vm3, %v704_v9, %v706_v48  ;;  %v951_v34 = vrot.slane %v833_v46, 2  ;;  %v1623_v60 = vmul.f32 %v3829_v25, %v4841_v43 }
 0x100   : > { %v786_v37 = vadd.f32 %v707_v58, %v541_v5  ;;  %v1263_v30 = vrot.slane %v1146_v21, 1  ;;  %v2326_v2 = vadd.f32 %v2294_v62, %v5831_v17  ;;  %v1507_v50 = vrot.slane %v1390_v61, 2 }
 0x101   : > { %v1898_v10 = vadd.f32 %v1818_v29, %v1654_v19  ;;  %v1702_v38 = vmul.f32 %v3869_v44, %v4874_v28  ;;  %v952_v9 = vsel %vm897_vm4, %v949_v1, %v951_v34  ;;  %v1946_v56 = vmul.f32 %v3901_v55, %v4874_v28 }
 0x102   : > { %v1264_v45 = vsel %vm652_vm3, %v1261_v26, %v1263_v30  ;;  %v502_v5 = vmul.f32 %v3797_v14, %v4538_v12  ;;  %3292 = vmatprep.mubr.msk.f32.mxu0 %vm330_vm1, %v2326_v2  ;;  %v1031_v35 = vadd.f32 %v952_v9, %v786_v37  ;;  %v1508_v29 = vsel %vm897_vm4, %v1505_v52, %v1507_v50 }
 0x103   : > { %v2142_v27 = vadd.f32 %v2062_v32, %v1898_v10  ;;  %v1819_v48 = vrot.slane %v1702_v38, 1  ;;  %v2063_v46 = vrot.slane %v1946_v56, 2  ;;  %v577_v1 = vmul.f32 %v3799_v15, %v4538_v12 }
 0x104   : > { %v534_v21 = vadd.f32 %v4461_v11, %v502_v5  ;;  %v4894_v26 = vmul.f32 %v3799_v15, %v4553_v51  ;;  %v1099_v58 = vadd.f32 %v1067_v4, %v1031_v35  ;;  %v822_v34 = vmul.f32 %v3802_v16, %v4538_v12 }
 0x105   : > { %v4896_v62 = vmul.f32 0.5, %v2142_v27  ;;  %v2206_v19 = vmul.f32 0.70710677, %v2142_v27  ;;  %v1820_v32 = vsel %vm652_vm3, %v1817_v53, %v1819_v48  ;;  %v2064_v61 = vsel %vm897_vm4, %v2061_v20, %v2063_v46  ;;  %v3498_v27 = vld [vmem:[#allocation2 + $0xc0] sm:$0xff] }
 0x106   : > { %v688_v52 = vrot.slane %v577_v1, 1  ;;  %v689_v37 = vrot.slane %v4894_v26, 1  ;;  %v1343_v30 = vadd.f32 %v1264_v45, %v1099_v58  ;;  %v4905_v17 = vmul.f32 %v3802_v16, %v4553_v51 }
 0x107   : > { %3405 = verf.f32 %v2206_v19  ;;  %v1060_v2 = vmul.f32 %v3821_v22, %v4359_v41  ;;  %v933_v10 = vrot.slane %v822_v34, 2  ;;  %v1135_v20 = vmul.f32 %v3823_v23, %v4359_v41 }
 0x108   : > { %v3404_v4 = vpop.eup %3403  ;;  %v690_v53 = vsel %vm652_vm3, %v688_v52, %v689_v37  ;;  %v4914_v50 = vmul.f32 %v3823_v23, %v4368_v59  ;;  %v1587_v38 = vadd.f32 %v1508_v29, %v1343_v30  ;;  %v934_v45 = vrot.slane %v4905_v17, 2  ;;  %v5832_v52 = vld [vmem:[#allocation15_spill] sm:$0xff] }
 0x109   : > { %v2263_v12 = vadd.f32 1.0, %v3404_v4  ;;  %v779_v9 = vadd.f32 %v690_v53, %v534_v21  ;;  %v1245_v56 = vrot.slane %v1135_v20, 1  ;;  %v1379_v35 = vmul.f32 %v3498_v27, %v3826_v24 }
 0x10a   : > { %v1246_v5 = vrot.slane %v4914_v50, 1  ;;  %v1380_v48 = vmul.f32 %v3826_v24, %v4368_v59  ;;  %v1655_v46 = vadd.f32 %v1623_v60, %v1587_v38  ;;  %v935_v1 = vsel %vm897_vm4, %v933_v10, %v934_v45 }
 0x10b   : > { %v2295_v41 = vmul.f32 %v2263_v12, %v4859_v39  ;;  %v1616_v29 = vmul.f32 %v3829_v25, %v4391_v18  ;;  %v1024_v21 = vadd.f32 %v935_v1, %v779_v9  ;;  %v1489_v19 = vrot.slane %v1379_v35, 2  ;;  %v3499_v1 = vld [vmem:[#allocation2 + $0xc8] sm:$0xff] }
 0x10c   : > { %v1247_v26 = vsel %vm652_vm3, %v1245_v56, %v1246_v5  ;;  %v1490_v58 = vrot.slane %v1380_v48, 2  ;;  %v1899_v30 = vadd.f32 %v1820_v32, %v1655_v46  ;;  %v1691_v17 = vmul.f32 %v3869_v44, %v4391_v18 }
 0x10d   : > { %v2327_v34 = vadd.f32 %v2295_v41, %v5832_v52  ;;  %v1692_v59 = vmul.f32 %v3869_v44, %v4396_v54  ;;  %v1092_v39 = vadd.f32 %v1060_v2, %v1024_v21  ;;  %v1935_v4 = vmul.f32 %v3901_v55, %v4391_v18 }
 0x10e   : > { %v1491_v60 = vsel %vm897_vm4, %v1489_v19, %v1490_v58  ;;  %v1936_v53 = vmul.f32 %v3901_v55, %v4396_v54  ;;  %v2143_v10 = vadd.f32 %v2064_v61, %v1899_v30  ;;  %v1801_v20 = vrot.slane %v1691_v17, 1 }
 0x10f   : > { %3293 = vmatmul.mubr.msk.f32.gmra.mrb[12].mxu0 %vm330_vm1, %v2327_v34  ;;  %v1802_v32 = vrot.slane %v1692_v59, 1  ;;  %v503_v50 = vmul.f32 %v3797_v14, %v4553_v51  ;;  %v1336_v12 = vadd.f32 %v1247_v26, %v1092_v39  ;;  %v2045_v38 = vrot.slane %v1935_v4, 2  ;;  %v5833_v4 = vld [vmem:[#allocation16_spill] sm:$0xff] }
 0x110   : > { %v2046_v9 = vrot.slane %v1936_v53, 2  ;;  %v579_v2 = vmul.f32 %v3799_v15, %v4599_v8  ;;  %v4941_v27 = vmul.f32 0.5, %v2143_v10  ;;  %v2207_v18 = vmul.f32 0.70710677, %v2143_v10 }
 0x111   : > { %v3406_v56 = vpop.eup %3405  ;;  %v1803_v54 = vsel %vm652_vm3, %v1801_v20, %v1802_v32  ;;  %v535_v35 = vadd.f32 %v4461_v11, %v503_v50  ;;  %v1580_v48 = vadd.f32 %v1491_v60, %v1336_v12  ;;  %v824_v51 = vmul.f32 %v3802_v16, %v4599_v8  ;;  %v3500_v60 = vld [vmem:[#allocation2 + $0xe0] sm:$0xff] }
 0x112   : > { %v2270_v61 = vadd.f32 1.0, %v3406_v56  ;;  %v2047_v41 = vsel %vm897_vm4, %v2045_v38, %v2046_v9  ;;  %v691_v46 = vrot.slane %v579_v2, 1  ;;  %3407 = verf.f32 %v2207_v18 }
 0x113   : > { %v1061_v21 = vmul.f32 %v3499_v1, %v3821_v22  ;;  %v1137_v26 = vmul.f32 %v3823_v23, %v4442_v6  ;;  %v1648_v52 = vadd.f32 %v1616_v29, %v1580_v48  ;;  %v1381_v30 = vmul.f32 %v3826_v24, %v4442_v6 }
 0x114   : > { %v2302_v19 = vmul.f32 %v2270_v61, %v4896_v62  ;;  %v692_v34 = vsel %vm652_vm3, %v689_v37, %v691_v46  ;;  %v936_v59 = vrot.slane %v824_v51, 2  ;;  %v1617_v8 = vmul.f32 %v3500_v60, %v3829_v25 }
 0x115   : > { %v780_v17 = vadd.f32 %v692_v34, %v535_v35  ;;  %v1248_v39 = vrot.slane %v1137_v26, 1  ;;  %v1892_v10 = vadd.f32 %v1803_v54, %v1648_v52  ;;  %v1492_v20 = vrot.slane %v1381_v30, 2 }
 0x116   : > { %v2334_v53 = vadd.f32 %v2302_v19, %v5833_v4  ;;  %v1693_v50 = vmul.f32 %v3869_v44, %v4471_v0  ;;  %v937_v62 = vsel %vm897_vm4, %v934_v45, %v936_v59  ;;  %v1937_v6 = vmul.f32 %v3901_v55, %v4471_v0  ;;  %v4997_v59 = vld [vmem:[#allocation2 + $0x138] sm:$0xff] }
 0x117   : > { %v1249_v37 = vsel %vm652_vm3, %v1246_v5, %v1248_v39  ;;  %v510_v29 = vmul.f32 %v3797_v14, %v4646_v47  ;;  %v2136_v12 = vadd.f32 %v2047_v41, %v1892_v10  ;;  %v1025_v38 = vadd.f32 %v937_v62, %v780_v17 }
 0x118   : > { %3304 = vmatprep.mubr.msk.f32.mxu1 %vm330_vm1, %v2334_v53  ;;  %v1493_v2 = vsel %vm897_vm4, %v1490_v58, %v1492_v20  ;;  %v1804_v56 = vrot.slane %v1693_v50, 1  ;;  %v2048_v18 = vrot.slane %v1937_v6, 2  ;;  %v589_v45 = vmul.f32 %v3799_v15, %v4646_v47 }
 0x119   : > { %v542_v54 = vadd.f32 %v4461_v11, %v510_v29  ;;  %v4972_v5 = vmul.f32 %v3799_v15, %v4661_v36  ;;  %v4974_v0 = vmul.f32 0.5, %v2136_v12  ;;  %v2200_v35 = vmul.f32 0.70710677, %v2136_v12 }
 0x11a   : > { %v1093_v61 = vadd.f32 %v1061_v21, %v1025_v38  ;;  %v1805_v48 = vsel %vm652_vm3, %v1802_v32, %v1804_v56  ;;  %v2049_v41 = vsel %vm897_vm4, %v2046_v9, %v2048_v18  ;;  %v708_v58 = vrot.slane %v589_v45, 1 }
 0x11b   : > { %v709_v46 = vrot.slane %v4972_v5, 1  ;;  %v834_v11 = vmul.f32 %v3802_v16, %v4646_v47  ;;  %3409 = verf.f32 %v2200_v35  ;;  %v4983_v1 = vmul.f32 %v3802_v16, %v4661_v36 }
 0x11c   : > { %v1337_v51 = vadd.f32 %v1249_v37, %v1093_v61  ;;  %v1068_v26 = vmul.f32 %v3821_v22, %v4830_v7  ;;  %v3408_v21 = vpop.eup %3407  ;;  %v1147_v19 = vmul.f32 %v3823_v23, %v4830_v7  ;;  %v4994_v47 = vmul.f32 %v3823_v23, %v4841_v43  ;;  %v5010_v37 = vld [vmem:[#allocation2 + $0x140] sm:$0xff] }
 0x11d   : > { %v710_v32 = vsel %vm652_vm3, %v708_v58, %v709_v46  ;;  %v953_v9 = vrot.slane %v834_v11, 2  ;;  %v2271_v52 = vadd.f32 1.0, %v3408_v21  ;;  %v954_v17 = vrot.slane %v4983_v1, 2 }
 0x11e   : > { %v1581_v34 = vadd.f32 %v1493_v2, %v1337_v51  ;;  %v787_v30 = vadd.f32 %v710_v32, %v542_v54  ;;  %v1265_v39 = vrot.slane %v1147_v19, 1  ;;  %v1266_v60 = vrot.slane %v4994_v47, 1  ;;  %v5834_v2 = vld [vmem:[#allocation17_spill] sm:$0xff] }
 0x11f   : > { %v1391_v4 = vmul.f32 %v3826_v24, %v4830_v7  ;;  %v5004_v53 = vmul.f32 %v3826_v24, %v4841_v43  ;;  %v2303_v10 = vmul.f32 %v2271_v52, %v4941_v27  ;;  %v955_v50 = vsel %vm897_vm4, %v953_v9, %v954_v17 }
 0x120   : > { %v1649_v20 = vadd.f32 %v1617_v8, %v1581_v34  ;;  %v1624_v62 = vmul.f32 %v3829_v25, %v4997_v59  ;;  %v1032_v6 = vadd.f32 %v955_v50, %v787_v30  ;;  %v1267_v29 = vsel %vm652_vm3, %v1265_v39, %v1266_v60 }
 0x121   : > { %v1509_v12 = vrot.slane %v1391_v4, 2  ;;  %v1510_v38 = vrot.slane %v5004_v53, 2  ;;  %v2335_v56 = vadd.f32 %v2303_v10, %v5834_v2  ;;  %v1703_v27 = vmul.f32 %v3869_v44, %v4997_v59  ;;  %v5051_v2 = vld [vmem:[#allocation2 + $0x148] sm:$0x3] }
 0x122   : > { %v1893_v18 = vadd.f32 %v1805_v48, %v1649_v20  ;;  %v1704_v8 = vmul.f32 %v3869_v44, %v5010_v37  ;;  %v1100_v54 = vadd.f32 %v1068_v26, %v1032_v6  ;;  %v1947_v35 = vmul.f32 %v3901_v55, %v4997_v59 }
 0x123   : > { %v1511_v45 = vsel %vm897_vm4, %v1509_v12, %v1510_v38  ;;  %v1948_v61 = vmul.f32 %v3901_v55, %v5010_v37  ;;  %3305 = vmatmul.mubr.msk.f32.gmra.mrb[4].mxu1 %vm330_vm1, %v2335_v56  ;;  %v1821_v11 = vrot.slane %v1703_v27, 1  ;;  %v511_v51 = vmul.f32 %v3797_v14, %v4661_v36 }
 0x124   : > { %v2137_v58 = vadd.f32 %v2049_v41, %v1893_v18  ;;  %v1822_v48 = vrot.slane %v1704_v8, 1  ;;  %v1344_v1 = vadd.f32 %v1267_v29, %v1100_v54  ;;  %v2065_v21 = vrot.slane %v1947_v35, 2  ;;  %v5035_v41 = vld [vmem:[%s5788_s2] ss:$0 sm:$0xff] }
 0x125   : > { %v2066_v32 = vrot.slane %v1948_v61, 2  ;;  %v591_v26 = vmul.f32 %v3799_v15, %v4707_v33  ;;  %v3410_v9 = vpop.eup %3409  ;;  %v543_v34 = vadd.f32 %v5035_v41, %v511_v51  ;;  %v836_v53 = vmul.f32 %v3802_v16, %v4707_v33  ;;  %v5835_v8 = vld [vmem:[#allocation10_spill] sm:$0xff] }
 0x126   : > { %v5029_v19 = vmul.f32 0.5, %v2137_v58  ;;  %v2201_v47 = vmul.f32 0.70710677, %v2137_v58  ;;  %v1823_v52 = vsel %vm652_vm3, %v1821_v11, %v1822_v48  ;;  %v2264_v36 = vadd.f32 1.0, %v3410_v9 }
 0x127   : > { %v1588_v30 = vadd.f32 %v1511_v45, %v1344_v1  ;;  %v2067_v39 = vsel %vm897_vm4, %v2065_v21, %v2066_v32  ;;  %v711_v4 = vrot.slane %v591_v26, 1  ;;  %v1069_v10 = vmul.f32 %v3821_v22, %v4841_v43 }
 0x128   : > { %3411 = verf.f32 %v2201_v47  ;;  %v1149_v20 = vmul.f32 %v3823_v23, %v4874_v28  ;;  %v2296_v50 = vmul.f32 %v2264_v36, %v4974_v0  ;;  %v1393_v12 = vmul.f32 %v3826_v24, %v4874_v28 }
 0x129   : > { %v1656_v6 = vadd.f32 %v1624_v62, %v1588_v30  ;;  %v712_v29 = vsel %vm652_vm3, %v709_v46, %v711_v4  ;;  %v956_v33 = vrot.slane %v836_v53, 2  ;;  %v1625_v27 = vmul.f32 %v3829_v25, %v5010_v37 }
 0x12a   : > { %v788_v56 = vadd.f32 %v712_v29, %v543_v34  ;;  %v1268_v18 = vrot.slane %v1149_v20, 1  ;;  %v2328_v54 = vadd.f32 %v2296_v50, %v5835_v8  ;;  %v1512_v0 = vrot.slane %v1393_v12, 2 }
 0x12b   : > { %v1900_v45 = vadd.f32 %v1823_v52, %v1656_v6  ;;  %v1705_v5 = vmul.f32 %v3869_v44, %v5051_v2  ;;  %v957_v46 = vsel %vm897_vm4, %v954_v17, %v956_v33  ;;  %v1949_v35 = vmul.f32 %v3901_v55, %v5051_v2  ;;  %v5096_v33 = vld [vmem:[#allocation2 + $0x150] sm:$0xff] }
 0x12c   : > { %v1269_v62 = vsel %vm652_vm3, %v1266_v60, %v1268_v18  ;;  %v512_v61 = vmul.f32 %v3797_v14, %v4830_v7  ;;  %3295 = vmatprep.mubr.msk.f32.mxu0 %vm330_vm1, %v2328_v54  ;;  %v1033_v11 = vadd.f32 %v957_v46, %v788_v56  ;;  %v1513_v51 = vsel %vm897_vm4, %v1510_v38, %v1512_v0 }
 0x12d   : > { %v2144_v58 = vadd.f32 %v2067_v39, %v1900_v45  ;;  %v1824_v1 = vrot.slane %v1705_v5, 1  ;;  %v2068_v21 = vrot.slane %v1949_v35, 2  ;;  %v592_v17 = vmul.f32 %v3799_v15, %v4830_v7  ;;  %v5109_v35 = vld [vmem:[#allocation2 + $0x158] sm:$0xff] }
 0x12e   : > { %v544_v26 = vadd.f32 %v5035_v41, %v512_v61  ;;  %v5071_v60 = vmul.f32 %v3799_v15, %v4841_v43  ;;  %v1101_v52 = vadd.f32 %v1069_v10, %v1033_v11  ;;  %v837_v39 = vmul.f32 %v3802_v16, %v4830_v7 }
 0x12f   : > { %v5073_v9 = vmul.f32 0.5, %v2144_v58  ;;  %v2208_v47 = vmul.f32 0.70710677, %v2144_v58  ;;  %v1825_v34 = vsel %vm652_vm3, %v1822_v48, %v1824_v1  ;;  %v2069_v36 = vsel %vm897_vm4, %v2066_v32, %v2068_v21  ;;  %v5836_v1 = vld [vmem:[#allocation11_spill] sm:$0xff] }
 0x130   : > { %v713_v38 = vrot.slane %v592_v17, 1  ;;  %v714_v30 = vrot.slane %v5071_v60, 1  ;;  %v1345_v4 = vadd.f32 %v1269_v62, %v1101_v52  ;;  %v5082_v53 = vmul.f32 %v3802_v16, %v4841_v43 }
 0x131   : > { %3413 = verf.f32 %v2208_v47  ;;  %v1070_v20 = vmul.f32 %v3821_v22, %v4997_v59  ;;  %v958_v32 = vrot.slane %v837_v39, 2  ;;  %v1150_v50 = vmul.f32 %v3823_v23, %v4997_v59 }
 0x132   : > { %v3412_v10 = vpop.eup %3411  ;;  %v715_v48 = vsel %vm652_vm3, %v713_v38, %v714_v30  ;;  %v5093_v7 = vmul.f32 %v3823_v23, %v5010_v37  ;;  %v1589_v29 = vadd.f32 %v1513_v51, %v1345_v4  ;;  %v959_v56 = vrot.slane %v5082_v53, 2 }
 0x133   : > { %v2265_v6 = vadd.f32 1.0, %v3412_v10  ;;  %v789_v12 = vadd.f32 %v715_v48, %v544_v26  ;;  %v1270_v18 = vrot.slane %v1150_v50, 1  ;;  %v1394_v54 = vmul.f32 %v3826_v24, %v4997_v59 }
 0x134   : > { %v1271_v8 = vrot.slane %v5093_v7, 1  ;;  %v5103_v45 = vmul.f32 %v3826_v24, %v5010_v37  ;;  %v1657_v5 = vadd.f32 %v1625_v27, %v1589_v29  ;;  %v960_v46 = vsel %vm897_vm4, %v958_v32, %v959_v56 }
 0x135   : > { %v2297_v0 = vmul.f32 %v2265_v6, %v5029_v19  ;;  %v1626_v62 = vmul.f32 %v3829_v25, %v5096_v33  ;;  %v1034_v61 = vadd.f32 %v960_v46, %v789_v12  ;;  %v1514_v11 = vrot.slane %v1394_v54, 2 }
 0x136   : > { %v1272_v58 = vsel %vm652_vm3, %v1270_v18, %v1271_v8  ;;  %v1515_v51 = vrot.slane %v5103_v45, 2  ;;  %v1901_v26 = vadd.f32 %v1825_v34, %v1657_v5  ;;  %v1706_v19 = vmul.f32 %v3869_v44, %v5096_v33  ;;  %v5123_v39 = vpop.f32.mrb[0].mxu0 }
 0x137   : > { %v2329_v21 = vadd.f32 %v2297_v0, %v5836_v1  ;;  %v1707_v27 = vmul.f32 %v3869_v44, %v5109_v35  ;;  %v1102_v17 = vadd.f32 %v1070_v20, %v1034_v61  ;;  %v1950_v52 = vmul.f32 %v3901_v55, %v5096_v33  ;;  %v5128_v48 = vpop.f32.mrb[1].mxu0 }
 0x138   : > { %v1516_v47 = vsel %vm897_vm4, %v1514_v11, %v1515_v51  ;;  %v1951_v38 = vmul.f32 %v3901_v55, %v5109_v35  ;;  %v2145_v34 = vadd.f32 %v2069_v36, %v1901_v26  ;;  %v1826_v4 = vrot.slane %v1706_v19, 1  ;;  %v5149_v26 = vld [vmem:[#allocation2 + $0x160] sm:$0x3] }
 0x139   : > { %3296 = vmatmul.mubr.msk.f32.gmra.mrb[14].mxu0 %vm330_vm1, %v2329_v21  ;;  %v1827_v53 = vrot.slane %v1707_v27, 1  ;;  %v513_v10 = vmul.f32 %v3797_v14, %v4841_v43  ;;  %v1346_v20 = vadd.f32 %v1272_v58, %v1102_v17  ;;  %v2070_v32 = vrot.slane %v1950_v52, 2 }
 0x13a   : > { %v2071_v50 = vrot.slane %v1951_v38, 2  ;;  %v594_v7 = vmul.f32 %v3799_v15, %v4874_v28  ;;  %v5132_v29 = vmul.f32 0.5, %v2145_v34  ;;  %v2209_v12 = vmul.f32 0.70710677, %v2145_v34 }
 0x13b   : > { %v3414_v6 = vpop.eup %3413  ;;  %v1828_v18 = vsel %vm652_vm3, %v1826_v4, %v1827_v53  ;;  %v545_v36 = vadd.f32 %v5035_v41, %v513_v10  ;;  %v1590_v45 = vadd.f32 %v1516_v47, %v1346_v20  ;;  %v839_v5 = vmul.f32 %v3802_v16, %v4874_v28 }
 0x13c   : > { %v2272_v54 = vadd.f32 1.0, %v3414_v6  ;;  %v2072_v43 = vsel %vm897_vm4, %v2070_v32, %v2071_v50  ;;  %v716_v0 = vrot.slane %v594_v7, 1  ;;  %3415 = verf.f32 %v2209_v12 }
 0x13d   : > { %v1071_v46 = vmul.f32 %v3821_v22, %v5010_v37  ;;  %v1152_v61 = vmul.f32 %v3823_v23, %v5051_v2  ;;  %v1658_v11 = vadd.f32 %v1626_v62, %v1590_v45  ;;  %v1396_v21 = vmul.f32 %v3826_v24, %v5051_v2 }
 0x13e   : > { %v2304_v58 = vmul.f32 %v2272_v54, %v5073_v9  ;;  %v717_v1 = vsel %vm652_vm3, %v714_v30, %v716_v0  ;;  %v961_v28 = vrot.slane %v839_v5, 2  ;;  %v1627_v17 = vmul.f32 %v3829_v25, %v5109_v35 }
 0x13f   : > { %v790_v19 = vadd.f32 %v717_v1, %v545_v36  ;;  %v1273_v27 = vrot.slane %v1152_v61, 1  ;;  %v1902_v52 = vadd.f32 %v1828_v18, %v1658_v11  ;;  %v1517_v9 = vrot.slane %v1396_v21, 2 }
 0x140   : > { %v2336_v47 = vadd.f32 %v2304_v58, %v4131_v49  ;;  %v1708_v60 = vmul.f32 %v3869_v44, %v5149_v26  ;;  %v962_v30 = vsel %vm897_vm4, %v959_v56, %v961_v28  ;;  %v1952_v38 = vmul.f32 %v3901_v55, %v5149_v26  ;;  %v5194_v28 = vld [vmem:[#allocation2 + $0x168] sm:$0xff] }
 0x141   : > { %v1274_v62 = vsel %vm652_vm3, %v1271_v8, %v1273_v27  ;;  %v514_v34 = vmul.f32 %v3797_v14, %v4997_v59  ;;  %v2146_v4 = vadd.f32 %v2072_v43, %v1902_v52  ;;  %v1035_v10 = vadd.f32 %v962_v30, %v790_v19 }
 0x142   : > { %3307 = vmatprep.mubr.msk.f32.mxu1 %vm330_vm1, %v2336_v47  ;;  %v1518_v49 = vsel %vm897_vm4, %v1515_v51, %v1517_v9  ;;  %v1829_v20 = vrot.slane %v1708_v60, 1  ;;  %v2073_v32 = vrot.slane %v1952_v38, 2  ;;  %v595_v56 = vmul.f32 %v3799_v15, %v4997_v59 }
 0x143   : > { %v546_v7 = vadd.f32 %v5035_v41, %v514_v34  ;;  %v5169_v8 = vmul.f32 %v3799_v15, %v5010_v37  ;;  %v5171_v6 = vmul.f32 0.5, %v2146_v4  ;;  %v2210_v12 = vmul.f32 0.70710677, %v2146_v4  ;;  %v5207_v34 = vld [vmem:[#allocation2 + $0x170] sm:$0xff] }
 0x144   : > { %v1103_v18 = vadd.f32 %v1071_v46, %v1035_v10  ;;  %v1830_v36 = vsel %vm652_vm3, %v1827_v53, %v1829_v20  ;;  %v2074_v54 = vsel %vm897_vm4, %v2071_v50, %v2073_v32  ;;  %v718_v51 = vrot.slane %v595_v56, 1 }
 0x145   : > { %v719_v45 = vrot.slane %v5169_v8, 1  ;;  %v840_v43 = vmul.f32 %v3802_v16, %v4997_v59  ;;  %3417 = verf.f32 %v2210_v12  ;;  %v5180_v5 = vmul.f32 %v3802_v16, %v5010_v37 }
 0x146   : > { %v1347_v0 = vadd.f32 %v1274_v62, %v1103_v18  ;;  %v1072_v61 = vmul.f32 %v3821_v22, %v5096_v33  ;;  %v3416_v46 = vpop.eup %3415  ;;  %v1153_v58 = vmul.f32 %v3823_v23, %v5096_v33  ;;  %v5191_v59 = vmul.f32 %v3823_v23, %v5109_v35 }
 0x147   : > { %v720_v53 = vsel %vm652_vm3, %v718_v51, %v719_v45  ;;  %v963_v50 = vrot.slane %v840_v43, 2  ;;  %v2273_v11 = vadd.f32 1.0, %v3416_v46  ;;  %v964_v19 = vrot.slane %v5180_v5, 2 }
 0x148   : > { %v1591_v1 = vadd.f32 %v1518_v49, %v1347_v0  ;;  %v791_v21 = vadd.f32 %v720_v53, %v546_v7  ;;  %v1275_v27 = vrot.slane %v1153_v58, 1  ;;  %v1276_v47 = vrot.slane %v5191_v59, 1 }
 0x149   : > { %v1397_v52 = vmul.f32 %v3826_v24, %v5096_v33  ;;  %v5201_v9 = vmul.f32 %v3826_v24, %v5109_v35  ;;  %v2305_v60 = vmul.f32 %v2273_v11, %v5132_v29  ;;  %v965_v62 = vsel %vm897_vm4, %v963_v50, %v964_v19 }
 0x14a   : > { %v1659_v30 = vadd.f32 %v1627_v17, %v1591_v1  ;;  %v1628_v38 = vmul.f32 %v3829_v25, %v5194_v28  ;;  %v1036_v4 = vadd.f32 %v965_v62, %v791_v21  ;;  %v1277_v10 = vsel %vm652_vm3, %v1275_v27, %v1276_v47 }
 0x14b   : > { %v1519_v49 = vrot.slane %v1397_v52, 2  ;;  %v1520_v20 = vrot.slane %v5201_v9, 2  ;;  %v2337_v32 = vadd.f32 %v2305_v60, %v4134_v42  ;;  %v1709_v29 = vmul.f32 %v3869_v44, %v5194_v28 }
 0x14c   : > { %v1903_v7 = vadd.f32 %v1830_v36, %v1659_v30  ;;  %v1710_v17 = vmul.f32 %v3869_v44, %v5207_v34  ;;  %v1104_v56 = vadd.f32 %v1072_v61, %v1036_v4  ;;  %v1953_v18 = vmul.f32 %v3901_v55, %v5194_v28 }
 0x14d   : > { %v1521_v12 = vsel %vm897_vm4, %v1519_v49, %v1520_v20  ;;  %v1954_v51 = vmul.f32 %v3901_v55, %v5207_v34  ;;  %3308 = vmatmul.mubr.msk.f32.gmra.mrb[6].mxu1 %vm330_vm1, %v2337_v32  ;;  %v1831_v42 = vrot.slane %v1709_v29, 1  ;;  %v515_v0 = vmul.f32 %v3797_v14, %v5010_v37 }
 0x14e   : > { %v2147_v43 = vadd.f32 %v2074_v54, %v1903_v7  ;;  %v1832_v36 = vrot.slane %v1710_v17, 1  ;;  %v1348_v5 = vadd.f32 %v1277_v10, %v1104_v56  ;;  %v2075_v46 = vrot.slane %v1953_v18, 2  ;;  %v5247_v7 = vld [vmem:[#allocation2 + $0x178] sm:$0x3] }
 0x14f   : > { %v2076_v53 = vrot.slane %v1954_v51, 2  ;;  %v597_v61 = vmul.f32 %v3799_v15, %v5051_v2  ;;  %v5226_v50 = vpop.f32.mrb[2].mxu0  ;;  %v3418_v58 = vpop.eup %3417  ;;  %v547_v54 = vadd.f32 %v5035_v41, %v515_v0  ;;  %v842_v60 = vmul.f32 %v3802_v16, %v5051_v2 }
 0x150   : > { %v5228_v59 = vmul.f32 0.5, %v2147_v43  ;;  %v2211_v11 = vmul.f32 0.70710677, %v2147_v43  ;;  %v1833_v1 = vsel %vm652_vm3, %v1831_v42, %v1832_v36  ;;  %v5232_v21 = vpop.f32.mrb[3].mxu0  ;;  %v2274_v27 = vadd.f32 1.0, %v3418_v58 }
 0x151   : > { %v1592_v37 = vadd.f32 %v1521_v12, %v1348_v5  ;;  %v2077_v52 = vsel %vm897_vm4, %v2075_v46, %v2076_v53  ;;  %v721_v9 = vrot.slane %v597_v61, 1  ;;  %v1073_v30 = vmul.f32 %v3821_v22, %v5109_v35 }
 0x152   : > { %3419 = verf.f32 %v2211_v11  ;;  %v1155_v62 = vmul.f32 %v3823_v23, %v5149_v26  ;;  %v2306_v4 = vmul.f32 %v2274_v27, %v5171_v6  ;;  %v1399_v32 = vmul.f32 %v3826_v24, %v5149_v26 }
 0x153   : > { %v1660_v10 = vadd.f32 %v1628_v38, %v1592_v37  ;;  %v722_v49 = vsel %vm652_vm3, %v719_v45, %v721_v9  ;;  %v966_v2 = vrot.slane %v842_v60, 2  ;;  %v1629_v56 = vmul.f32 %v3829_v25, %v5207_v34 }
 0x154   : > { %v792_v29 = vadd.f32 %v722_v49, %v547_v54  ;;  %v1278_v17 = vrot.slane %v1155_v62, 1  ;;  %v2338_v12 = vadd.f32 %v2306_v4, %v4331_v40  ;;  %v1522_v6 = vrot.slane %v1399_v32, 2 }
 0x155   : > { %v1904_v18 = vadd.f32 %v1833_v1, %v1660_v10  ;;  %v1711_v8 = vmul.f32 %v3869_v44, %v5247_v7  ;;  %v967_v45 = vsel %vm897_vm4, %v964_v19, %v966_v2  ;;  %v1955_v51 = vmul.f32 %v3901_v55, %v5247_v7  ;;  %v5290_v2 = vld [vmem:[#allocation2 + $0x180] sm:$0xff] }
 0x156   : > { %v1279_v38 = vsel %vm652_vm3, %v1276_v47, %v1278_v17  ;;  %v516_v43 = vmul.f32 %v3797_v14, %v5096_v33  ;;  %3310 = vmatprep.mubr.msk.f32.mxu1 %vm330_vm1, %v2338_v12  ;;  %v1037_v0 = vadd.f32 %v967_v45, %v792_v29  ;;  %v1523_v40 = vsel %vm897_vm4, %v1520_v20, %v1522_v6 }
 0x157   : > { %v2148_v42 = vadd.f32 %v2077_v52, %v1904_v18  ;;  %v1834_v5 = vrot.slane %v1711_v8, 1  ;;  %v2078_v46 = vrot.slane %v1955_v51, 2  ;;  %v598_v19 = vmul.f32 %v3799_v15, %v5096_v33 }
 0x158   : > { %v548_v61 = vadd.f32 %v5035_v41, %v516_v43  ;;  %v5267_v47 = vmul.f32 %v3799_v15, %v5109_v35  ;;  %v1105_v1 = vadd.f32 %v1073_v30, %v1037_v0  ;;  %v843_v52 = vmul.f32 %v3802_v16, %v5096_v33  ;;  %v5303_v43 = vld [vmem:[#allocation2 + $0x188] sm:$0xff] }
 0x159   : > { %v5269_v58 = vmul.f32 0.5, %v2148_v42  ;;  %v2212_v11 = vmul.f32 0.70710677, %v2148_v42  ;;  %v1835_v54 = vsel %vm652_vm3, %v1832_v36, %v1834_v5  ;;  %v2079_v27 = vsel %vm897_vm4, %v2076_v53, %v2078_v46 }
 0x15a   : > { %v723_v20 = vrot.slane %v598_v19, 1  ;;  %v724_v37 = vrot.slane %v5267_v47, 1  ;;  %v1349_v9 = vadd.f32 %v1279_v38, %v1105_v1  ;;  %v5278_v60 = vmul.f32 %v3802_v16, %v5109_v35 }
 0x15b   : > { %3421 = verf.f32 %v2212_v11  ;;  %v1074_v62 = vmul.f32 %v3821_v22, %v5194_v28  ;;  %v968_v4 = vrot.slane %v843_v52, 2  ;;  %v1156_v53 = vmul.f32 %v3823_v23, %v5194_v28 }
 0x15c   : > { %v3420_v30 = vpop.eup %3419  ;;  %v725_v36 = vsel %vm652_vm3, %v723_v20, %v724_v37  ;;  %v5287_v10 = vmul.f32 %v3823_v23, %v5207_v34  ;;  %v1593_v49 = vadd.f32 %v1523_v40, %v1349_v9  ;;  %v969_v29 = vrot.slane %v5278_v60, 2 }
 0x15d   : > { %v2275_v33 = vadd.f32 1.0, %v3420_v30  ;;  %v793_v32 = vadd.f32 %v725_v36, %v548_v61  ;;  %v1280_v17 = vrot.slane %v1156_v53, 1  ;;  %v1400_v18 = vmul.f32 %v3826_v24, %v5194_v28 }
 0x15e   : > { %v1281_v12 = vrot.slane %v5287_v10, 1  ;;  %v5297_v6 = vmul.f32 %v3826_v24, %v5207_v34  ;;  %v1661_v45 = vadd.f32 %v1629_v56, %v1593_v49  ;;  %v970_v38 = vsel %vm897_vm4, %v968_v4, %v969_v29 }
 0x15f   : > { %v2307_v8 = vmul.f32 %v2275_v33, %v5228_v59  ;;  %v1630_v51 = vmul.f32 %v3829_v25, %v5290_v2  ;;  %v1038_v42 = vadd.f32 %v970_v38, %v793_v32  ;;  %v1524_v40 = vrot.slane %v1400_v18, 2 }
 0x160   : > { %v1282_v0 = vsel %vm652_vm3, %v1280_v17, %v1281_v12  ;;  %v1525_v5 = vrot.slane %v5297_v6, 2  ;;  %v1905_v61 = vadd.f32 %v1835_v54, %v1661_v45  ;;  %v1712_v59 = vmul.f32 %v3869_v44, %v5290_v2 }
 0x161   : > { %v2339_v46 = vadd.f32 %v2307_v8, %v4334_v3  ;;  %v1713_v56 = vmul.f32 %v3869_v44, %v5303_v43  ;;  %v1106_v19 = vadd.f32 %v1074_v62, %v1038_v42  ;;  %v1956_v11 = vmul.f32 %v3901_v55, %v5290_v2  ;;  %v5324_v9 = vpop.f32.mrb[4].mxu0 }
 0x162   : > { %v1526_v47 = vsel %vm897_vm4, %v1524_v40, %v1525_v5  ;;  %v5319_v1 = vmul.f32 %v3901_v55, %v5303_v43  ;;  %v2149_v3 = vadd.f32 %v2079_v27, %v1905_v61  ;;  %v1836_v54 = vrot.slane %v1712_v59, 1  ;;  %v5329_v4 = vpop.f32.mrb[5].mxu0  ;;  %v5344_v40 = vld [vmem:[#allocation2 + $0x190] sm:$0x3] }
 0x163   : > { %3311 = vmatmul.mubr.msk.f32.gmra.mrb[8].mxu1 %vm330_vm1, %v2339_v46  ;;  %v1837_v20 = vrot.slane %v1713_v56, 1  ;;  %v517_v52 = vmul.f32 %v3797_v14, %v5109_v35  ;;  %v1350_v60 = vadd.f32 %v1282_v0, %v1106_v19  ;;  %v2080_v62 = vrot.slane %v1956_v11, 2 }
 0x164   : > { %v2081_v30 = vrot.slane %v5319_v1, 2  ;;  %v600_v36 = vmul.f32 %v3799_v15, %v5149_v26  ;;  %v2213_v33 = vmul.f32 0.70710677, %v2149_v3  ;;  %v845_v6 = vmul.f32 %v3802_v16, %v5149_v26 }
 0x165   : > { %v3422_v53 = vpop.eup %3421  ;;  %v549_v27 = vadd.f32 %v5035_v41, %v517_v52  ;;  %v1594_v32 = vadd.f32 %v1526_v47, %v1350_v60  ;;  %v1838_v17 = vsel %vm652_vm3, %v1836_v54, %v1837_v20  ;;  %v1158_v8 = vmul.f32 %v3823_v23, %v5247_v7 }
 0x166   : > { %v2276_v49 = vadd.f32 1.0, %v3422_v53  ;;  %v726_v35 = vrot.slane %v600_v36, 1  ;;  %3423 = verf.f32 %v2213_v33  ;;  %v2082_v18 = vsel %vm897_vm4, %v2080_v62, %v2081_v30 }
 0x167   : > { %v1662_v38 = vadd.f32 %v1630_v51, %v1594_v32  ;;  %v1402_v0 = vmul.f32 %v3826_v24, %v5247_v7  ;;  %v971_v61 = vrot.slane %v845_v6, 2  ;;  %v1075_v59 = vmul.f32 %v3821_v22, %v5207_v34 }
 0x168   : > { %v2308_v45 = vmul.f32 %v2276_v49, %v5269_v58  ;;  %v727_v42 = vsel %vm652_vm3, %v724_v37, %v726_v35  ;;  %v1283_v56 = vrot.slane %v1158_v8, 1  ;;  %v1714_v58 = vmul.f32 %v3869_v44, %v5344_v40 }
 0x169   : > { %v794_v46 = vadd.f32 %v727_v42, %v549_v27  ;;  %v1906_v19 = vadd.f32 %v1838_v17, %v1662_v38  ;;  %v1527_v47 = vrot.slane %v1402_v0, 2  ;;  %v2181_v51 = vmul.f32 0.5, %v2149_v3 }
 0x16a   : > { %v2340_v26 = vadd.f32 %v2308_v45, %v4465_v57  ;;  %v972_v37 = vsel %vm897_vm4, %v969_v29, %v971_v61  ;;  %v1958_v11 = vmul.f32 %v3901_v55, %v5344_v40  ;;  %v518_v54 = vmul.f32 %v3797_v14, %v5194_v28 }
 0x16b   : > { %v2150_v52 = vadd.f32 %v2082_v18, %v1906_v19  ;;  %v1039_v60 = vadd.f32 %v972_v37, %v794_v46  ;;  %v1631_v57 = vmul.f32 %v3829_v25, %v5303_v43  ;;  %v1839_v62 = vrot.slane %v1714_v58, 1 }
 0x16c   : > { %3313 = vmatprep.mubr.msk.f32.mxu1 %vm330_vm1, %v2340_v26  ;;  %v1284_v3 = vsel %vm652_vm3, %v1281_v12, %v1283_v56  ;;  %v1528_v29 = vsel %vm897_vm4, %v1525_v5, %v1527_v47  ;;  %v601_v36 = vmul.f32 %v3799_v15, %v5194_v28  ;;  %v5367_v53 = vmul.f32 %v3799_v15, %v5207_v34  ;;  %v5390_v56 = vld [vmem:[#allocation2 + $0x1a0] sm:$0xff] }
 0x16d   : > { %v2214_v33 = vmul.f32 0.70710677, %v2150_v52  ;;  %v1107_v27 = vadd.f32 %v1075_v59, %v1039_v60  ;;  %v2083_v49 = vrot.slane %v1958_v11, 2  ;;  %v550_v32 = vadd.f32 %v5035_v41, %v518_v54  ;;  %v470_v59 = vld [vmem:[#allocation2 + $0x198] sm:$0xff] }
 0x16e   : > { %v1840_v17 = vsel %vm652_vm3, %v1837_v20, %v1839_v62  ;;  %v728_v35 = vrot.slane %v601_v36, 1  ;;  %v729_v10 = vrot.slane %v5367_v53, 1  ;;  %v846_v12 = vmul.f32 %v3802_v16, %v5194_v28  ;;  %v5837_v36 = vld [vmem:[#allocation18_spill] sm:$0xff] }
 0x16f   : > { %3425 = verf.f32 %v2214_v33  ;;  %v1351_v5 = vadd.f32 %v1284_v3, %v1107_v27  ;;  %v5376_v18 = vmul.f32 %v3802_v16, %v5207_v34  ;;  %v1076_v6 = vmul.f32 %v3821_v22, %v5290_v2 }
 0x170   : > { %v3424_v8 = vpop.eup %3423  ;;  %v730_v20 = vsel %vm652_vm3, %v728_v35, %v729_v10  ;;  %v973_v45 = vrot.slane %v846_v12, 2  ;;  %v1159_v38 = vmul.f32 %v3823_v23, %v5290_v2  ;;  %v5387_v28 = vmul.f32 %v3823_v23, %v5303_v43 }
 0x171   : > { %v2277_v42 = vadd.f32 1.0, %v3424_v8  ;;  %v1595_v0 = vadd.f32 %v1528_v29, %v1351_v5  ;;  %v795_v46 = vadd.f32 %v730_v20, %v550_v32  ;;  %v974_v61 = vrot.slane %v5376_v18, 2 }
 0x172   : > { %v1285_v26 = vrot.slane %v1159_v38, 1  ;;  %v1286_v19 = vrot.slane %v5387_v28, 1  ;;  %v1403_v47 = vmul.f32 %v3826_v24, %v5290_v2  ;;  %v5397_v58 = vmul.f32 %v3826_v24, %v5303_v43 }
 0x173   : > { %v2309_v37 = vmul.f32 %v2277_v42, %v2181_v51  ;;  %v1663_v11 = vadd.f32 %v1631_v57, %v1595_v0  ;;  %v2084_v54 = vsel %vm897_vm4, %v2081_v30, %v2083_v49  ;;  %v975_v60 = vsel %vm897_vm4, %v973_v45, %v974_v61 }
 0x174   : > { %v1040_v62 = vadd.f32 %v975_v60, %v795_v46  ;;  %v1287_v3 = vsel %vm652_vm3, %v1285_v26, %v1286_v19  ;;  %v1529_v29 = vrot.slane %v1403_v47, 2  ;;  %v1530_v2 = vrot.slane %v5397_v58, 2 }
 0x175   : > { %v2341_v33 = vadd.f32 %v2309_v37, %v5837_v36  ;;  %v1907_v27 = vadd.f32 %v1840_v17, %v1663_v11  ;;  %v1715_v51 = vmul.f32 %v3869_v44, %v470_v59  ;;  %v5411_v1 = vmul.f32 %v3869_v44, %v5390_v56 }
 0x176   : > { %v1108_v30 = vadd.f32 %v1076_v6, %v1040_v62  ;;  %v1531_v57 = vsel %vm897_vm4, %v1529_v29, %v1530_v2  ;;  %v1959_v49 = vmul.f32 %v3901_v55, %v470_v59  ;;  %v5417_v32 = vmul.f32 %v3901_v55, %v5390_v56  ;;  %v5445_v62 = vld [vmem:[%s5790_s4] ss:$0 sm:$0xff] }
 0x177   : > { %3314 = vmatmul.mubr.msk.f32.gmra.mrb[10].mxu1 %vm330_vm1, %v2341_v33  ;;  %v2151_v35 = vadd.f32 %v2084_v54, %v1907_v27  ;;  %v1841_v12 = vrot.slane %v1715_v51, 1  ;;  %v1842_v17 = vrot.slane %v5411_v1, 1  ;;  %v519_v5 = vmul.f32 %v3797_v14, %v5207_v34  ;;  %v3285_v45 = vpop.f32.mrb[6].mxu0  ;;  %v472_v54 = vld [vmem:[#allocation2 + $0x1a8] sm:$0x3] }
 0x178   : > { %v2182_v18 = vmul.f32 0.5, %v2150_v52  ;;  %v1352_v8 = vadd.f32 %v1287_v3, %v1108_v30  ;;  %v1632_v6 = vmul.f32 %v3829_v25, %v470_v59  ;;  %v603_v20 = vmul.f32 %v3799_v15, %v5247_v7  ;;  %v5428_v47 = vpop.f32.mrb[7].mxu0 }
 0x179   : > { %v3426_v38 = vpop.eup %3425  ;;  %v2215_v42 = vmul.f32 0.70710677, %v2151_v35  ;;  %v2085_v0 = vrot.slane %v1959_v49, 2  ;;  %v2086_v46 = vrot.slane %v5417_v32, 2  ;;  %v551_v26 = vadd.f32 %v5035_v41, %v519_v5 }
 0x17a   : > { %v2278_v58 = vadd.f32 1.0, %v3426_v38  ;;  %v1596_v37 = vadd.f32 %v1531_v57, %v1352_v8  ;;  %v731_v14 = vrot.slane %v603_v20, 1  ;;  %v1843_v34 = vsel %vm652_vm3, %v1841_v12, %v1842_v17 }
 0x17b   : > { %3427 = verf.f32 %v2215_v42  ;;  %v848_v15 = vmul.f32 %v3802_v16, %v5247_v7  ;;  %v1161_v52 = vmul.f32 %v3823_v23, %v5344_v40  ;;  %v1405_v60 = vmul.f32 %v3826_v24, %v5344_v40 }
 0x17c   : > { %v2310_v59 = vmul.f32 %v2278_v58, %v2182_v18  ;;  %v1664_v11 = vadd.f32 %v1632_v6, %v1596_v37  ;;  %v732_v41 = vsel %vm652_vm3, %v729_v10, %v731_v14  ;;  %v2087_v16 = vsel %vm897_vm4, %v2085_v0, %v2086_v46 }
 0x17d   : > { %v796_v7 = vadd.f32 %v732_v41, %v551_v26  ;;  %v976_v3 = vrot.slane %v848_v15, 2  ;;  %v1288_v23 = vrot.slane %v1161_v52, 1  ;;  %v1077_v53 = vmul.f32 %v3821_v22, %v5303_v43 }
 0x17e   : > { %v2342_v29 = vadd.f32 %v2310_v59, %v4577_v63  ;;  %v1908_v36 = vadd.f32 %v1843_v34, %v1664_v11  ;;  %v1532_v10 = vrot.slane %v1405_v60, 2  ;;  %v1717_v24 = vmul.f32 %v3869_v44, %v472_v54 }
 0x17f   : > { %v977_v33 = vsel %vm897_vm4, %v974_v61, %v976_v3  ;;  %v1961_v40 = vmul.f32 %v3901_v55, %v472_v54  ;;  %v2526_v27 = vadd.f32 %v5123_v39, %v5445_v62  ;;  %v2183_v57 = vmul.f32 0.5, %v2151_v35 }
 0x180   : > { %3316 = vmatprep.mubr.msk.f32.mxu1 %vm330_vm1, %v2342_v29  ;;  %v2152_v51 = vadd.f32 %v2087_v16, %v1908_v36  ;;  %v1041_v30 = vadd.f32 %v977_v33, %v796_v7  ;;  %v1289_v63 = vsel %vm652_vm3, %v1286_v19, %v1288_v23  ;;  %v2521_v43 = vadd.f32 %v5445_v62, %v5128_v48 }
 0x181   : > { %v2712_v22 = vmul.f32 0.70710677, %v2526_v27  ;;  %v1533_v55 = vsel %vm897_vm4, %v1530_v2, %v1532_v10  ;;  %v1633_v39 = vmul.f32 %v3829_v25, %v5390_v56  ;;  %v1844_v49 = vrot.slane %v1717_v24, 1 }
 0x182   : > { %v2216_v61 = vmul.f32 0.70710677, %v2152_v51  ;;  %v1109_v44 = vadd.f32 %v1077_v53, %v1041_v30  ;;  %v2088_v32 = vrot.slane %v1961_v40, 2  ;;  %v2711_v12 = vmul.f32 0.70710677, %v2521_v43 }
 0x183   : > { %3429 = verf.f32 %v2712_v22  ;;  %v2536_v28 = vadd.f32 %v5226_v50, %v5445_v62  ;;  %v2531_v19 = vadd.f32 %v5445_v62, %v5232_v21  ;;  %v2546_v2 = vadd.f32 %v5324_v9, %v5445_v62 }
 0x184   : > { %3431 = verf.f32 %v2216_v61  ;;  %v1353_v35 = vadd.f32 %v1289_v63, %v1109_v44  ;;  %v5473_v25 = vadd.f32 %v5445_v62, %v5329_v4  ;;  %v5476_v56 = vadd.f32 %v3285_v45, %v5445_v62 }
 0x185   : > { %v3428_v48 = vpop.eup %3427  ;;  %3433 = verf.f32 %v2711_v12  ;;  %v2714_v8 = vmul.f32 0.70710677, %v2536_v28  ;;  %v1845_v50 = vsel %vm652_vm3, %v1842_v17, %v1844_v49  ;;  %v2713_v21 = vmul.f32 0.70710677, %v2531_v19 }
 0x186   : > { %v2279_v5 = vadd.f32 1.0, %v3428_v48  ;;  %v1597_v18 = vadd.f32 %v1533_v55, %v1353_v35  ;;  %v2716_v6 = vmul.f32 0.70710677, %v2546_v2  ;;  %v2089_v9 = vsel %vm897_vm4, %v2086_v46, %v2088_v32 }
 0x187   : > { %3435 = verf.f32 %v2714_v8  ;;  %v2715_v4 = vmul.f32 0.70710677, %v5473_v25  ;;  %v2718_v45 = vmul.f32 0.70710677, %v5476_v56  ;;  %v5487_v1 = vadd.f32 %v5445_v62, %v5428_v47 }
 0x188   : > { %v2311_v20 = vmul.f32 %v2279_v5, %v2183_v57  ;;  %v1665_v38 = vadd.f32 %v1633_v39, %v1597_v18  ;;  %3437 = verf.f32 %v2713_v21  ;;  %v2184_v58 = vmul.f32 0.5, %v2152_v51 }
 0x189   : > { %3439 = verf.f32 %v2716_v6  ;;  %v2717_v46 = vmul.f32 0.70710677, %v5487_v1  ;;  %v2680_v34 = vmul.f32 0.5, %v2526_v27  ;;  %v2679_v60 = vmul.f32 0.5, %v2521_v43 }
 0x18a   : > { %v2343_v42 = vadd.f32 %v2311_v20, %v4580_v13  ;;  %v1909_v0 = vadd.f32 %v1845_v50, %v1665_v38  ;;  %3441 = verf.f32 %v2715_v4  ;;  %v2682_v3 = vmul.f32 0.5, %v2536_v28 }
 0x18b   : > { %3443 = verf.f32 %v2718_v45  ;;  %v2681_v23 = vmul.f32 0.5, %v2531_v19  ;;  %v2684_v30 = vmul.f32 0.5, %v2546_v2  ;;  %v2683_v35 = vmul.f32 0.5, %v5473_v25 }
 0x18c   : > { %3317 = vmatmul.mubr.msk.f32.gmra.mrb[12].mxu1 %vm330_vm1, %v2343_v42  ;;  %v5490_v17 = vadd.f32 %v2089_v9, %v1909_v0  ;;  %3445 = verf.f32 %v2717_v46  ;;  %v2686_v5 = vmul.f32 0.5, %v5476_v56 }
 0x18d   : > { %v3430_v26 = vpop.eup %3429  ;;  %v3288_v37 = vpop.f32.mrb[8].mxu0 }
 0x18e   : > { %v3432_v14 = vpop.eup %3431  ;;  %v2217_v13 = vmul.f32 0.70710677, %v5490_v17  ;;  %v2776_v15 = vadd.f32 1.0, %v3430_v26  ;;  %v2560_v52 = vpop.f32.mrb[9].mxu0  ;;  %v5502_v11 = vadd.f32 %v3288_v37, %v5445_v62  ;;  %v2185_v25 = vmul.f32 0.5, %v5490_v17 }
 0x18f   : > { %v3434_v59 = vpop.eup %3433  ;;  %v2280_v47 = vadd.f32 1.0, %v3432_v14  ;;  %v5505_v54 = vadd.f32 %v5445_v62, %v2560_v52  ;;  %v2685_v17 = vmul.f32 0.5, %v5487_v1 }
 0x190   : > { %3447 = verf.f32 %v2217_v13  ;;  %v2808_v41 = vmul.f32 %v2776_v15, %v2680_v34  ;;  %v2775_v16 = vadd.f32 1.0, %v3434_v59  ;;  %v2720_v29 = vmul.f32 0.70710677, %v5502_v11 }
 0x191   : > { %v2312_v7 = vmul.f32 %v2280_v47, %v2184_v58  ;;  %v3436_v36 = vpop.eup %3435  ;;  %v2719_v24 = vmul.f32 0.70710677, %v5505_v54  ;;  %v2688_v34 = vmul.f32 0.5, %v5502_v11 }
 0x192   : > { %2840 = vst.msk [vmem:[%s5499_s29 + $0x8] sm:$0xff] %vm330_vm1, %v2808_v41  ;;  %v2872_v53 = vsel %vm330_vm1, %v2808_v41, 0.0  ;;  %v2943_v10 = vmul.f32 %v2808_v41, %v2808_v41  ;;  %v2807_v33 = vmul.f32 %v2775_v16, %v2679_v60  ;;  %v3438_v40 = vpop.eup %3437  ;;  %v2778_v51 = vadd.f32 1.0, %v3436_v36 }
 0x193   : > { %v2344_v27 = vadd.f32 %v2312_v7, %v4692_v31  ;;  %3449 = verf.f32 %v2720_v29  ;;  %v3440_v57 = vpop.eup %3439  ;;  %v2777_v61 = vadd.f32 1.0, %v3438_v40  ;;  %v2687_v41 = vmul.f32 0.5, %v5505_v54 }
 0x194   : > { %v2975_v63 = vsel %vm330_vm1, %v2943_v10, 0.0  ;;  %2839 = vst.msk [vmem:[%s5499_s29] sm:$0xff] %vm330_vm1, %v2807_v33  ;;  %v2871_v22 = vsel %vm330_vm1, %v2807_v33, 0.0  ;;  %v2942_v43 = vmul.f32 %v2807_v33, %v2807_v33  ;;  %v3442_v44 = vpop.eup %3441  ;;  %v2810_v39 = vmul.f32 %v2778_v51, %v2682_v3 }
 0x195   : > { %3319 = vmatprep.mubr.msk.f32.mxu1 %vm330_vm1, %v2344_v27  ;;  %v2873_v55 = vadd.f32 %v2872_v53, %v2871_v22  ;;  %v2780_v31 = vadd.f32 1.0, %v3440_v57  ;;  %3451 = verf.f32 %v2719_v24  ;;  %v3444_v49 = vpop.eup %3443  ;;  %v2809_v12 = vmul.f32 %v2777_v61, %v2681_v23  ;;  %v5838_v23 = vld [vmem:[#allocation19_spill] sm:$0xff] }
 0x196   : > { %v2974_v32 = vsel %vm330_vm1, %v2942_v43, 0.0  ;;  %v2779_v28 = vadd.f32 1.0, %v3442_v44  ;;  %2842 = vst.msk [vmem:[%s5499_s29 + $0x18] sm:$0xff] %vm330_vm1, %v2810_v39  ;;  %v2945_v48 = vmul.f32 %v2810_v39, %v2810_v39  ;;  %v2782_v21 = vadd.f32 1.0, %v3444_v49  ;;  %v3446_v6 = vpop.eup %3445 }
 0x197   : > { %v2976_v19 = vadd.f32 %v2975_v63, %v2974_v32  ;;  %v2812_v2 = vmul.f32 %v2780_v31, %v2684_v30  ;;  %2841 = vst.msk [vmem:[%s5499_s29 + $0x10] sm:$0xff] %vm330_vm1, %v2809_v12  ;;  %v2874_v18 = vsel %vm330_vm1, %v2809_v12, 0.0  ;;  %v2944_v8 = vmul.f32 %v2809_v12, %v2809_v12 }
 0x198   : > { %v2811_v50 = vmul.f32 %v2779_v28, %v2683_v35  ;;  %v2876_v20 = vsel %vm330_vm1, %v2810_v39, 0.0  ;;  %v2875_v38 = vadd.f32 %v2874_v18, %v2873_v55  ;;  %v2814_v0 = vmul.f32 %v2782_v21, %v2686_v5 }
 0x199   : > { %2844 = vst.msk [vmem:[%s5499_s29 + $0x28] sm:$0xff] %vm330_vm1, %v2812_v2  ;;  %v2947_v9 = vmul.f32 %v2812_v2, %v2812_v2  ;;  %v2977_v56 = vsel %vm330_vm1, %v2944_v8, 0.0  ;;  %v2979_v37 = vsel %vm330_vm1, %v2945_v48, 0.0  ;;  %v2781_v13 = vadd.f32 1.0, %v3446_v6 }
 0x19a   : > { %v3448_v4 = vpop.eup %3447  ;;  %2843 = vst.msk [vmem:[%s5499_s29 + $0x20] sm:$0xff] %vm330_vm1, %v2811_v50  ;;  %v2878_v45 = vsel %vm330_vm1, %v2811_v50, 0.0  ;;  %v2946_v42 = vmul.f32 %v2811_v50, %v2811_v50  ;;  %v2978_v26 = vadd.f32 %v2977_v56, %v2976_v19  ;;  %v2877_v58 = vadd.f32 %v2876_v20, %v2875_v38  ;;  %2846 = vst.msk [vmem:[%s5499_s29 + $0x38] sm:$0xff] %vm330_vm1, %v2814_v0 }
 0x19b   : > { %v2281_v46 = vadd.f32 1.0, %v3448_v4  ;;  %v2880_v60 = vsel %vm330_vm1, %v2812_v2, 0.0  ;;  %v2983_v1 = vsel %vm330_vm1, %v2947_v9, 0.0  ;;  %v2813_v16 = vmul.f32 %v2781_v13, %v2685_v17 }
 0x19c   : > { %v2981_v14 = vsel %vm330_vm1, %v2946_v42, 0.0  ;;  %v2879_v59 = vadd.f32 %v2878_v45, %v2877_v58  ;;  %v2980_v47 = vadd.f32 %v2979_v37, %v2978_v26  ;;  %v2949_v53 = vmul.f32 %v2814_v0, %v2814_v0 }
 0x19d   : > { %v3450_v15 = vpop.eup %3449  ;;  %v2313_v52 = vmul.f32 %v2281_v46, %v2185_v25  ;;  %2845 = vst.msk [vmem:[%s5499_s29 + $0x30] sm:$0xff] %vm330_vm1, %v2813_v16  ;;  %v2882_v11 = vsel %vm330_vm1, %v2813_v16, 0.0  ;;  %v2948_v33 = vmul.f32 %v2813_v16, %v2813_v16  ;;  %v2884_v51 = vsel %vm330_vm1, %v2814_v0, 0.0 }
 0x19e   : > { %v2784_v7 = vadd.f32 1.0, %v3450_v15  ;;  %v2982_v36 = vadd.f32 %v2981_v14, %v2980_v47  ;;  %v2881_v10 = vadd.f32 %v2880_v60, %v2879_v59  ;;  %v2987_v22 = vsel %vm330_vm1, %v2949_v53, 0.0 }
 0x19f   : > { %v3452_v3 = vpop.eup %3451  ;;  %v2345_v29 = vadd.f32 %v2313_v52, %v5838_v23  ;;  %v2985_v30 = vsel %vm330_vm1, %v2948_v33, 0.0 }
 0x1a0   : > { %v2816_v24 = vmul.f32 %v2784_v7, %v2688_v34  ;;  %v2783_v54 = vadd.f32 1.0, %v3452_v3  ;;  %v2883_v40 = vadd.f32 %v2882_v11, %v2881_v10  ;;  %v2984_v27 = vadd.f32 %v2983_v1, %v2982_v36 }
 0x1a1   : > { %3320 = vmatmul.mubr.msk.f32.gmra.mrb[14].mxu1 %vm330_vm1, %v2345_v29 }
 0x1a2   : > { %2848 = vst.msk [vmem:[%s5499_s29 + $0x48] sm:$0xff] %vm330_vm1, %v2816_v24  ;;  %v2815_v57 = vmul.f32 %v2783_v54, %v2687_v41  ;;  %v2986_v43 = vadd.f32 %v2985_v30, %v2984_v27  ;;  %v2885_v61 = vadd.f32 %v2884_v51, %v2883_v40  ;;  %v2951_v39 = vmul.f32 %v2816_v24, %v2816_v24 }
 0x1a3   : > { %v3300_v63 = vpop.f32.mrb[0].mxu1  ;;  %v2888_v19 = vsel %vm330_vm1, %v2816_v24, 0.0 }
 0x1a4   : > { %v2606_v44 = vadd.f32 %v3300_v63, %v5445_v62  ;;  %v2600_v55 = vpop.f32.mrb[1].mxu1  ;;  %2847 = vst.msk [vmem:[%s5499_s29 + $0x40] sm:$0xff] %vm330_vm1, %v2815_v57  ;;  %v2886_v31 = vsel %vm330_vm1, %v2815_v57, 0.0  ;;  %v2950_v49 = vmul.f32 %v2815_v57, %v2815_v57  ;;  %v2988_v35 = vadd.f32 %v2987_v22, %v2986_v43 }
 0x1a5   : > { %v2601_v32 = vadd.f32 %v5445_v62, %v2600_v55  ;;  %v2887_v12 = vadd.f32 %v2886_v31, %v2885_v61  ;;  %v2991_v8 = vsel %vm330_vm1, %v2951_v39, 0.0 }
 0x1a6   : > { %v2728_v28 = vmul.f32 0.70710677, %v2606_v44  ;;  %v2989_v48 = vsel %vm330_vm1, %v2950_v49, 0.0  ;;  %v2696_v21 = vmul.f32 0.5, %v2606_v44 }
 0x1a7   : > { %v2727_v2 = vmul.f32 0.70710677, %v2601_v32  ;;  %v2990_v5 = vadd.f32 %v2989_v48, %v2988_v35  ;;  %v2889_v18 = vadd.f32 %v2888_v19, %v2887_v12  ;;  %v2695_v25 = vmul.f32 0.5, %v2601_v32 }
 0x1a8   : > { %3453 = verf.f32 %v2728_v28 }
 0x1a9   : > { %3455 = verf.f32 %v2727_v2  ;;  %v2992_v50 = vadd.f32 %v2991_v8, %v2990_v5 }
 0x1b2   : > { %v3454_v6 = vpop.eup %3453 }
 0x1b3   : > { %v3456_v20 = vpop.eup %3455  ;;  %v2792_v38 = vadd.f32 1.0, %v3454_v6 }
 0x1b4   : > { %v2791_v9 = vadd.f32 1.0, %v3456_v20 }
 0x1b5   : > { %v5561_v4 = vmul.f32 %v2792_v38, %v2696_v21 }
 0x1b6   : > { %v5563_v56 = vmul.f32 %v2791_v9, %v2695_v25 }
 0x1b7   : > { %2856 = vst.msk [vmem:[%s5499_s29 + $0x88] sm:$0xff] %vm330_vm1, %v5561_v4 }
 0x1b8   : > { %2855 = vst.msk [vmem:[%s5499_s29 + $0x80] sm:$0xff] %vm330_vm1, %v5563_v56 }
 0x1b9   : > { %v3291_v45 = vpop.f32.mrb[10].mxu0 }
 0x1ba   : > { %v2576_v42 = vadd.f32 %v3291_v45, %v5445_v62  ;;  %v2570_v0 = vpop.f32.mrb[11].mxu0 }
 0x1bb   : > { %v2571_v46 = vadd.f32 %v5445_v62, %v2570_v0 }
 0x1bc   : > { %v2722_v26 = vmul.f32 0.70710677, %v2576_v42  ;;  %v2690_v14 = vmul.f32 0.5, %v2576_v42 }
 0x1bd   : > { %v2721_v58 = vmul.f32 0.70710677, %v2571_v46  ;;  %v2689_v34 = vmul.f32 0.5, %v2571_v46 }
 0x1be   : > { %3457 = verf.f32 %v2722_v26 }
 0x1bf   : > { %3459 = verf.f32 %v2721_v58 }
 0x1c8   : > { %v3458_v17 = vpop.eup %3457 }
 0x1c9   : > { %v3460_v37 = vpop.eup %3459  ;;  %v2786_v13 = vadd.f32 1.0, %v3458_v17 }
 0x1ca   : > { %v2785_v15 = vadd.f32 1.0, %v3460_v37 }
 0x1cb   : > { %v2818_v52 = vmul.f32 %v2786_v13, %v2690_v14 }
 0x1cc   : > { %v2817_v59 = vmul.f32 %v2785_v15, %v2689_v34 }
 0x1cd   : > { %2850 = vst.msk [vmem:[%s5499_s29 + $0x58] sm:$0xff] %vm330_vm1, %v2818_v52  ;;  %v2953_v47 = vmul.f32 %v2818_v52, %v2818_v52  ;;  %v2892_v23 = vsel %vm330_vm1, %v2818_v52, 0.0 }
 0x1ce   : > { %2849 = vst.msk [vmem:[%s5499_s29 + $0x50] sm:$0xff] %vm330_vm1, %v2817_v59  ;;  %v2890_v41 = vsel %vm330_vm1, %v2817_v59, 0.0  ;;  %v2952_v60 = vmul.f32 %v2817_v59, %v2817_v59  ;;  %v3303_v1 = vpop.f32.mrb[2].mxu1 }
 0x1cf   : > { %v2891_v16 = vadd.f32 %v2890_v41, %v2889_v18  ;;  %v2616_v7 = vadd.f32 %v3303_v1, %v5445_v62  ;;  %v2610_v3 = vpop.f32.mrb[3].mxu1  ;;  %v2995_v33 = vsel %vm330_vm1, %v2953_v47, 0.0 }
 0x1d0   : > { %v2993_v29 = vsel %vm330_vm1, %v2952_v60, 0.0  ;;  %v2611_v36 = vadd.f32 %v5445_v62, %v2610_v3 }
 0x1d1   : > { %v2994_v53 = vadd.f32 %v2993_v29, %v2992_v50  ;;  %v2730_v10 = vmul.f32 0.70710677, %v2616_v7  ;;  %v2893_v11 = vadd.f32 %v2892_v23, %v2891_v16  ;;  %v2698_v40 = vmul.f32 0.5, %v2616_v7 }
 0x1d2   : > { %v2729_v24 = vmul.f32 0.70710677, %v2611_v36  ;;  %v2697_v51 = vmul.f32 0.5, %v2611_v36 }
 0x1d3   : > { %3461 = verf.f32 %v2730_v10  ;;  %v2996_v54 = vadd.f32 %v2995_v33, %v2994_v53 }
 0x1d4   : > { %3463 = verf.f32 %v2729_v24 }
 0x1dd   : > { %v3462_v27 = vpop.eup %3461 }
 0x1de   : > { %v3464_v30 = vpop.eup %3463  ;;  %v2794_v57 = vadd.f32 1.0, %v3462_v27 }
 0x1df   : > { %v2793_v63 = vadd.f32 1.0, %v3464_v30 }
 0x1e0   : > { %v5583_v22 = vmul.f32 %v2794_v57, %v2698_v40 }
 0x1e1   : > { %v5585_v43 = vmul.f32 %v2793_v63, %v2697_v51 }
 0x1e2   : > { %2858 = vst.msk [vmem:[%s5499_s29 + $0x98] sm:$0xff] %vm330_vm1, %v5583_v22  ;;  %v3294_v61 = vpop.f32.mrb[12].mxu0 }
 0x1e3   : > { %2857 = vst.msk [vmem:[%s5499_s29 + $0x90] sm:$0xff] %vm330_vm1, %v5585_v43  ;;  %v2586_v44 = vadd.f32 %v3294_v61, %v5445_v62  ;;  %v2580_v55 = vpop.f32.mrb[13].mxu0  ;;  %v2958_v61 = vmul.f32 %v5563_v56, %v5563_v56 }
 0x1e4   : > { %v2581_v39 = vadd.f32 %v5445_v62, %v2580_v55 }
 0x1e5   : > { %v2724_v31 = vmul.f32 0.70710677, %v2586_v44  ;;  %v2692_v35 = vmul.f32 0.5, %v2586_v44 }
 0x1e6   : > { %v2723_v49 = vmul.f32 0.70710677, %v2581_v39  ;;  %v2691_v19 = vmul.f32 0.5, %v2581_v39 }
 0x1e7   : > { %3465 = verf.f32 %v2724_v31 }
 0x1e8   : > { %3467 = verf.f32 %v2723_v49 }
 0x1f1   : > { %v3466_v32 = vpop.eup %3465 }
 0x1f2   : > { %v3468_v12 = vpop.eup %3467  ;;  %v2788_v28 = vadd.f32 1.0, %v3466_v32 }
 0x1f3   : > { %v2787_v48 = vadd.f32 1.0, %v3468_v12  ;;  %v2959_v12 = vmul.f32 %v5561_v4, %v5561_v4 }
 0x1f4   : > { %v2820_v2 = vmul.f32 %v2788_v28, %v2692_v35  ;;  %v2902_v35 = vsel %vm330_vm1, %v5563_v56, 0.0  ;;  %v2961_v56 = vmul.f32 %v5583_v22, %v5583_v22 }
 0x1f5   : > { %v2819_v5 = vmul.f32 %v2787_v48, %v2691_v19 }
 0x1f6   : > { %2852 = vst.msk [vmem:[%s5499_s29 + $0x68] sm:$0xff] %vm330_vm1, %v2820_v2  ;;  %v2955_v18 = vmul.f32 %v2820_v2, %v2820_v2  ;;  %v3306_v21 = vpop.f32.mrb[4].mxu1  ;;  %v2896_v38 = vsel %vm330_vm1, %v2820_v2, 0.0 }
 0x1f7   : > { %2851 = vst.msk [vmem:[%s5499_s29 + $0x60] sm:$0xff] %vm330_vm1, %v2819_v5  ;;  %v2894_v8 = vsel %vm330_vm1, %v2819_v5, 0.0  ;;  %v2954_v50 = vmul.f32 %v2819_v5, %v2819_v5  ;;  %v2626_v25 = vadd.f32 %v3306_v21, %v5445_v62  ;;  %v2620_v20 = vpop.f32.mrb[5].mxu1  ;;  %v2904_v5 = vsel %vm330_vm1, %v5561_v4, 0.0 }
 0x1f8   : > { %v2895_v6 = vadd.f32 %v2894_v8, %v2893_v11  ;;  %v2621_v45 = vadd.f32 %v5445_v62, %v2620_v20  ;;  %v2999_v26 = vsel %vm330_vm1, %v2955_v18, 0.0  ;;  %v3005_v18 = vsel %vm330_vm1, %v2958_v61, 0.0 }
 0x1f9   : > { %v2997_v9 = vsel %vm330_vm1, %v2954_v50, 0.0  ;;  %v2732_v0 = vmul.f32 0.70710677, %v2626_v25  ;;  %v2700_v37 = vmul.f32 0.5, %v2626_v25  ;;  %v2960_v8 = vmul.f32 %v5585_v43, %v5585_v43 }
 0x1fa   : > { %v2998_v42 = vadd.f32 %v2997_v9, %v2996_v54  ;;  %v2897_v46 = vadd.f32 %v2896_v38, %v2895_v6  ;;  %v2731_v58 = vmul.f32 0.70710677, %v2621_v45  ;;  %v2699_v13 = vmul.f32 0.5, %v2621_v45 }
 0x1fb   : > { %3469 = verf.f32 %v2732_v0  ;;  %v3007_v6 = vsel %vm330_vm1, %v2959_v12, 0.0  ;;  %v2906_v25 = vsel %vm330_vm1, %v5585_v43, 0.0  ;;  %v2908_v4 = vsel %vm330_vm1, %v5583_v22, 0.0 }
 0x1fc   : > { %v3000_v17 = vadd.f32 %v2999_v26, %v2998_v42  ;;  %3471 = verf.f32 %v2731_v58  ;;  %v3009_v9 = vsel %vm330_vm1, %v2960_v8, 0.0 }
 0x205   : > { %v3470_v14 = vpop.eup %3469 }
 0x206   : > { %v3472_v34 = vpop.eup %3471  ;;  %v2796_v15 = vadd.f32 1.0, %v3470_v14 }
 0x207   : > { %v2795_v52 = vadd.f32 1.0, %v3472_v34 }
 0x208   : > { %v5605_v59 = vmul.f32 %v2796_v15, %v2700_v37 }
 0x209   : > { %v2827_v47 = vmul.f32 %v2795_v52, %v2699_v13 }
 0x20a   : > { %2860 = vst.msk [vmem:[%s5499_s29 + $0xa8] sm:$0xff] %vm330_vm1, %v5605_v59  ;;  %v2963_v26 = vmul.f32 %v5605_v59, %v5605_v59  ;;  %v2912_v37 = vsel %vm330_vm1, %v5605_v59, 0.0 }
 0x20b   : > { %2859 = vst.msk [vmem:[%s5499_s29 + $0xa0] sm:$0xff] %vm330_vm1, %v2827_v47  ;;  %v2962_v45 = vmul.f32 %v2827_v47, %v2827_v47  ;;  %v2910_v58 = vsel %vm330_vm1, %v2827_v47, 0.0 }
 0x20c   : > { %v3297_v41 = vpop.f32.mrb[14].mxu0 }
 0x20d   : > { %v2596_v60 = vadd.f32 %v3297_v41, %v5445_v62  ;;  %v2590_v1 = vpop.f32.mrb[15].mxu0  ;;  %v3013_v22 = vsel %vm330_vm1, %v2962_v45, 0.0 }
 0x20e   : > { %v2591_v16 = vadd.f32 %v5445_v62, %v2590_v1 }
 0x20f   : > { %v2726_v7 = vmul.f32 0.70710677, %v2596_v60  ;;  %v2694_v36 = vmul.f32 0.5, %v2596_v60  ;;  %v3015_v60 = vsel %vm330_vm1, %v2963_v26, 0.0 }
 0x210   : > { %v2725_v3 = vmul.f32 0.70710677, %v2591_v16  ;;  %v2693_v10 = vmul.f32 0.5, %v2591_v16 }
 0x211   : > { %3473 = verf.f32 %v2726_v7 }
 0x212   : > { %3475 = verf.f32 %v2725_v3 }
 0x21b   : > { %v3474_v23 = vpop.eup %3473 }
 0x21c   : > { %v3476_v29 = vpop.eup %3475  ;;  %v2790_v53 = vadd.f32 1.0, %v3474_v23 }
 0x21d   : > { %v2789_v11 = vadd.f32 1.0, %v3476_v29 }
 0x21e   : > { %v2822_v33 = vmul.f32 %v2790_v53, %v2694_v36 }
 0x21f   : > { %v2821_v24 = vmul.f32 %v2789_v11, %v2693_v10 }
 0x220   : > { %2854 = vst.msk [vmem:[%s5499_s29 + $0x78] sm:$0xff] %vm330_vm1, %v2822_v33  ;;  %v2957_v54 = vmul.f32 %v2822_v33, %v2822_v33  ;;  %v3309_v51 = vpop.f32.mrb[6].mxu1  ;;  %v2900_v44 = vsel %vm330_vm1, %v2822_v33, 0.0 }
 0x221   : > { %2853 = vst.msk [vmem:[%s5499_s29 + $0x70] sm:$0xff] %vm330_vm1, %v2821_v24  ;;  %v2898_v40 = vsel %vm330_vm1, %v2821_v24, 0.0  ;;  %v2956_v27 = vmul.f32 %v2821_v24, %v2821_v24  ;;  %v2636_v57 = vadd.f32 %v3309_v51, %v5445_v62  ;;  %v2630_v63 = vpop.f32.mrb[7].mxu1 }
 0x222   : > { %v2899_v30 = vadd.f32 %v2898_v40, %v2897_v46  ;;  %v2631_v39 = vadd.f32 %v5445_v62, %v2630_v63  ;;  %v3003_v28 = vsel %vm330_vm1, %v2957_v54, 0.0  ;;  %v3011_v46 = vsel %vm330_vm1, %v2961_v56, 0.0 }
 0x223   : > { %v3001_v55 = vsel %vm330_vm1, %v2956_v27, 0.0  ;;  %v2734_v32 = vmul.f32 0.70710677, %v2636_v57  ;;  %v2702_v14 = vmul.f32 0.5, %v2636_v57 }
 0x224   : > { %v2901_v31 = vadd.f32 %v2900_v44, %v2899_v30  ;;  %v3002_v49 = vadd.f32 %v3001_v55, %v3000_v17  ;;  %v2733_v19 = vmul.f32 0.70710677, %v2631_v39  ;;  %v2701_v34 = vmul.f32 0.5, %v2631_v39 }
 0x225   : > { %3477 = verf.f32 %v2734_v32 }
 0x226   : > { %v2903_v48 = vadd.f32 %v2902_v35, %v2901_v31  ;;  %v3004_v2 = vadd.f32 %v3003_v28, %v3002_v49  ;;  %3479 = verf.f32 %v2733_v19 }
 0x228   : > { %v2905_v50 = vadd.f32 %v2904_v5, %v2903_v48  ;;  %v3006_v21 = vadd.f32 %v3005_v18, %v3004_v2 }
 0x22a   : > { %v3008_v20 = vadd.f32 %v3007_v6, %v3006_v21  ;;  %v2907_v38 = vadd.f32 %v2906_v25, %v2905_v50 }
 0x22c   : > { %v2909_v42 = vadd.f32 %v2908_v4, %v2907_v38  ;;  %v3010_v0 = vadd.f32 %v3009_v9, %v3008_v20 }
 0x22e   : > { %v2911_v17 = vadd.f32 %v2910_v58, %v2909_v42  ;;  %v3012_v43 = vadd.f32 %v3011_v46, %v3010_v0 }
 0x22f   : > { %v3478_v13 = vpop.eup %3477 }
 0x230   : > { %v2913_v15 = vadd.f32 %v2912_v37, %v2911_v17  ;;  %v3014_v52 = vadd.f32 %v3013_v22, %v3012_v43  ;;  %v3480_v41 = vpop.eup %3479  ;;  %v2798_v1 = vadd.f32 1.0, %v3478_v13 }
 0x231   : > { %v2797_v16 = vadd.f32 1.0, %v3480_v41 }
 0x232   : > { %v3016_v47 = vadd.f32 %v3015_v60, %v3014_v52  ;;  %v2830_v7 = vmul.f32 %v2798_v1, %v2702_v14 }
 0x233   : > { %v2829_v3 = vmul.f32 %v2797_v16, %v2701_v34 }
 0x234   : > { %2862 = vst.msk [vmem:[%s5499_s29 + $0xb8] sm:$0xff] %vm330_vm1, %v2830_v7  ;;  %v2965_v23 = vmul.f32 %v2830_v7, %v2830_v7  ;;  %v2916_v33 = vsel %vm330_vm1, %v2830_v7, 0.0 }
 0x235   : > { %2861 = vst.msk [vmem:[%s5499_s29 + $0xb0] sm:$0xff] %vm330_vm1, %v2829_v3  ;;  %v2914_v59 = vsel %vm330_vm1, %v2829_v3, 0.0  ;;  %v2964_v29 = vmul.f32 %v2829_v3, %v2829_v3 }
 0x236   : > { %v3312_v36 = vpop.f32.mrb[8].mxu1  ;;  %v2915_v53 = vadd.f32 %v2914_v59, %v2913_v15  ;;  %v3019_v30 = vsel %vm330_vm1, %v2965_v23, 0.0 }
 0x237   : > { %v2646_v10 = vadd.f32 %v3312_v36, %v5445_v62  ;;  %v2640_v11 = vpop.f32.mrb[9].mxu1  ;;  %v3017_v24 = vsel %vm330_vm1, %v2964_v29, 0.0 }
 0x238   : > { %v2641_v54 = vadd.f32 %v5445_v62, %v2640_v11  ;;  %v3018_v40 = vadd.f32 %v3017_v24, %v3016_v47  ;;  %v2917_v51 = vadd.f32 %v2916_v33, %v2915_v53 }
 0x239   : > { %v2736_v27 = vmul.f32 0.70710677, %v2646_v10  ;;  %v2704_v61 = vmul.f32 0.5, %v2646_v10 }
 0x23a   : > { %v2735_v57 = vmul.f32 0.70710677, %v2641_v54  ;;  %v3020_v63 = vadd.f32 %v3019_v30, %v3018_v40  ;;  %v2703_v55 = vmul.f32 0.5, %v2641_v54 }
 0x23b   : > { %3481 = verf.f32 %v2736_v27 }
 0x23c   : > { %3483 = verf.f32 %v2735_v57 }
 0x245   : > { %v3482_v44 = vpop.eup %3481 }
 0x246   : > { %v3484_v39 = vpop.eup %3483  ;;  %v2800_v31 = vadd.f32 1.0, %v3482_v44 }
 0x247   : > { %v2799_v49 = vadd.f32 1.0, %v3484_v39 }
 0x248   : > { %v2832_v32 = vmul.f32 %v2800_v31, %v2704_v61 }
 0x249   : > { %v2831_v12 = vmul.f32 %v2799_v49, %v2703_v55 }
 0x24a   : > { %2864 = vst.msk [vmem:[%s5499_s29 + $0xc8] sm:$0xff] %vm330_vm1, %v2832_v32  ;;  %v2967_v35 = vmul.f32 %v2832_v32, %v2832_v32  ;;  %v3315_v48 = vpop.f32.mrb[10].mxu1  ;;  %v2920_v8 = vsel %vm330_vm1, %v2832_v32, 0.0 }
 0x24b   : > { %2863 = vst.msk [vmem:[%s5499_s29 + $0xc0] sm:$0xff] %vm330_vm1, %v2831_v12  ;;  %v2918_v28 = vsel %vm330_vm1, %v2831_v12, 0.0  ;;  %v2966_v19 = vmul.f32 %v2831_v12, %v2831_v12  ;;  %v2656_v5 = vadd.f32 %v3315_v48, %v5445_v62  ;;  %v2650_v18 = vpop.f32.mrb[11].mxu1 }
 0x24c   : > { %v2919_v2 = vadd.f32 %v2918_v28, %v2917_v51  ;;  %v2651_v21 = vadd.f32 %v5445_v62, %v2650_v18  ;;  %v3023_v20 = vsel %vm330_vm1, %v2967_v35, 0.0 }
 0x24d   : > { %v3021_v50 = vsel %vm330_vm1, %v2966_v19, 0.0  ;;  %v2738_v56 = vmul.f32 0.70710677, %v2656_v5  ;;  %v2706_v9 = vmul.f32 0.5, %v2656_v5 }
 0x24e   : > { %v3022_v6 = vadd.f32 %v3021_v50, %v3020_v63  ;;  %v2921_v25 = vadd.f32 %v2920_v8, %v2919_v2  ;;  %v2737_v38 = vmul.f32 0.70710677, %v2651_v21  ;;  %v2705_v42 = vmul.f32 0.5, %v2651_v21 }
 0x24f   : > { %3485 = verf.f32 %v2738_v56 }
 0x250   : > { %v3024_v4 = vadd.f32 %v3023_v20, %v3022_v6  ;;  %3487 = verf.f32 %v2737_v38 }
 0x259   : > { %v3486_v45 = vpop.eup %3485 }
 0x25a   : > { %v3488_v0 = vpop.eup %3487  ;;  %v2802_v46 = vadd.f32 1.0, %v3486_v45 }
 0x25b   : > { %v2801_v26 = vadd.f32 1.0, %v3488_v0 }
 0x25c   : > { %v2834_v58 = vmul.f32 %v2802_v46, %v2706_v9 }
 0x25d   : > { %v2833_v17 = vmul.f32 %v2801_v26, %v2705_v42 }
 0x25e   : > { %2866 = vst.msk [vmem:[%s5499_s29 + $0xd8] sm:$0xff] %vm330_vm1, %v2834_v58  ;;  %v2969_v43 = vmul.f32 %v2834_v58, %v2834_v58  ;;  %v2924_v52 = vsel %vm330_vm1, %v2834_v58, 0.0 }
 0x25f   : > { %2865 = vst.msk [vmem:[%s5499_s29 + $0xd0] sm:$0xff] %vm330_vm1, %v2833_v17  ;;  %v2922_v37 = vsel %vm330_vm1, %v2833_v17, 0.0  ;;  %v2968_v22 = vmul.f32 %v2833_v17, %v2833_v17  ;;  %v3318_v14 = vpop.f32.mrb[12].mxu1 }
 0x260   : > { %v2923_v13 = vadd.f32 %v2922_v37, %v2921_v25  ;;  %v2666_v34 = vadd.f32 %v3318_v14, %v5445_v62  ;;  %v2660_v15 = vpop.f32.mrb[13].mxu1  ;;  %v3027_v7 = vsel %vm330_vm1, %v2969_v43, 0.0 }
 0x261   : > { %v3025_v41 = vsel %vm330_vm1, %v2968_v22, 0.0  ;;  %v2661_v60 = vadd.f32 %v5445_v62, %v2660_v15 }
 0x262   : > { %v3026_v1 = vadd.f32 %v3025_v41, %v3024_v4  ;;  %v2740_v16 = vmul.f32 0.70710677, %v2666_v34  ;;  %v2925_v47 = vadd.f32 %v2924_v52, %v2923_v13  ;;  %v2708_v59 = vmul.f32 0.5, %v2666_v34 }
 0x263   : > { %v2739_v3 = vmul.f32 0.70710677, %v2661_v60  ;;  %v2707_v36 = vmul.f32 0.5, %v2661_v60 }
 0x264   : > { %3489 = verf.f32 %v2740_v16  ;;  %v3028_v23 = vadd.f32 %v3027_v7, %v3026_v1 }
 0x265   : > { %3491 = verf.f32 %v2739_v3 }
 0x26e   : > { %v3490_v29 = vpop.eup %3489 }
 0x26f   : > { %v3492_v53 = vpop.eup %3491  ;;  %v2804_v10 = vadd.f32 1.0, %v3490_v29 }
 0x270   : > { %v2803_v11 = vadd.f32 1.0, %v3492_v53 }
 0x271   : > { %v2836_v33 = vmul.f32 %v2804_v10, %v2708_v59 }
 0x272   : > { %v2835_v24 = vmul.f32 %v2803_v11, %v2707_v36 }
 0x273   : > { %2868 = vst.msk [vmem:[%s5499_s29 + $0xe8] sm:$0xff] %vm330_vm1, %v2836_v33  ;;  %v2971_v54 = vmul.f32 %v2836_v33, %v2836_v33  ;;  %v2928_v61 = vsel %vm330_vm1, %v2836_v33, 0.0 }
 0x274   : > { %2867 = vst.msk [vmem:[%s5499_s29 + $0xe0] sm:$0xff] %vm330_vm1, %v2835_v24  ;;  %v2926_v40 = vsel %vm330_vm1, %v2835_v24, 0.0  ;;  %v2970_v27 = vmul.f32 %v2835_v24, %v2835_v24  ;;  %v3321_v51 = vpop.f32.mrb[14].mxu1 }
 0x275   : > { %v2927_v30 = vadd.f32 %v2926_v40, %v2925_v47  ;;  %v2676_v57 = vadd.f32 %v3321_v51, %v5445_v62  ;;  %v2670_v63 = vpop.f32.mrb[15].mxu1  ;;  %v3031_v32 = vsel %vm330_vm1, %v2971_v54, 0.0 }
 0x276   : > { %v3029_v44 = vsel %vm330_vm1, %v2970_v27, 0.0  ;;  %v2671_v55 = vadd.f32 %v5445_v62, %v2670_v63 }
 0x277   : > { %v3030_v39 = vadd.f32 %v3029_v44, %v3028_v23  ;;  %v2742_v31 = vmul.f32 0.70710677, %v2676_v57  ;;  %v2929_v49 = vadd.f32 %v2928_v61, %v2927_v30  ;;  %v2710_v28 = vmul.f32 0.5, %v2676_v57 }
 0x278   : > { %v2741_v12 = vmul.f32 0.70710677, %v2671_v55  ;;  %v2709_v48 = vmul.f32 0.5, %v2671_v55 }
 0x279   : > { %3493 = verf.f32 %v2742_v31  ;;  %v3032_v35 = vadd.f32 %v3031_v32, %v3030_v39 }
 0x27a   : > { %3495 = verf.f32 %v2741_v12 }
 0x283   : > { %v3494_v19 = vpop.eup %3493 }
 0x284   : > { %v3496_v2 = vpop.eup %3495  ;;  %v2806_v5 = vadd.f32 1.0, %v3494_v19 }
 0x285   : > { %v2805_v18 = vadd.f32 1.0, %v3496_v2 }
 0x286   : > { %v2838_v8 = vmul.f32 %v2806_v5, %v2710_v28 }
 0x287   : > { %v2837_v62 = vmul.f32 %v2805_v18, %v2709_v48 }
 0x288   : > { %2870 = vst.msk [vmem:[%s5499_s29 + $0xf8] sm:$0xff] %vm330_vm1, %v2838_v8  ;;  %v2973_v50 = vmul.f32 %v2838_v8, %v2838_v8  ;;  %v2932_v25 = vsel %vm330_vm1, %v2838_v8, 0.0 }
 0x289   : > { %2869 = vst.msk [vmem:[%s5499_s29 + $0xf0] sm:$0xff] %vm330_vm1, %v2837_v62  ;;  %v2930_v21 = vsel %vm330_vm1, %v2837_v62, 0.0  ;;  %v2972_v6 = vmul.f32 %v2837_v62, %v2837_v62  ;;  %s3599_s29 = smov [#allocation3]  }
 0x28a   : > { %v2931_v56 = vadd.f32 %v2930_v21, %v2929_v49  ;;  %v3035_v9 = vsel %vm330_vm1, %v2973_v50, 0.0  ;;  %s3506_s16 = sshll.u32 %s3599_s29, 4  ;;  %s3507_s16 = int_to_ptr.vmem [resolvable:$false] %s3506_s16 }
 0x28b   : > { %v3033_v20 = vsel %vm330_vm1, %v2972_v6, 0.0  ;;  %s3508_s17 = scalar_lea.vmem %s3507_s16, 32  ;;  %p3509_p0 = scmp.lt.s32.totalorder %s5712_s9, %s3507_s16 }
 0x28c   : > { %v2933_v38 = vadd.f32 %v2932_v25, %v2931_v56  ;;  %v3034_v4 = vadd.f32 %v3033_v20, %v3032_v35  ;;  %p3510_p1 = scmp.lt.s32.totalorder %s3508_s17, %s3502_s23 }
 0x28e   : > { %v2934_v45 = vrot.slane %v2933_v38, 4  ;;  %v3036_v42 = vadd.f32 %v3035_v9, %v3034_v4  ;;  %p3511_p2 = por %p3510_p1, %p3509_p0 }
 0x290   : > { %v2935_v0 = vadd.f32 %v2934_v45, %v2933_v38  ;;  %v3037_v46 = vrot.slane %v3036_v42, 4  ;;  %p3512_p3 = pnand %p3511_p2, %p3505_p13 }
 0x292   : > { %v2936_v26 = vrot.slane %v2935_v0, 2  ;;  %v3038_v58 = vadd.f32 %v3037_v46, %v3036_v42 }
 0x294   : > { %v2937_v17 = vadd.f32 %v2936_v26, %v2935_v0  ;;  %v3039_v43 = vrot.slane %v3038_v58, 2 }
 0x296   : > { %v2938_v37 = vrot.slane %v2937_v17, 1  ;;  %v3040_v22 = vadd.f32 %v3039_v43, %v3038_v58 }
 0x298   : > { %v2939_v14 = vadd.f32 %v2938_v37, %v2937_v17  ;;  %v3041_v13 = vrot.slane %v3040_v22, 1 }
 0x29a   : > { %2941 = vst.msk [vmem:[%s281_s8] sm:$0x1] %vm2940_vm5, %v2939_v14  ;;  %v3042_v34 = vadd.f32 %v3041_v13, %v3040_v22 }
 0x29b   : > { %3515 = shalt.err (!%p3512_p3)
}
 0x29c   : > { %s3516_s18 = scalar_lea.hbm %s5710_s19, 16  ;;  %s3520_s20 = scalar_lea.hbm %s5792_s6, 32 }
 0x29d   : > { %p3517_p4 = scmp.ne.s32.totalorder %s5710_s19, %s3516_s18  ;;  %p3521_p9 = scmp.lt.u32.totalorder %s5710_s19, %s5792_s6 }
 0x29e   : > { %p3522_p10 = scmp.lt.u32.totalorder %s3520_s20, %s3516_s18  ;;  %p3524_p12 = scmp.lt.u32.totalorder %s3516_s18, %s5710_s19 }
 0x29f   : > { %p3518_p7 = pnand %p3517_p4, %p3679_p5 }
 0x2a0   : > { %p3523_p11 = por %p3522_p10, %p3521_p9 }
 0x2a1   : > { %p3519_p8 = pneg %p3518_p7 }
 0x2a2   : > { %p3525_p13 = por %p3524_p12, %p3523_p11 }
 0x2a4   : > { %p3526_p0 = pnand %p3525_p13, %p3519_p8 }
 0x2a6   : > { %3529 = shalt.err (!%p3526_p0)
}
 0x2a7   : > { %3324 = dma.vmem_to_hbm [thread:$0]  (%p3679_p5), %s5712_s9, 16, %s5710_s19, %s3050_s22   ;;  %3043 = vst.msk [vmem:[%s287_s13] sm:$0x1] %vm2940_vm5, %v3042_v34 }
 0x2a8   : > { %s3054_s23 = scalar_lea.sflag [#allocation6], %s5700_s15  ;;  %s3530_s17 = scalar_lea.vmem %s5720_s14, 16 }
 0x2a9   : > { %p3531_p1 = scmp.ne.s32.totalorder %s5720_s14, %s3530_s17  ;;  %s3600_s18 = smov [#allocation5]  }
 0x2aa   : > { %s3534_s8 = sshll.u32 %s3600_s18, 4  ;;  %s3535_s8 = int_to_ptr.vmem [resolvable:$false] %s3534_s8 }
 0x2ab   : > { %p3532_p2 = pnand %p3531_p1, %p3679_p5  ;;  %s3536_s28 = scalar_lea.vmem %s3535_s8, 32 }
 0x2ac   : > { %p3537_p4 = scmp.lt.s32.totalorder %s5720_s14, %s3535_s8  ;;  %p3538_p7 = scmp.lt.s32.totalorder %s3536_s28, %s3530_s17 }
 0x2ad   : > { %p3533_p3 = pneg %p3532_p2 }
 0x2ae   : > { %p3539_p8 = por %p3538_p7, %p3537_p4 }
 0x2b0   : > { %p3540_p9 = pnand %p3539_p8, %p3533_p3 }
 0x2b2   : > { %3543 = shalt.err (!%p3540_p9)
}
 0x2b3   : > { %s3544_s15 = scalar_lea.hbm %s5718_s21, 16  ;;  %s3548_s19 = scalar_lea.hbm %s5793_s7, 32 }
 0x2b4   : > { %p3545_p10 = scmp.ne.s32.totalorder %s5718_s21, %s3544_s15  ;;  %p3549_p13 = scmp.lt.u32.totalorder %s5718_s21, %s5793_s7 }
 0x2b5   : > { %p3550_p0 = scmp.lt.u32.totalorder %s3548_s19, %s3544_s15  ;;  %p3552_p2 = scmp.lt.u32.totalorder %s3544_s15, %s5718_s21 }
 0x2b6   : > { %p3546_p11 = pnand %p3545_p10, %p3679_p5 }
 0x2b7   : > { %p3551_p1 = por %p3550_p0, %p3549_p13 }
 0x2b8   : > { %p3547_p12 = pneg %p3546_p11 }
 0x2b9   : > { %p3553_p3 = por %p3552_p2, %p3551_p1 }
 0x2bb   : > { %p3554_p4 = pnand %p3553_p3, %p3547_p12 }
 0x2bd   : > { %3557 = shalt.err (!%p3554_p4)
}
 0x2be   : > { %3325 = dma.vmem_to_hbm [thread:$0]  (%p3679_p5), %s5720_s14, 16, %s5718_s21, %s3054_s23  }
 0x2bf PF: > { %p3335_p7 = scmp.ge.s32.totalorder %s3596_s27, 2  ;;  %s3102_s29 = sand.u32 1, %s3584_s24  }
 0x2c0   : > { %s3103_s16 = scalar_lea.sflag [#allocation4], %s3102_s29 }
 0x2c1   : > { %p3329_p8 = pnand %p3335_p7, %p3683_p6 }
 0x2c3   : > { %3575 = dma.done.wait (!%p3329_p8), %s3103_s16, 16  }
 0x2c4   : > { %3577 = vsyncadd (!%p3329_p8), %s3103_s16, 4294967280  ;;  %s3111_s17 = scalar_lea.sflag [#allocation6], %s3102_s29 }
 0x2c5   : > { %3579 = dma.done.wait (!%p3329_p8), %s3111_s17, 16  }
 0x2c6   : > { %3581 = vsyncadd (!%p3329_p8), %s3111_s17, 4294967280  ;;  %p21_p5 = scmp.ge.s32.totalorder %s3666_s30, 4   ;;  %s5839_s24 = smov %s3588_s25 }
 0x2c7   : > { %s5840_s25 = smov %s3592_s26  ;;  %s5841_s26 = smov %s3677_s10 }
 0x2c8   : > { %s5842_s27 = smov %s3666_s30  ;;  %23 = sbr.rel (!%p21_p5) target bundleno = 5 (0x5), region = 105 }
 0x2cf   :  { %3115 = vsyncpa [#allocation4], 1 }
 0x2d0   :  { %3117 = vsyncpa [#allocation4 + $0x1], 1 }
 0x2d1   :  { %3118 = vsyncpa [#allocation6], 1 }
 0x2d2   :  { %3120 = vsyncpa [#allocation6 + $0x1], 1 }

</bundles_post_ra>
